<compile_context>
chip_gen: v7x
topology: tpu7x:2x2x1
jax: 0.10.0
libtpu: 0.0.40
codegen_flags: <defaults>
</compile_context>

<pallas_src>
import functools

import jax
import jax.numpy as jnp
from jax import lax
from jax.experimental import pallas as pl
from jax.experimental.pallas import tpu as pltpu


def _round_up(x, m):
    return ((x + m - 1) // m) * m


def _pick_tile(dim, align, max_tile):
    """Largest multiple of `align` that divides `dim` and is <= max_tile, else full dim."""
    best = None
    t = align
    while t <= min(dim, max_tile):
        if dim % t == 0:
            best = t
        t += align
    return best if best is not None else dim


# ------------------------------------------------------------------
# Generic batched linear:  y = x @ W + b
#   * W is bf16 and its output dim is pre-padded to a 128 multiple at init (no per-call
#     pad / slice of the large weight or logits).
#   * grid = (out_tiles, M_tiles) with M innermost so each W block is DMA'd from HBM
#     exactly once ("W-resident" ordering); the much smaller x re-streams instead.
#   * x cast to bf16 at the dot, f32 accumulation, selectable output dtype.
#   * tile caps sized for v7x's 64 MiB VMEM (double-buffered blocks stay well under the
#     32 MiB scoped limit, set explicitly).
# ------------------------------------------------------------------
def _linear_kernel(x_ref, w_ref, b_ref, o_ref):
    x = x_ref[...].astype(jnp.bfloat16)
    acc = jnp.dot(x, w_ref[...], preferred_element_type=jnp.float32) + b_ref[...]
    o_ref[...] = acc.astype(o_ref.dtype)


def batched_linear(x, w, b, *, out_dtype=jnp.float32, tile_m_max=256, tile_n_max=1024):
    M, K = x.shape
    N = w.shape[1]
    sliced = False
    if N % 128 != 0:                     # defensive fallback; all callers pre-pad at init
        Np = _round_up(N, 128)
        w = jnp.pad(w, ((0, 0), (0, Np - N)))
        b = jnp.pad(b, ((0, 0), (0, Np - N)))
        sliced = True
    Np = w.shape[1]
    TM = _pick_tile(M, 8, tile_m_max)
    TN = _pick_tile(Np, 128, tile_n_max)
    out = pl.pallas_call(
        _linear_kernel,
        out_shape=jax.ShapeDtypeStruct((M, Np), out_dtype),
        grid=(Np // TN, M // TM),        # out-dim outer, M inner: W streamed once
        in_specs=[
            pl.BlockSpec((TM, K), lambda j, i: (i, 0)),
            pl.BlockSpec((K, TN), lambda j, i: (0, j)),
            pl.BlockSpec((1, TN), lambda j, i: (0, j)),
        ],
        out_specs=pl.BlockSpec((TM, TN), lambda j, i: (i, j)),
        compiler_params=pltpu.CompilerParams(
            dimension_semantics=("parallel", "parallel"),
            vmem_limit_bytes=32 * 1024 * 1024),
    )(x, w, b)
    return out[:, :N] if sliced else out


# ------------------------------------------------------------------
# Kernel 1: multi-head attention + feature fusion + img_to_embed + tanh
# ------------------------------------------------------------------
def _feature_kernel(scale, nh,
                    entity_ref, neighbor_ref, maskb_ref, img_ref,
                    wq_ref, bq_ref, wk_ref, bk_ref, wv_ref, bv_ref,
                    wo_ref, bo_ref, wimg_e_ref, wimg_a_ref, wimg_i_ref, bimg_ref,
                    out_ref):
    entity = entity_ref[...]                                   # [Bb, D] f32
    neighbor = neighbor_ref[...]                               # [Bb, N, D] f32
    mask_bias = maskb_ref[...]                                 # [Bb, N]  (0 / -1e9)
    Bb, N, D = neighbor.shape
    hd = D // nh

    e_bf = entity.astype(jnp.bfloat16)
    n_bf = neighbor.reshape(Bb * N, D).astype(jnp.bfloat16)

    # Projections: plain 2-D bf16 MXU matmuls, f32 accumulation.
    q = (jnp.dot(e_bf, wq_ref[...], preferred_element_type=jnp.float32)
         + bq_ref[...]) * scale                                # [Bb, D]
    k = (jnp.dot(n_bf, wk_ref[...], preferred_element_type=jnp.float32)
         + bk_ref[...]).reshape(Bb, N, D)                      # [Bb, N, D]
    v = (jnp.dot(n_bf, wv_ref[...], preferred_element_type=jnp.float32)
         + bv_ref[...]).reshape(Bb, N, D)                      # [Bb, N, D]

    # Per-head scaled-dot attention on VPU/XLU (no head-selector matmuls, no
    # [Bb*N, D] selector intermediates).  Softmax max/sum reduce over the lane
    # (neighbor) axis; nh is small and static so the loop fully unrolls.
    prod = q[:, None, :] * k                                   # [Bb, N, D] f32
    ctx_parts = []
    for h in range(nh):
        sl = slice(h * hd, (h + 1) * hd)
        s_h = jnp.sum(prod[:, :, sl], axis=-1) + mask_bias     # [Bb, N]
        m_h = jnp.max(s_h, axis=-1, keepdims=True)
        e_h = jnp.exp(s_h - m_h)
        d_h = jnp.sum(e_h, axis=-1, keepdims=True)
        p_h = e_h * pl.reciprocal(d_h, approx=True)            # [Bb, N]
        ctx_parts.append(jnp.sum(p_h[:, :, None] * v[:, :, sl], axis=1))   # [Bb, hd]
    ctx = jnp.concatenate(ctx_parts, axis=-1)                  # [Bb, D]

    attended = jnp.dot(ctx.astype(jnp.bfloat16), wo_ref[...],
                       preferred_element_type=jnp.float32) + bo_ref[...]

    # Fused img_to_embed: three accumulating matmuls (no in-kernel lane concat).
    acc = jnp.dot(e_bf, wimg_e_ref[...], preferred_element_type=jnp.float32)
    acc = acc + jnp.dot(attended.astype(jnp.bfloat16), wimg_a_ref[...],
                        preferred_element_type=jnp.float32)
    acc = acc + jnp.dot(img_ref[...].astype(jnp.bfloat16), wimg_i_ref[...],
                        preferred_element_type=jnp.float32)
    out_ref[...] = jnp.tanh(acc + bimg_ref[...])


def image_embed_feature(entity, neighbor, mask_bias, img, p, num_heads):
    B, N, D = neighbor.shape
    E = p['bimg'].shape[1]
    scale = float(D // num_heads) ** -0.5

    TBb = _pick_tile(B, 8, 256)          # batch-parallel grid (v7x megacore)
    data = lambda *blk: pl.BlockSpec(blk, lambda i: (i,) + (0,) * (len(blk) - 1))
    full = lambda *shp: pl.BlockSpec(shp, lambda i: (0,) * len(shp))
    kern = functools.partial(_feature_kernel, scale, num_heads)
    return pl.pallas_call(
        kern,
        out_shape=jax.ShapeDtypeStruct((B, E), jnp.float32),
        grid=(B // TBb,),
        in_specs=[
            data(TBb, D), data(TBb, N, D), data(TBb, N), data(TBb, D),
            full(D, D), full(1, D), full(D, D), full(1, D),
            full(D, D), full(1, D), full(D, D), full(1, D),
            full(D, E), full(D, E), full(D, E), full(1, E),
        ],
        out_specs=data(TBb, E),
        compiler_params=pltpu.CompilerParams(
            dimension_semantics=("parallel",)),
    )(entity, neighbor, mask_bias, img,
      p['wq'], p['bq'], p['wk'], p['bk'], p['wv'], p['bv'], p['wo'], p['bo'],
      p['wimg_e'], p['wimg_a'], p['wimg_i'], p['bimg'])


# ------------------------------------------------------------------
# Kernel 2: LSTM recurrence (x-gates precomputed, bootstrap fused in, h/c in VMEM)
# ------------------------------------------------------------------
def _lstm_recurrent_kernel(TB, Hp, gx0_ref, gx_ref, whh_ref, hout_ref, h_sc, c_sc):
    # Bootstrap at the first time block of each batch chunk: one LSTM step with zero
    # (h, c) driven by the image-embedding x-gates; its hidden state is kept only in
    # scratch (never emitted), so the wrapper needs no h_seq[1:] copy.
    @pl.when(pl.program_id(1) == 0)
    def _():
        g = gx0_ref[...].astype(jnp.float32)
        i_g = jax.nn.sigmoid(g[:, 0:Hp])
        g_g = jnp.tanh(g[:, 2 * Hp:3 * Hp])
        o_g = jax.nn.sigmoid(g[:, 3 * Hp:4 * Hp])
        c0 = i_g * g_g                                   # f_gate * 0 + i * g
        h_sc[...] = o_g * jnp.tanh(c0)
        c_sc[...] = c0

    whh = whh_ref[...]                                   # [Hp, 4Hp] bf16

    def step(k, carry):
        h, c = carry
        gates = gx_ref[k].astype(jnp.float32) + jnp.dot(
            h.astype(jnp.bfloat16), whh, preferred_element_type=jnp.float32)
        i_g = jax.nn.sigmoid(gates[:, 0:Hp])             # lane-aligned gate slices
        f_g = jax.nn.sigmoid(gates[:, Hp:2 * Hp])
        g_g = jnp.tanh(gates[:, 2 * Hp:3 * Hp])
        o_g = jax.nn.sigmoid(gates[:, 3 * Hp:4 * Hp])
        c_new = f_g * c + i_g * g_g
        h_new = o_g * jnp.tanh(c_new)
        hout_ref[k] = h_new
        return h_new, c_new

    h, c = lax.fori_loop(0, TB, step, (h_sc[...], c_sc[...]), unroll=True)
    h_sc[...] = h
    c_sc[...] = c


def lstm_decode(img_embed, emb_seq, p, time_block=16):
    Tm1, B, E = emb_seq.shape
    Hp = p['whh'].shape[0]
    Vp = p['wout'].shape[1]

    # (a) Hoisted x-projections (bf16 gates halve the recurrent kernel's DMA stream).
    gx0 = batched_linear(img_embed, p['wih'], p['b_lstm'], out_dtype=jnp.bfloat16)
    gx = batched_linear(emb_seq.reshape(Tm1 * B, E), p['wih'], p['b_lstm'],
                        out_dtype=jnp.bfloat16).reshape(Tm1, B, 4 * Hp)

    TB = min(time_block, _round_up(Tm1, 8))
    Tp = _round_up(Tm1, TB)
    if Tp != Tm1:       # padded tail steps compute garbage h that is dropped below
        gx = jnp.pad(gx, ((0, Tp - Tm1), (0, 0), (0, 0)))

    NB = 2 if B % 16 == 0 else 1         # v7x: split the recurrence across the two TCs
    Bc = B // NB

    # (b) Recurrent kernel: batch chunks "parallel", time blocks "arbitrary".
    kern = functools.partial(_lstm_recurrent_kernel, TB, Hp)
    h_seq = pl.pallas_call(
        kern,
        out_shape=jax.ShapeDtypeStruct((Tp, B, Hp), jnp.float32),
        grid=(NB, Tp // TB),
        in_specs=[
            pl.BlockSpec((Bc, 4 * Hp), lambda b, t: (b, 0)),
            pl.BlockSpec((TB, Bc, 4 * Hp), lambda b, t: (t, b, 0)),
            pl.BlockSpec((Hp, 4 * Hp), lambda b, t: (0, 0)),
        ],
        out_specs=pl.BlockSpec((TB, Bc, Hp), lambda b, t: (t, b, 0)),
        scratch_shapes=[pltpu.VMEM((Bc, Hp), jnp.float32),    # h carry
                        pltpu.VMEM((Bc, Hp), jnp.float32)],   # c carry
        compiler_params=pltpu.CompilerParams(
            dimension_semantics=("parallel", "arbitrary")),
    )(gx0, gx, p['whh'])

    # (c) Batched output projection against the pre-padded [Hp, Vp] vocab weight
    # (output_dropout is identity in eval mode).
    pred = batched_linear(h_seq.reshape(Tp * B, Hp), p['wout'], p['bout'])
    return pred.reshape(Tp, B, Vp)[:Tm1]                      # [T-1, B, Vp]


# ------------------------------------------------------------------
# Forward wrapper (teacher forcing path: target_sent given, fix_seq_len == -1)
# ------------------------------------------------------------------
def generator_forward(params, cfg, entity_feature, neighbor_feature, neighbor_num,
                      img_feature, target_sent, target_sent_len):
    B, N, _ = neighbor_feature.shape
    seq_range = jnp.arange(N, dtype=jnp.int32)
    # additive attention bias: 0 for valid neighbors, -1e9 where n >= neighbor_num[b]
    mask_bias = jnp.where(neighbor_num[:, None] <= seq_range[None, :],
                          -1e9, 0.0).astype(jnp.float32)

    img_embed = image_embed_feature(entity_feature, neighbor_feature, mask_bias,
                                    img_feature, params, cfg['num_heads'])

    T = target_sent.shape[1]
    emb_seq = params['embedding'][target_sent[:, :T - 1]]     # [B, T-1, E] gather (glue)
    emb_seq = jnp.transpose(emb_seq, (1, 0, 2))               # [T-1, B, E]

    pred = lstm_decode(img_embed, emb_seq, params)            # [T-1, B, Vp]
    pred_words_probs = jnp.transpose(pred, (1, 0, 2))[:, :, :cfg['vocab_size']]

    sampled_sent = target_sent
    sampled_sent_len = target_sent_len.reshape(-1)
    return pred_words_probs, sampled_sent, sampled_sent_len


# ------------------------------------------------------------------
# Deterministic parameter init (synthetic, not a checkpoint load) + one-time layout prep
# ------------------------------------------------------------------
def init_params(key, cfg):
    V, E, H, D = (cfg['vocab_size'], cfg['embed_size'],
                  cfg['g_hidden_size'], cfg['image_hidden'])
    ks = jax.random.split(key, 16)
    u = lambda k, shape, s=0.1: jax.random.uniform(k, shape, jnp.float32, -s, s)
    emb = u(ks[0], (V, E), 1.0)
    emb = emb.at[cfg['pad_idx']].set(0.0)                     # padding_idx row = 0
    return dict(
        embedding=emb,
        wih=u(ks[1], (E, 4 * H)), whh=u(ks[2], (H, 4 * H)),
        b_lstm=u(ks[3], (1, 4 * H)),                          # stands in for b_ih + b_hh
        wimg=u(ks[4], (3 * D, E)), bimg=u(ks[5], (1, E)),
        wout=u(ks[6], (H, V)), bout=u(ks[7], (1, V)),
        wq=u(ks[8], (D, D)), bq=u(ks[9], (1, D)),
        wk=u(ks[10], (D, D)), bk=u(ks[11], (1, D)),
        wv=u(ks[12], (D, D)), bv=u(ks[13], (1, D)),
        wo=u(ks[14], (D, D)), bo=u(ks[15], (1, D)),
    )


def prepare_params(raw, cfg):
    """One-time layout prep (hoisted out of the hot path): pad H per-gate and V to 128
    multiples, split wimg into its three row blocks, cast weight matrices to bf16
    (biases and the embedding table stay f32).  Zero padding keeps the math exact."""
    H, V, D = cfg['g_hidden_size'], cfg['vocab_size'], cfg['image_hidden']
    Hp, Vp = _round_up(H, 128), _round_up(V, 128)
    bf = lambda x: x.astype(jnp.bfloat16)

    def pad_gates(w):        # [..., 4H] -> [..., 4Hp], each gate block zero-padded
        parts = [w[..., g * H:(g + 1) * H] for g in range(4)]
        pad = [(0, 0)] * (w.ndim - 1) + [(0, Hp - H)]
        return jnp.concatenate([jnp.pad(x, pad) for x in parts], axis=-1)

    whh = jnp.pad(pad_gates(raw['whh']), ((0, Hp - H), (0, 0)))
    wout = jnp.pad(raw['wout'], ((0, Hp - H), (0, Vp - V)))
    return dict(
        embedding=raw['embedding'],
        wih=bf(pad_gates(raw['wih'])), whh=bf(whh), b_lstm=pad_gates(raw['b_lstm']),
        wout=bf(wout), bout=jnp.pad(raw['bout'], ((0, 0), (0, Vp - V))),
        wq=bf(raw['wq']), bq=raw['bq'], wk=bf(raw['wk']), bk=raw['bk'],
        wv=bf(raw['wv']), bv=raw['bv'], wo=bf(raw['wo']), bo=raw['bo'],
        wimg_e=bf(raw['wimg'][0 * D:1 * D]),
        wimg_a=bf(raw['wimg'][1 * D:2 * D]),
        wimg_i=bf(raw['wimg'][2 * D:3 * D]),
        bimg=raw['bimg'],
    )


if __name__ == "__main__":
    cfg = dict(vocab_size=64, embed_size=32, g_hidden_size=32, image_hidden=16,
               pad_idx=0, num_heads=2, start_idx=1, end_idx=2, dropout=0.1)
    key = jax.random.PRNGKey(0)
    pkey, dkey = jax.random.split(key)
    params = prepare_params(init_params(pkey, cfg), cfg)

    B, N, T = 2, 4, 8
    k1, k2, k3, k4 = jax.random.split(dkey, 4)
    entity = jax.random.normal(k1, (B, cfg['image_hidden']), jnp.float32)
    img = jax.random.normal(k2, (B, cfg['image_hidden']), jnp.float32)
    neighbor_num = jnp.array([3, 2], dtype=jnp.int32)
    neighbor = jax.random.normal(k3, (B, N, cfg['image_hidden']), jnp.float32)
    # emulate pad_sequence: zero the padded neighbor rows
    valid = (jnp.arange(N)[None, :] < neighbor_num[:, None]).astype(jnp.float32)
    neighbor = neighbor * valid[:, :, None]

    target_sent = jax.random.randint(k4, (B, T), 3, cfg['vocab_size'])
    target_sent = target_sent.at[:, 0].set(cfg['start_idx']).at[:, -1].set(cfg['end_idx'])
    target_sent_len = jnp.array([T, T - 2], dtype=jnp.int32)

    fwd = jax.jit(lambda p, *args: generator_forward(p, cfg, *args))
    pred_probs, sampled_sent, sampled_len = fwd(
        params, entity, neighbor, neighbor_num, img, target_sent, target_sent_len)
    jax.block_until_ready((pred_probs, sampled_sent, sampled_len))

    assert pred_probs.shape == (B, T - 1, cfg['vocab_size'])
    assert sampled_sent.shape == (B, T)
    assert sampled_len.shape == (B,)
    print("KERNEL_OK")
</pallas_src>

<mosaic_0001>
module attributes {stable_mosaic.version = 11 : i64} {
  func.func @_linear_kernel(%arg0: i32, %arg1: i32, %arg2: memref<14x32xf32, #tpu.memory_space<vmem>>, %arg3: memref<32x512xbf16, #tpu.memory_space<vmem>>, %arg4: memref<1x512xf32, #tpu.memory_space<vmem>>, %arg5: memref<14x512xbf16, #tpu.memory_space<vmem>>) attributes {dimension_semantics = [#tpu.dimension_semantics<parallel>, #tpu.dimension_semantics<parallel>], iteration_bounds = array<i64: 1, 1>, scalar_prefetch = 0 : i64, scratch_operands = 0 : i64, tpu.core_type = #tpu.core_type<tc>, window_params = [{transform_indices = @transform_0, window_bounds = array<i64: 14, 32>}, {transform_indices = @transform_1, window_bounds = array<i64: 32, 512>}, {transform_indices = @transform_2, window_bounds = array<i64: 1, 512>}, {transform_indices = @transform_3, window_bounds = array<i64: 14, 512>}]} {
    %c0 = arith.constant 0 : index
    %c0_0 = arith.constant 0 : index
    %0 = vector.load %arg2[%c0, %c0_0] : memref<14x32xf32, #tpu.memory_space<vmem>>, vector<14x32xf32>
    %1 = arith.truncf %0 : vector<14x32xf32> to vector<14x32xbf16>
    %c0_1 = arith.constant 0 : index
    %c0_2 = arith.constant 0 : index
    %2 = vector.load %arg3[%c0_1, %c0_2] : memref<32x512xbf16, #tpu.memory_space<vmem>>, vector<32x512xbf16>
    %cst = arith.constant dense<0.000000e+00> : vector<14x512xf32>
    %3 = tpu.matmul %1, %2, %cst {dimension_numbers = #tpu.dot_dimension_numbers<[1], [0], [0], [1], [0, 0, 1, 1], [], []>} : vector<14x32xbf16>, vector<32x512xbf16>, vector<14x512xf32> -> vector<14x512xf32>
    %c0_3 = arith.constant 0 : index
    %c0_4 = arith.constant 0 : index
    %4 = vector.load %arg4[%c0_3, %c0_4] : memref<1x512xf32, #tpu.memory_space<vmem>>, vector<1x512xf32>
    %5 = vector.broadcast %4 : vector<1x512xf32> to vector<14x512xf32>
    %6 = arith.addf %3, %5 : vector<14x512xf32>
    %7 = arith.truncf %6 : vector<14x512xf32> to vector<14x512xbf16>
    %c0_5 = arith.constant 0 : index
    %c0_6 = arith.constant 0 : index
    %8 = vector.load %arg5[%c0_5, %c0_6] : memref<14x512xbf16, #tpu.memory_space<vmem>>, vector<14x512xbf16>
    tpu.vector_store %arg5[%c0_5, %c0_6], %7 {strides = array<i32>} : memref<14x512xbf16, #tpu.memory_space<vmem>>, vector<14x512xbf16>,
    return
  }
  func.func @transform_0(%arg0: i32, %arg1: i32) -> (i32, i32) {
    %c0_i32 = arith.constant 0 : i32
    %c0_i32_0 = arith.constant 0 : i32
    return %arg1, %c0_i32 : i32, i32
  }
  func.func @transform_1(%arg0: i32, %arg1: i32) -> (i32, i32) {
    %c0_i32 = arith.constant 0 : i32
    %c0_i32_0 = arith.constant 0 : i32
    return %c0_i32, %arg0 : i32, i32
  }
  func.func @transform_2(%arg0: i32, %arg1: i32) -> (i32, i32) {
    %c0_i32 = arith.constant 0 : i32
    %c0_i32_0 = arith.constant 0 : i32
    return %c0_i32, %arg0 : i32, i32
  }
  func.func @transform_3(%arg0: i32, %arg1: i32) -> (i32, i32) {
    %c0_i32 = arith.constant 0 : i32
    return %arg1, %arg0 : i32, i32
  }
}

module attributes {stable_mosaic.version = 11 : i64} {
  func.func @_linear_kernel(%arg0: i32, %arg1: i32, %arg2: memref<2x32xf32, #tpu.memory_space<vmem>>, %arg3: memref<32x512xbf16, #tpu.memory_space<vmem>>, %arg4: memref<1x512xf32, #tpu.memory_space<vmem>>, %arg5: memref<2x512xbf16, #tpu.memory_space<vmem>>) attributes {dimension_semantics = [#tpu.dimension_semantics<parallel>, #tpu.dimension_semantics<parallel>], iteration_bounds = array<i64: 1, 1>, scalar_prefetch = 0 : i64, scratch_operands = 0 : i64, tpu.core_type = #tpu.core_type<tc>, window_params = [{transform_indices = @transform_0, window_bounds = array<i64: 2, 32>}, {transform_indices = @transform_1, window_bounds = array<i64: 32, 512>}, {transform_indices = @transform_2, window_bounds = array<i64: 1, 512>}, {transform_indices = @transform_3, window_bounds = array<i64: 2, 512>}]} {
    %c0 = arith.constant 0 : index
    %c0_0 = arith.constant 0 : index
    %0 = vector.load %arg2[%c0, %c0_0] : memref<2x32xf32, #tpu.memory_space<vmem>>, vector<2x32xf32>
    %1 = arith.truncf %0 : vector<2x32xf32> to vector<2x32xbf16>
    %c0_1 = arith.constant 0 : index
    %c0_2 = arith.constant 0 : index
    %2 = vector.load %arg3[%c0_1, %c0_2] : memref<32x512xbf16, #tpu.memory_space<vmem>>, vector<32x512xbf16>
    %cst = arith.constant dense<0.000000e+00> : vector<2x512xf32>
    %3 = tpu.matmul %1, %2, %cst {dimension_numbers = #tpu.dot_dimension_numbers<[1], [0], [0], [1], [0, 0, 1, 1], [], []>} : vector<2x32xbf16>, vector<32x512xbf16>, vector<2x512xf32> -> vector<2x512xf32>
    %c0_3 = arith.constant 0 : index
    %c0_4 = arith.constant 0 : index
    %4 = vector.load %arg4[%c0_3, %c0_4] : memref<1x512xf32, #tpu.memory_space<vmem>>, vector<1x512xf32>
    %5 = vector.broadcast %4 : vector<1x512xf32> to vector<2x512xf32>
    %6 = arith.addf %3, %5 : vector<2x512xf32>
    %7 = arith.truncf %6 : vector<2x512xf32> to vector<2x512xbf16>
    %c0_5 = arith.constant 0 : index
    %c0_6 = arith.constant 0 : index
    %8 = vector.load %arg5[%c0_5, %c0_6] : memref<2x512xbf16, #tpu.memory_space<vmem>>, vector<2x512xbf16>
    tpu.vector_store %arg5[%c0_5, %c0_6], %7 {strides = array<i32>} : memref<2x512xbf16, #tpu.memory_space<vmem>>, vector<2x512xbf16>,
    return
  }
  func.func @transform_0(%arg0: i32, %arg1: i32) -> (i32, i32) {
    %c0_i32 = arith.constant 0 : i32
    %c0_i32_0 = arith.constant 0 : i32
    return %arg1, %c0_i32 : i32, i32
  }
  func.func @transform_1(%arg0: i32, %arg1: i32) -> (i32, i32) {
    %c0_i32 = arith.constant 0 : i32
    %c0_i32_0 = arith.constant 0 : i32
    return %c0_i32, %arg0 : i32, i32
  }
  func.func @transform_2(%arg0: i32, %arg1: i32) -> (i32, i32) {
    %c0_i32 = arith.constant 0 : i32
    %c0_i32_0 = arith.constant 0 : i32
    return %c0_i32, %arg0 : i32, i32
  }
  func.func @transform_3(%arg0: i32, %arg1: i32) -> (i32, i32) {
    %c0_i32 = arith.constant 0 : i32
    return %arg1, %arg0 : i32, i32
  }
}

module attributes {stable_mosaic.version = 11 : i64} {
  func.func @_feature_kernel(%arg0: i32, %arg1: memref<2x16xf32, #tpu.memory_space<vmem>>, %arg2: memref<2x4x16xf32, #tpu.memory_space<vmem>>, %arg3: memref<2x4xf32, #tpu.memory_space<vmem>>, %arg4: memref<2x16xf32, #tpu.memory_space<vmem>>, %arg5: memref<16x16xbf16, #tpu.memory_space<vmem>>, %arg6: memref<1x16xf32, #tpu.memory_space<vmem>>, %arg7: memref<16x16xbf16, #tpu.memory_space<vmem>>, %arg8: memref<1x16xf32, #tpu.memory_space<vmem>>, %arg9: memref<16x16xbf16, #tpu.memory_space<vmem>>, %arg10: memref<1x16xf32, #tpu.memory_space<vmem>>, %arg11: memref<16x16xbf16, #tpu.memory_space<vmem>>, %arg12: memref<1x16xf32, #tpu.memory_space<vmem>>, %arg13: memref<16x32xbf16, #tpu.memory_space<vmem>>, %arg14: memref<16x32xbf16, #tpu.memory_space<vmem>>, %arg15: memref<16x32xbf16, #tpu.memory_space<vmem>>, %arg16: memref<1x32xf32, #tpu.memory_space<vmem>>, %arg17: memref<2x32xf32, #tpu.memory_space<vmem>>) attributes {dimension_semantics = [#tpu.dimension_semantics<parallel>], iteration_bounds = array<i64: 1>, scalar_prefetch = 0 : i64, scratch_operands = 0 : i64, tpu.core_type = #tpu.core_type<tc>, window_params = [{transform_indices = @transform_0, window_bounds = array<i64: 2, 16>}, {transform_indices = @transform_1, window_bounds = array<i64: 2, 4, 16>}, {transform_indices = @transform_2, window_bounds = array<i64: 2, 4>}, {transform_indices = @transform_3, window_bounds = array<i64: 2, 16>}, {pipeline_mode = #tpu.pipeline_mode<synchronous>, transform_indices = @transform_4, window_bounds = array<i64: 16, 16>}, {pipeline_mode = #tpu.pipeline_mode<synchronous>, transform_indices = @transform_5, window_bounds = array<i64: 1, 16>}, {pipeline_mode = #tpu.pipeline_mode<synchronous>, transform_indices = @transform_6, window_bounds = array<i64: 16, 16>}, {pipeline_mode = #tpu.pipeline_mode<synchronous>, transform_indices = @transform_7, window_bounds = array<i64: 1, 16>}, {pipeline_mode = #tpu.pipeline_mode<synchronous>, transform_indices = @transform_8, window_bounds = array<i64: 16, 16>}, {pipeline_mode = #tpu.pipeline_mode<synchronous>, transform_indices = @transform_9, window_bounds = array<i64: 1, 16>}, {pipeline_mode = #tpu.pipeline_mode<synchronous>, transform_indices = @transform_10, window_bounds = array<i64: 16, 16>}, {pipeline_mode = #tpu.pipeline_mode<synchronous>, transform_indices = @transform_11, window_bounds = array<i64: 1, 16>}, {pipeline_mode = #tpu.pipeline_mode<synchronous>, transform_indices = @transform_12, window_bounds = array<i64: 16, 32>}, {pipeline_mode = #tpu.pipeline_mode<synchronous>, transform_indices = @transform_13, window_bounds = array<i64: 16, 32>}, {pipeline_mode = #tpu.pipeline_mode<synchronous>, transform_indices = @transform_14, window_bounds = array<i64: 16, 32>}, {pipeline_mode = #tpu.pipeline_mode<synchronous>, transform_indices = @transform_15, window_bounds = array<i64: 1, 32>}, {transform_indices = @transform_16, window_bounds = array<i64: 2, 32>}]} {
    %c0 = arith.constant 0 : index
    %c0_0 = arith.constant 0 : index
    %0 = vector.load %arg1[%c0, %c0_0] : memref<2x16xf32, #tpu.memory_space<vmem>>, vector<2x16xf32>
    %c0_1 = arith.constant 0 : index
    %c0_2 = arith.constant 0 : index
    %c0_3 = arith.constant 0 : index
    %1 = vector.load %arg2[%c0_1, %c0_2, %c0_3] : memref<2x4x16xf32, #tpu.memory_space<vmem>>, vector<2x4x16xf32>
    %c0_4 = arith.constant 0 : index
    %c0_5 = arith.constant 0 : index
    %2 = vector.load %arg3[%c0_4, %c0_5] : memref<2x4xf32, #tpu.memory_space<vmem>>, vector<2x4xf32>
    %3 = arith.truncf %0 : vector<2x16xf32> to vector<2x16xbf16>
    %4 = vector.shape_cast %1 : vector<2x4x16xf32> to vector<8x16xf32>
    %5 = arith.truncf %4 : vector<8x16xf32> to vector<8x16xbf16>
    %c0_6 = arith.constant 0 : index
    %c0_7 = arith.constant 0 : index
    %6 = vector.load %arg5[%c0_6, %c0_7] : memref<16x16xbf16, #tpu.memory_space<vmem>>, vector<16x16xbf16>
    %cst = arith.constant dense<0.000000e+00> : vector<2x16xf32>
    %7 = tpu.matmul %3, %6, %cst {dimension_numbers = #tpu.dot_dimension_numbers<[1], [0], [0], [1], [0, 0, 1, 1], [], []>} : vector<2x16xbf16>, vector<16x16xbf16>, vector<2x16xf32> -> vector<2x16xf32>
    %c0_8 = arith.constant 0 : index
    %c0_9 = arith.constant 0 : index
    %8 = vector.load %arg6[%c0_8, %c0_9] : memref<1x16xf32, #tpu.memory_space<vmem>>, vector<1x16xf32>
    %9 = vector.broadcast %8 : vector<1x16xf32> to vector<2x16xf32>
    %10 = arith.addf %7, %9 : vector<2x16xf32>
    %cst_10 = arith.constant 0.353553385 : f32
    %11 = vector.broadcast %cst_10 : f32 to vector<2x16xf32>
    %12 = arith.mulf %10, %11 : vector<2x16xf32>
    %c0_11 = arith.constant 0 : index
    %c0_12 = arith.constant 0 : index
    %13 = vector.load %arg7[%c0_11, %c0_12] : memref<16x16xbf16, #tpu.memory_space<vmem>>, vector<16x16xbf16>
    %cst_13 = arith.constant dense<0.000000e+00> : vector<8x16xf32>
    %14 = tpu.matmul %5, %13, %cst_13 {dimension_numbers = #tpu.dot_dimension_numbers<[1], [0], [0], [1], [0, 0, 1, 1], [], []>} : vector<8x16xbf16>, vector<16x16xbf16>, vector<8x16xf32> -> vector<8x16xf32>
    %c0_14 = arith.constant 0 : index
    %c0_15 = arith.constant 0 : index
    %15 = vector.load %arg8[%c0_14, %c0_15] : memref<1x16xf32, #tpu.memory_space<vmem>>, vector<1x16xf32>
    %16 = vector.broadcast %15 : vector<1x16xf32> to vector<8x16xf32>
    %17 = arith.addf %14, %16 : vector<8x16xf32>
    %18 = vector.shape_cast %17 : vector<8x16xf32> to vector<2x4x16xf32>
    %c0_16 = arith.constant 0 : index
    %c0_17 = arith.constant 0 : index
    %19 = vector.load %arg9[%c0_16, %c0_17] : memref<16x16xbf16, #tpu.memory_space<vmem>>, vector<16x16xbf16>
    %cst_18 = arith.constant dense<0.000000e+00> : vector<8x16xf32>
    %20 = tpu.matmul %5, %19, %cst_18 {dimension_numbers = #tpu.dot_dimension_numbers<[1], [0], [0], [1], [0, 0, 1, 1], [], []>} : vector<8x16xbf16>, vector<16x16xbf16>, vector<8x16xf32> -> vector<8x16xf32>
    %c0_19 = arith.constant 0 : index
    %c0_20 = arith.constant 0 : index
    %21 = vector.load %arg10[%c0_19, %c0_20] : memref<1x16xf32, #tpu.memory_space<vmem>>, vector<1x16xf32>
    %22 = vector.broadcast %21 : vector<1x16xf32> to vector<8x16xf32>
    %23 = arith.addf %20, %22 : vector<8x16xf32>
    %24 = vector.shape_cast %23 : vector<8x16xf32> to vector<2x4x16xf32>
    %25 = vector.shape_cast %12 : vector<2x16xf32> to vector<2x1x16xf32>
    %26 = vector.broadcast %25 : vector<2x1x16xf32> to vector<2x4x16xf32>
    %27 = arith.mulf %26, %18 : vector<2x4x16xf32>
    %28 = vector.extract_strided_slice %27 {offsets = [0, 0, 0], sizes = [2, 4, 8], strides = [1, 1, 1]} : vector<2x4x16xf32> to vector<2x4x8xf32>
    %cst_21 = arith.constant dense<0.000000e+00> : vector<2x4xf32>
    %29 = vector.multi_reduction <add>, %28, %cst_21 [2] : vector<2x4x8xf32> to vector<2x4xf32>
    %30 = arith.addf %29, %2 : vector<2x4xf32>
    %cst_22 = arith.constant dense<0xFF800000> : vector<2xf32>
    %31 = vector.multi_reduction <maximumf>, %30, %cst_22 [1] : vector<2x4xf32> to vector<2xf32>
    %32 = vector.shape_cast %31 : vector<2xf32> to vector<2x1xf32>
    %33 = vector.broadcast %32 : vector<2x1xf32> to vector<2x4xf32>
    %34 = arith.subf %30, %33 : vector<2x4xf32>
    %35 = math.exp %34 : vector<2x4xf32>
    %cst_23 = arith.constant dense<0.000000e+00> : vector<2xf32>
    %36 = vector.multi_reduction <add>, %35, %cst_23 [1] : vector<2x4xf32> to vector<2xf32>
    %37 = vector.shape_cast %36 : vector<2xf32> to vector<2x1xf32>
    %38 = tpu.reciprocal %37 {approx = true} : vector<2x1xf32> -> vector<2x1xf32>
    %39 = vector.broadcast %38 : vector<2x1xf32> to vector<2x4xf32>
    %40 = arith.mulf %35, %39 : vector<2x4xf32>
    %41 = vector.shape_cast %40 : vector<2x4xf32> to vector<2x4x1xf32>
    %42 = vector.extract_strided_slice %24 {offsets = [0, 0, 0], sizes = [2, 4, 8], strides = [1, 1, 1]} : vector<2x4x16xf32> to vector<2x4x8xf32>
    %43 = vector.broadcast %41 : vector<2x4x1xf32> to vector<2x4x8xf32>
    %44 = arith.mulf %43, %42 : vector<2x4x8xf32>
    %cst_24 = arith.constant dense<0.000000e+00> : vector<2x8xf32>
    %45 = vector.multi_reduction <add>, %44, %cst_24 [1] : vector<2x4x8xf32> to vector<2x8xf32>
    %46 = vector.extract_strided_slice %27 {offsets = [0, 0, 8], sizes = [2, 4, 8], strides = [1, 1, 1]} : vector<2x4x16xf32> to vector<2x4x8xf32>
    %cst_25 = arith.constant dense<0.000000e+00> : vector<2x4xf32>
    %47 = vector.multi_reduction <add>, %46, %cst_25 [2] : vector<2x4x8xf32> to vector<2x4xf32>
    %48 = arith.addf %47, %2 : vector<2x4xf32>
    %cst_26 = arith.constant dense<0xFF800000> : vector<2xf32>
    %49 = vector.multi_reduction <maximumf>, %48, %cst_26 [1] : vector<2x4xf32> to vector<2xf32>
    %50 = vector.shape_cast %49 : vector<2xf32> to vector<2x1xf32>
    %51 = vector.broadcast %50 : vector<2x1xf32> to vector<2x4xf32>
    %52 = arith.subf %48, %51 : vector<2x4xf32>
    %53 = math.exp %52 : vector<2x4xf32>
    %cst_27 = arith.constant dense<0.000000e+00> : vector<2xf32>
    %54 = vector.multi_reduction <add>, %53, %cst_27 [1] : vector<2x4xf32> to vector<2xf32>
    %55 = vector.shape_cast %54 : vector<2xf32> to vector<2x1xf32>
    %56 = tpu.reciprocal %55 {approx = true} : vector<2x1xf32> -> vector<2x1xf32>
    %57 = vector.broadcast %56 : vector<2x1xf32> to vector<2x4xf32>
    %58 = arith.mulf %53, %57 : vector<2x4xf32>
    %59 = vector.shape_cast %58 : vector<2x4xf32> to vector<2x4x1xf32>
    %60 = vector.extract_strided_slice %24 {offsets = [0, 0, 8], sizes = [2, 4, 8], strides = [1, 1, 1]} : vector<2x4x16xf32> to vector<2x4x8xf32>
    %61 = vector.broadcast %59 : vector<2x4x1xf32> to vector<2x4x8xf32>
    %62 = arith.mulf %61, %60 : vector<2x4x8xf32>
    %cst_28 = arith.constant dense<0.000000e+00> : vector<2x8xf32>
    %63 = vector.multi_reduction <add>, %62, %cst_28 [1] : vector<2x4x8xf32> to vector<2x8xf32>
    %64 = tpu.concatenate %45, %63 in 1 : vector<2x8xf32>, vector<2x8xf32> -> vector<2x16xf32>
    %65 = arith.truncf %64 : vector<2x16xf32> to vector<2x16xbf16>
    %c0_29 = arith.constant 0 : index
    %c0_30 = arith.constant 0 : index
    %66 = vector.load %arg11[%c0_29, %c0_30] : memref<16x16xbf16, #tpu.memory_space<vmem>>, vector<16x16xbf16>
    %cst_31 = arith.constant dense<0.000000e+00> : vector<2x16xf32>
    %67 = tpu.matmul %65, %66, %cst_31 {dimension_numbers = #tpu.dot_dimension_numbers<[1], [0], [0], [1], [0, 0, 1, 1], [], []>} : vector<2x16xbf16>, vector<16x16xbf16>, vector<2x16xf32> -> vector<2x16xf32>
    %c0_32 = arith.constant 0 : index
    %c0_33 = arith.constant 0 : index
    %68 = vector.load %arg12[%c0_32, %c0_33] : memref<1x16xf32, #tpu.memory_space<vmem>>, vector<1x16xf32>
    %69 = vector.broadcast %68 : vector<1x16xf32> to vector<2x16xf32>
    %70 = arith.addf %67, %69 : vector<2x16xf32>
    %c0_34 = arith.constant 0 : index
    %c0_35 = arith.constant 0 : index
    %71 = vector.load %arg13[%c0_34, %c0_35] : memref<16x32xbf16, #tpu.memory_space<vmem>>, vector<16x32xbf16>
    %cst_36 = arith.constant dense<0.000000e+00> : vector<2x32xf32>
    %72 = tpu.matmul %3, %71, %cst_36 {dimension_numbers = #tpu.dot_dimension_numbers<[1], [0], [0], [1], [0, 0, 1, 1], [], []>} : vector<2x16xbf16>, vector<16x32xbf16>, vector<2x32xf32> -> vector<2x32xf32>
    %73 = arith.truncf %70 : vector<2x16xf32> to vector<2x16xbf16>
    %c0_37 = arith.constant 0 : index
    %c0_38 = arith.constant 0 : index
    %74 = vector.load %arg14[%c0_37, %c0_38] : memref<16x32xbf16, #tpu.memory_space<vmem>>, vector<16x32xbf16>
    %cst_39 = arith.constant dense<0.000000e+00> : vector<2x32xf32>
    %75 = tpu.matmul %73, %74, %cst_39 {dimension_numbers = #tpu.dot_dimension_numbers<[1], [0], [0], [1], [0, 0, 1, 1], [], []>} : vector<2x16xbf16>, vector<16x32xbf16>, vector<2x32xf32> -> vector<2x32xf32>
    %76 = arith.addf %72, %75 : vector<2x32xf32>
    %c0_40 = arith.constant 0 : index
    %c0_41 = arith.constant 0 : index
    %77 = vector.load %arg4[%c0_40, %c0_41] : memref<2x16xf32, #tpu.memory_space<vmem>>, vector<2x16xf32>
    %78 = arith.truncf %77 : vector<2x16xf32> to vector<2x16xbf16>
    %c0_42 = arith.constant 0 : index
    %c0_43 = arith.constant 0 : index
    %79 = vector.load %arg15[%c0_42, %c0_43] : memref<16x32xbf16, #tpu.memory_space<vmem>>, vector<16x32xbf16>
    %cst_44 = arith.constant dense<0.000000e+00> : vector<2x32xf32>
    %80 = tpu.matmul %78, %79, %cst_44 {dimension_numbers = #tpu.dot_dimension_numbers<[1], [0], [0], [1], [0, 0, 1, 1], [], []>} : vector<2x16xbf16>, vector<16x32xbf16>, vector<2x32xf32> -> vector<2x32xf32>
    %81 = arith.addf %76, %80 : vector<2x32xf32>
    %c0_45 = arith.constant 0 : index
    %c0_46 = arith.constant 0 : index
    %82 = vector.load %arg16[%c0_45, %c0_46] : memref<1x32xf32, #tpu.memory_space<vmem>>, vector<1x32xf32>
    %83 = vector.broadcast %82 : vector<1x32xf32> to vector<2x32xf32>
    %84 = arith.addf %81, %83 : vector<2x32xf32>
    %85 = math.tanh %84 : vector<2x32xf32>
    %c0_47 = arith.constant 0 : index
    %c0_48 = arith.constant 0 : index
    %86 = vector.load %arg17[%c0_47, %c0_48] : memref<2x32xf32, #tpu.memory_space<vmem>>, vector<2x32xf32>
    tpu.vector_store %arg17[%c0_47, %c0_48], %85 {strides = array<i32>} : memref<2x32xf32, #tpu.memory_space<vmem>>, vector<2x32xf32>,
    return
  }
  func.func @transform_0(%arg0: i32) -> (i32, i32) {
    %c0_i32 = arith.constant 0 : i32
    %c0_i32_0 = arith.constant 0 : i32
    return %arg0, %c0_i32 : i32, i32
  }
  func.func @transform_1(%arg0: i32) -> (i32, i32, i32) {
    %c0_i32 = arith.constant 0 : i32
    %c0_i32_0 = arith.constant 0 : i32
    %c0_i32_1 = arith.constant 0 : i32
    return %arg0, %c0_i32, %c0_i32_0 : i32, i32, i32
  }
  func.func @transform_2(%arg0: i32) -> (i32, i32) {
    %c0_i32 = arith.constant 0 : i32
    %c0_i32_0 = arith.constant 0 : i32
    return %arg0, %c0_i32 : i32, i32
  }
  func.func @transform_3(%arg0: i32) -> (i32, i32) {
    %c0_i32 = arith.constant 0 : i32
    %c0_i32_0 = arith.constant 0 : i32
    return %arg0, %c0_i32 : i32, i32
  }
  func.func @transform_4(%arg0: i32) -> (i32, i32) {
    %c0_i32 = arith.constant 0 : i32
    %c0_i32_0 = arith.constant 0 : i32
    %c0_i32_1 = arith.constant 0 : i32
    return %c0_i32, %c0_i32_0 : i32, i32
  }
  func.func @transform_5(%arg0: i32) -> (i32, i32) {
    %c0_i32 = arith.constant 0 : i32
    %c0_i32_0 = arith.constant 0 : i32
    %c0_i32_1 = arith.constant 0 : i32
    return %c0_i32, %c0_i32_0 : i32, i32
  }
  func.func @transform_6(%arg0: i32) -> (i32, i32) {
    %c0_i32 = arith.constant 0 : i32
    %c0_i32_0 = arith.constant 0 : i32
    %c0_i32_1 = arith.constant 0 : i32
    return %c0_i32, %c0_i32_0 : i32, i32
  }
  func.func @transform_7(%arg0: i32) -> (i32, i32) {
    %c0_i32 = arith.constant 0 : i32
    %c0_i32_0 = arith.constant 0 : i32
    %c0_i32_1 = arith.constant 0 : i32
    return %c0_i32, %c0_i32_0 : i32, i32
  }
  func.func @transform_8(%arg0: i32) -> (i32, i32) {
    %c0_i32 = arith.constant 0 : i32
    %c0_i32_0 = arith.constant 0 : i32
    %c0_i32_1 = arith.constant 0 : i32
    return %c0_i32, %c0_i32_0 : i32, i32
  }
  func.func @transform_9(%arg0: i32) -> (i32, i32) {
    %c0_i32 = arith.constant 0 : i32
    %c0_i32_0 = arith.constant 0 : i32
    %c0_i32_1 = arith.constant 0 : i32
    return %c0_i32, %c0_i32_0 : i32, i32
  }
  func.func @transform_10(%arg0: i32) -> (i32, i32) {
    %c0_i32 = arith.constant 0 : i32
    %c0_i32_0 = arith.constant 0 : i32
    %c0_i32_1 = arith.constant 0 : i32
    return %c0_i32, %c0_i32_0 : i32, i32
  }
  func.func @transform_11(%arg0: i32) -> (i32, i32) {
    %c0_i32 = arith.constant 0 : i32
    %c0_i32_0 = arith.constant 0 : i32
    %c0_i32_1 = arith.constant 0 : i32
    return %c0_i32, %c0_i32_0 : i32, i32
  }
  func.func @transform_12(%arg0: i32) -> (i32, i32) {
    %c0_i32 = arith.constant 0 : i32
    %c0_i32_0 = arith.constant 0 : i32
    %c0_i32_1 = arith.constant 0 : i32
    return %c0_i32, %c0_i32_0 : i32, i32
  }
  func.func @transform_13(%arg0: i32) -> (i32, i32) {
    %c0_i32 = arith.constant 0 : i32
    %c0_i32_0 = arith.constant 0 : i32
    %c0_i32_1 = arith.constant 0 : i32
    return %c0_i32, %c0_i32_0 : i32, i32
  }
  func.func @transform_14(%arg0: i32) -> (i32, i32) {
    %c0_i32 = arith.constant 0 : i32
    %c0_i32_0 = arith.constant 0 : i32
    %c0_i32_1 = arith.constant 0 : i32
    return %c0_i32, %c0_i32_0 : i32, i32
  }
  func.func @transform_15(%arg0: i32) -> (i32, i32) {
    %c0_i32 = arith.constant 0 : i32
    %c0_i32_0 = arith.constant 0 : i32
    %c0_i32_1 = arith.constant 0 : i32
    return %c0_i32, %c0_i32_0 : i32, i32
  }
  func.func @transform_16(%arg0: i32) -> (i32, i32) {
    %c0_i32 = arith.constant 0 : i32
    %c0_i32_0 = arith.constant 0 : i32
    return %arg0, %c0_i32 : i32, i32
  }
}

module attributes {stable_mosaic.version = 11 : i64} {
  func.func @_lstm_recurrent_kernel(%arg0: i32, %arg1: i32, %arg2: memref<2x512xbf16, #tpu.memory_space<vmem>>, %arg3: memref<8x2x512xbf16, #tpu.memory_space<vmem>>, %arg4: memref<128x512xbf16, #tpu.memory_space<vmem>>, %arg5: memref<8x2x128xf32, #tpu.memory_space<vmem>>, %arg6: memref<2x128xf32, #tpu.memory_space<vmem>>, %arg7: memref<2x128xf32, #tpu.memory_space<vmem>>) attributes {dimension_semantics = [#tpu.dimension_semantics<parallel>, #tpu.dimension_semantics<arbitrary>], iteration_bounds = array<i64: 1, 1>, scalar_prefetch = 0 : i64, scratch_operands = 2 : i64, tpu.core_type = #tpu.core_type<tc>, window_params = [{transform_indices = @transform_0, window_bounds = array<i64: 2, 512>}, {transform_indices = @transform_1, window_bounds = array<i64: 8, 2, 512>}, {pipeline_mode = #tpu.pipeline_mode<synchronous>, transform_indices = @transform_2, window_bounds = array<i64: 128, 512>}, {transform_indices = @transform_3, window_bounds = array<i64: 8, 2, 128>}]} {
    %c0_i32 = arith.constant 0 : i32
    %0 = arith.cmpi eq, %arg1, %c0_i32 : i32
    %1 = arith.extui %0 : i1 to i32
    %c0_i32_0 = arith.constant 0 : i32
    %2 = arith.cmpi ne, %1, %c0_i32_0 : i32
    scf.if %2 {
      %c0_74 = arith.constant 0 : index
      %c0_75 = arith.constant 0 : index
      %296 = vector.load %arg2[%c0_74, %c0_75] : memref<2x512xbf16, #tpu.memory_space<vmem>>, vector<2x512xbf16>
      %297 = arith.extf %296 : vector<2x512xbf16> to vector<2x512xf32>
      %298 = vector.extract_strided_slice %297 {offsets = [0, 0], sizes = [2, 128], strides = [1, 1]} : vector<2x512xf32> to vector<2x128xf32>
      %299 = arith.negf %298 : vector<2x128xf32>
      %300 = math.exp %299 : vector<2x128xf32>
      %cst_76 = arith.constant 1.000000e+00 : f32
      %301 = vector.broadcast %cst_76 : f32 to vector<2x128xf32>
      %302 = arith.addf %301, %300 : vector<2x128xf32>
      %303 = arith.divf %301, %302 : vector<2x128xf32>
      %304 = vector.extract_strided_slice %297 {offsets = [0, 256], sizes = [2, 128], strides = [1, 1]} : vector<2x512xf32> to vector<2x128xf32>
      %305 = math.tanh %304 : vector<2x128xf32>
      %306 = vector.extract_strided_slice %297 {offsets = [0, 384], sizes = [2, 128], strides = [1, 1]} : vector<2x512xf32> to vector<2x128xf32>
      %307 = arith.negf %306 : vector<2x128xf32>
      %308 = math.exp %307 : vector<2x128xf32>
      %cst_77 = arith.constant 1.000000e+00 : f32
      %309 = vector.broadcast %cst_77 : f32 to vector<2x128xf32>
      %310 = arith.addf %309, %308 : vector<2x128xf32>
      %311 = arith.divf %309, %310 : vector<2x128xf32>
      %312 = arith.mulf %303, %305 : vector<2x128xf32>
      %313 = math.tanh %312 : vector<2x128xf32>
      %314 = arith.mulf %311, %313 : vector<2x128xf32>
      %c0_78 = arith.constant 0 : index
      %c0_79 = arith.constant 0 : index
      %315 = vector.load %arg6[%c0_78, %c0_79] : memref<2x128xf32, #tpu.memory_space<vmem>>, vector<2x128xf32>
      tpu.vector_store %arg6[%c0_78, %c0_79], %314 {strides = array<i32>} : memref<2x128xf32, #tpu.memory_space<vmem>>, vector<2x128xf32>,
      %c0_80 = arith.constant 0 : index
      %c0_81 = arith.constant 0 : index
      %316 = vector.load %arg7[%c0_80, %c0_81] : memref<2x128xf32, #tpu.memory_space<vmem>>, vector<2x128xf32>
      tpu.vector_store %arg7[%c0_80, %c0_81], %312 {strides = array<i32>} : memref<2x128xf32, #tpu.memory_space<vmem>>, vector<2x128xf32>,
    } else {
    }
    %c0 = arith.constant 0 : index
    %c0_1 = arith.constant 0 : index
    %3 = vector.load %arg4[%c0, %c0_1] : memref<128x512xbf16, #tpu.memory_space<vmem>>, vector<128x512xbf16>
    %c0_2 = arith.constant 0 : index
    %c0_3 = arith.constant 0 : index
    %4 = vector.load %arg6[%c0_2, %c0_3] : memref<2x128xf32, #tpu.memory_space<vmem>>, vector<2x128xf32>
    %c0_4 = arith.constant 0 : index
    %c0_5 = arith.constant 0 : index
    %5 = vector.load %arg7[%c0_4, %c0_5] : memref<2x128xf32, #tpu.memory_space<vmem>>, vector<2x128xf32>
    %c0_i32_6 = arith.constant 0 : i32
    %6 = arith.index_cast %c0_i32_6 : i32 to index
    %c0_7 = arith.constant 0 : index
    %c0_8 = arith.constant 0 : index
    %7 = vector.load %arg3[%6, %c0_7, %c0_8] : memref<8x2x512xbf16, #tpu.memory_space<vmem>>, vector<1x2x512xbf16>
    %8 = vector.shape_cast %7 : vector<1x2x512xbf16> to vector<2x512xbf16>
    %9 = arith.extf %8 : vector<2x512xbf16> to vector<2x512xf32>
    %10 = arith.truncf %4 : vector<2x128xf32> to vector<2x128xbf16>
    %cst = arith.constant dense<0.000000e+00> : vector<2x512xf32>
    %11 = tpu.matmul %10, %3, %cst {dimension_numbers = #tpu.dot_dimension_numbers<[1], [0], [0], [1], [0, 0, 1, 1], [], []>} : vector<2x128xbf16>, vector<128x512xbf16>, vector<2x512xf32> -> vector<2x512xf32>
    %12 = arith.addf %9, %11 : vector<2x512xf32>
    %13 = vector.extract_strided_slice %12 {offsets = [0, 0], sizes = [2, 128], strides = [1, 1]} : vector<2x512xf32> to vector<2x128xf32>
    %14 = arith.negf %13 : vector<2x128xf32>
    %15 = math.exp %14 : vector<2x128xf32>
    %cst_9 = arith.constant 1.000000e+00 : f32
    %16 = vector.broadcast %cst_9 : f32 to vector<2x128xf32>
    %17 = arith.addf %16, %15 : vector<2x128xf32>
    %18 = arith.divf %16, %17 : vector<2x128xf32>
    %19 = vector.extract_strided_slice %12 {offsets = [0, 128], sizes = [2, 128], strides = [1, 1]} : vector<2x512xf32> to vector<2x128xf32>
    %20 = arith.negf %19 : vector<2x128xf32>
    %21 = math.exp %20 : vector<2x128xf32>
    %cst_10 = arith.constant 1.000000e+00 : f32
    %22 = vector.broadcast %cst_10 : f32 to vector<2x128xf32>
    %23 = arith.addf %22, %21 : vector<2x128xf32>
    %24 = arith.divf %22, %23 : vector<2x128xf32>
    %25 = vector.extract_strided_slice %12 {offsets = [0, 256], sizes = [2, 128], strides = [1, 1]} : vector<2x512xf32> to vector<2x128xf32>
    %26 = math.tanh %25 : vector<2x128xf32>
    %27 = vector.extract_strided_slice %12 {offsets = [0, 384], sizes = [2, 128], strides = [1, 1]} : vector<2x512xf32> to vector<2x128xf32>
    %28 = arith.negf %27 : vector<2x128xf32>
    %29 = math.exp %28 : vector<2x128xf32>
    %cst_11 = arith.constant 1.000000e+00 : f32
    %30 = vector.broadcast %cst_11 : f32 to vector<2x128xf32>
    %31 = arith.addf %30, %29 : vector<2x128xf32>
    %32 = arith.divf %30, %31 : vector<2x128xf32>
    %33 = arith.mulf %24, %5 : vector<2x128xf32>
    %34 = arith.mulf %18, %26 : vector<2x128xf32>
    %35 = arith.addf %33, %34 : vector<2x128xf32>
    %36 = math.tanh %35 : vector<2x128xf32>
    %37 = arith.mulf %32, %36 : vector<2x128xf32>
    %38 = arith.index_cast %c0_i32_6 : i32 to index
    %c0_12 = arith.constant 0 : index
    %c0_13 = arith.constant 0 : index
    %39 = vector.load %arg5[%38, %c0_12, %c0_13] : memref<8x2x128xf32, #tpu.memory_space<vmem>>, vector<1x2x128xf32>
    %40 = vector.shape_cast %39 : vector<1x2x128xf32> to vector<2x128xf32>
    %41 = vector.shape_cast %37 : vector<2x128xf32> to vector<1x2x128xf32>
    tpu.vector_store %arg5[%38, %c0_12, %c0_13], %41 {strides = array<i32>} : memref<8x2x128xf32, #tpu.memory_space<vmem>>, vector<1x2x128xf32>,
    %c1_i32 = arith.constant 1 : i32
    %42 = arith.index_cast %c1_i32 : i32 to index
    %c0_14 = arith.constant 0 : index
    %c0_15 = arith.constant 0 : index
    %43 = vector.load %arg3[%42, %c0_14, %c0_15] : memref<8x2x512xbf16, #tpu.memory_space<vmem>>, vector<1x2x512xbf16>
    %44 = vector.shape_cast %43 : vector<1x2x512xbf16> to vector<2x512xbf16>
    %45 = arith.extf %44 : vector<2x512xbf16> to vector<2x512xf32>
    %46 = arith.truncf %37 : vector<2x128xf32> to vector<2x128xbf16>
    %cst_16 = arith.constant dense<0.000000e+00> : vector<2x512xf32>
    %47 = tpu.matmul %46, %3, %cst_16 {dimension_numbers = #tpu.dot_dimension_numbers<[1], [0], [0], [1], [0, 0, 1, 1], [], []>} : vector<2x128xbf16>, vector<128x512xbf16>, vector<2x512xf32> -> vector<2x512xf32>
    %48 = arith.addf %45, %47 : vector<2x512xf32>
    %49 = vector.extract_strided_slice %48 {offsets = [0, 0], sizes = [2, 128], strides = [1, 1]} : vector<2x512xf32> to vector<2x128xf32>
    %50 = arith.negf %49 : vector<2x128xf32>
    %51 = math.exp %50 : vector<2x128xf32>
    %cst_17 = arith.constant 1.000000e+00 : f32
    %52 = vector.broadcast %cst_17 : f32 to vector<2x128xf32>
    %53 = arith.addf %52, %51 : vector<2x128xf32>
    %54 = arith.divf %52, %53 : vector<2x128xf32>
    %55 = vector.extract_strided_slice %48 {offsets = [0, 128], sizes = [2, 128], strides = [1, 1]} : vector<2x512xf32> to vector<2x128xf32>
    %56 = arith.negf %55 : vector<2x128xf32>
    %57 = math.exp %56 : vector<2x128xf32>
    %cst_18 = arith.constant 1.000000e+00 : f32
    %58 = vector.broadcast %cst_18 : f32 to vector<2x128xf32>
    %59 = arith.addf %58, %57 : vector<2x128xf32>
    %60 = arith.divf %58, %59 : vector<2x128xf32>
    %61 = vector.extract_strided_slice %48 {offsets = [0, 256], sizes = [2, 128], strides = [1, 1]} : vector<2x512xf32> to vector<2x128xf32>
    %62 = math.tanh %61 : vector<2x128xf32>
    %63 = vector.extract_strided_slice %48 {offsets = [0, 384], sizes = [2, 128], strides = [1, 1]} : vector<2x512xf32> to vector<2x128xf32>
    %64 = arith.negf %63 : vector<2x128xf32>
    %65 = math.exp %64 : vector<2x128xf32>
    %cst_19 = arith.constant 1.000000e+00 : f32
    %66 = vector.broadcast %cst_19 : f32 to vector<2x128xf32>
    %67 = arith.addf %66, %65 : vector<2x128xf32>
    %68 = arith.divf %66, %67 : vector<2x128xf32>
    %69 = arith.mulf %60, %35 : vector<2x128xf32>
    %70 = arith.mulf %54, %62 : vector<2x128xf32>
    %71 = arith.addf %69, %70 : vector<2x128xf32>
    %72 = math.tanh %71 : vector<2x128xf32>
    %73 = arith.mulf %68, %72 : vector<2x128xf32>
    %74 = arith.index_cast %c1_i32 : i32 to index
    %c0_20 = arith.constant 0 : index
    %c0_21 = arith.constant 0 : index
    %75 = vector.load %arg5[%74, %c0_20, %c0_21] : memref<8x2x128xf32, #tpu.memory_space<vmem>>, vector<1x2x128xf32>
    %76 = vector.shape_cast %75 : vector<1x2x128xf32> to vector<2x128xf32>
    %77 = vector.shape_cast %73 : vector<2x128xf32> to vector<1x2x128xf32>
    tpu.vector_store %arg5[%74, %c0_20, %c0_21], %77 {strides = array<i32>} : memref<8x2x128xf32, #tpu.memory_space<vmem>>, vector<1x2x128xf32>,
    %c2_i32 = arith.constant 2 : i32
    %78 = arith.index_cast %c2_i32 : i32 to index
    %c0_22 = arith.constant 0 : index
    %c0_23 = arith.constant 0 : index
    %79 = vector.load %arg3[%78, %c0_22, %c0_23] : memref<8x2x512xbf16, #tpu.memory_space<vmem>>, vector<1x2x512xbf16>
    %80 = vector.shape_cast %79 : vector<1x2x512xbf16> to vector<2x512xbf16>
    %81 = arith.extf %80 : vector<2x512xbf16> to vector<2x512xf32>
    %82 = arith.truncf %73 : vector<2x128xf32> to vector<2x128xbf16>
    %cst_24 = arith.constant dense<0.000000e+00> : vector<2x512xf32>
    %83 = tpu.matmul %82, %3, %cst_24 {dimension_numbers = #tpu.dot_dimension_numbers<[1], [0], [0], [1], [0, 0, 1, 1], [], []>} : vector<2x128xbf16>, vector<128x512xbf16>, vector<2x512xf32> -> vector<2x512xf32>
    %84 = arith.addf %81, %83 : vector<2x512xf32>
    %85 = vector.extract_strided_slice %84 {offsets = [0, 0], sizes = [2, 128], strides = [1, 1]} : vector<2x512xf32> to vector<2x128xf32>
    %86 = arith.negf %85 : vector<2x128xf32>
    %87 = math.exp %86 : vector<2x128xf32>
    %cst_25 = arith.constant 1.000000e+00 : f32
    %88 = vector.broadcast %cst_25 : f32 to vector<2x128xf32>
    %89 = arith.addf %88, %87 : vector<2x128xf32>
    %90 = arith.divf %88, %89 : vector<2x128xf32>
    %91 = vector.extract_strided_slice %84 {offsets = [0, 128], sizes = [2, 128], strides = [1, 1]} : vector<2x512xf32> to vector<2x128xf32>
    %92 = arith.negf %91 : vector<2x128xf32>
    %93 = math.exp %92 : vector<2x128xf32>
    %cst_26 = arith.constant 1.000000e+00 : f32
    %94 = vector.broadcast %cst_26 : f32 to vector<2x128xf32>
    %95 = arith.addf %94, %93 : vector<2x128xf32>
    %96 = arith.divf %94, %95 : vector<2x128xf32>
    %97 = vector.extract_strided_slice %84 {offsets = [0, 256], sizes = [2, 128], strides = [1, 1]} : vector<2x512xf32> to vector<2x128xf32>
    %98 = math.tanh %97 : vector<2x128xf32>
    %99 = vector.extract_strided_slice %84 {offsets = [0, 384], sizes = [2, 128], strides = [1, 1]} : vector<2x512xf32> to vector<2x128xf32>
    %100 = arith.negf %99 : vector<2x128xf32>
    %101 = math.exp %100 : vector<2x128xf32>
    %cst_27 = arith.constant 1.000000e+00 : f32
    %102 = vector.broadcast %cst_27 : f32 to vector<2x128xf32>
    %103 = arith.addf %102, %101 : vector<2x128xf32>
    %104 = arith.divf %102, %103 : vector<2x128xf32>
    %105 = arith.mulf %96, %71 : vector<2x128xf32>
    %106 = arith.mulf %90, %98 : vector<2x128xf32>
    %107 = arith.addf %105, %106 : vector<2x128xf32>
    %108 = math.tanh %107 : vector<2x128xf32>
    %109 = arith.mulf %104, %108 : vector<2x128xf32>
    %110 = arith.index_cast %c2_i32 : i32 to index
    %c0_28 = arith.constant 0 : index
    %c0_29 = arith.constant 0 : index
    %111 = vector.load %arg5[%110, %c0_28, %c0_29] : memref<8x2x128xf32, #tpu.memory_space<vmem>>, vector<1x2x128xf32>
    %112 = vector.shape_cast %111 : vector<1x2x128xf32> to vector<2x128xf32>
    %113 = vector.shape_cast %109 : vector<2x128xf32> to vector<1x2x128xf32>
    tpu.vector_store %arg5[%110, %c0_28, %c0_29], %113 {strides = array<i32>} : memref<8x2x128xf32, #tpu.memory_space<vmem>>, vector<1x2x128xf32>,
    %c3_i32 = arith.constant 3 : i32
    %114 = arith.index_cast %c3_i32 : i32 to index
    %c0_30 = arith.constant 0 : index
    %c0_31 = arith.constant 0 : index
    %115 = vector.load %arg3[%114, %c0_30, %c0_31] : memref<8x2x512xbf16, #tpu.memory_space<vmem>>, vector<1x2x512xbf16>
    %116 = vector.shape_cast %115 : vector<1x2x512xbf16> to vector<2x512xbf16>
    %117 = arith.extf %116 : vector<2x512xbf16> to vector<2x512xf32>
    %118 = arith.truncf %109 : vector<2x128xf32> to vector<2x128xbf16>
    %cst_32 = arith.constant dense<0.000000e+00> : vector<2x512xf32>
    %119 = tpu.matmul %118, %3, %cst_32 {dimension_numbers = #tpu.dot_dimension_numbers<[1], [0], [0], [1], [0, 0, 1, 1], [], []>} : vector<2x128xbf16>, vector<128x512xbf16>, vector<2x512xf32> -> vector<2x512xf32>
    %120 = arith.addf %117, %119 : vector<2x512xf32>
    %121 = vector.extract_strided_slice %120 {offsets = [0, 0], sizes = [2, 128], strides = [1, 1]} : vector<2x512xf32> to vector<2x128xf32>
    %122 = arith.negf %121 : vector<2x128xf32>
    %123 = math.exp %122 : vector<2x128xf32>
    %cst_33 = arith.constant 1.000000e+00 : f32
    %124 = vector.broadcast %cst_33 : f32 to vector<2x128xf32>
    %125 = arith.addf %124, %123 : vector<2x128xf32>
    %126 = arith.divf %124, %125 : vector<2x128xf32>
    %127 = vector.extract_strided_slice %120 {offsets = [0, 128], sizes = [2, 128], strides = [1, 1]} : vector<2x512xf32> to vector<2x128xf32>
    %128 = arith.negf %127 : vector<2x128xf32>
    %129 = math.exp %128 : vector<2x128xf32>
    %cst_34 = arith.constant 1.000000e+00 : f32
    %130 = vector.broadcast %cst_34 : f32 to vector<2x128xf32>
    %131 = arith.addf %130, %129 : vector<2x128xf32>
    %132 = arith.divf %130, %131 : vector<2x128xf32>
    %133 = vector.extract_strided_slice %120 {offsets = [0, 256], sizes = [2, 128], strides = [1, 1]} : vector<2x512xf32> to vector<2x128xf32>
    %134 = math.tanh %133 : vector<2x128xf32>
    %135 = vector.extract_strided_slice %120 {offsets = [0, 384], sizes = [2, 128], strides = [1, 1]} : vector<2x512xf32> to vector<2x128xf32>
    %136 = arith.negf %135 : vector<2x128xf32>
    %137 = math.exp %136 : vector<2x128xf32>
    %cst_35 = arith.constant 1.000000e+00 : f32
    %138 = vector.broadcast %cst_35 : f32 to vector<2x128xf32>
    %139 = arith.addf %138, %137 : vector<2x128xf32>
    %140 = arith.divf %138, %139 : vector<2x128xf32>
    %141 = arith.mulf %132, %107 : vector<2x128xf32>
    %142 = arith.mulf %126, %134 : vector<2x128xf32>
    %143 = arith.addf %141, %142 : vector<2x128xf32>
    %144 = math.tanh %143 : vector<2x128xf32>
    %145 = arith.mulf %140, %144 : vector<2x128xf32>
    %146 = arith.index_cast %c3_i32 : i32 to index
    %c0_36 = arith.constant 0 : index
    %c0_37 = arith.constant 0 : index
    %147 = vector.load %arg5[%146, %c0_36, %c0_37] : memref<8x2x128xf32, #tpu.memory_space<vmem>>, vector<1x2x128xf32>
    %148 = vector.shape_cast %147 : vector<1x2x128xf32> to vector<2x128xf32>
    %149 = vector.shape_cast %145 : vector<2x128xf32> to vector<1x2x128xf32>
    tpu.vector_store %arg5[%146, %c0_36, %c0_37], %149 {strides = array<i32>} : memref<8x2x128xf32, #tpu.memory_space<vmem>>, vector<1x2x128xf32>,
    %c4_i32 = arith.constant 4 : i32
    %150 = arith.index_cast %c4_i32 : i32 to index
    %c0_38 = arith.constant 0 : index
    %c0_39 = arith.constant 0 : index
    %151 = vector.load %arg3[%150, %c0_38, %c0_39] : memref<8x2x512xbf16, #tpu.memory_space<vmem>>, vector<1x2x512xbf16>
    %152 = vector.shape_cast %151 : vector<1x2x512xbf16> to vector<2x512xbf16>
    %153 = arith.extf %152 : vector<2x512xbf16> to vector<2x512xf32>
    %154 = arith.truncf %145 : vector<2x128xf32> to vector<2x128xbf16>
    %cst_40 = arith.constant dense<0.000000e+00> : vector<2x512xf32>
    %155 = tpu.matmul %154, %3, %cst_40 {dimension_numbers = #tpu.dot_dimension_numbers<[1], [0], [0], [1], [0, 0, 1, 1], [], []>} : vector<2x128xbf16>, vector<128x512xbf16>, vector<2x512xf32> -> vector<2x512xf32>
    %156 = arith.addf %153, %155 : vector<2x512xf32>
    %157 = vector.extract_strided_slice %156 {offsets = [0, 0], sizes = [2, 128], strides = [1, 1]} : vector<2x512xf32> to vector<2x128xf32>
    %158 = arith.negf %157 : vector<2x128xf32>
    %159 = math.exp %158 : vector<2x128xf32>
    %cst_41 = arith.constant 1.000000e+00 : f32
    %160 = vector.broadcast %cst_41 : f32 to vector<2x128xf32>
    %161 = arith.addf %160, %159 : vector<2x128xf32>
    %162 = arith.divf %160, %161 : vector<2x128xf32>
    %163 = vector.extract_strided_slice %156 {offsets = [0, 128], sizes = [2, 128], strides = [1, 1]} : vector<2x512xf32> to vector<2x128xf32>
    %164 = arith.negf %163 : vector<2x128xf32>
    %165 = math.exp %164 : vector<2x128xf32>
    %cst_42 = arith.constant 1.000000e+00 : f32
    %166 = vector.broadcast %cst_42 : f32 to vector<2x128xf32>
    %167 = arith.addf %166, %165 : vector<2x128xf32>
    %168 = arith.divf %166, %167 : vector<2x128xf32>
    %169 = vector.extract_strided_slice %156 {offsets = [0, 256], sizes = [2, 128], strides = [1, 1]} : vector<2x512xf32> to vector<2x128xf32>
    %170 = math.tanh %169 : vector<2x128xf32>
    %171 = vector.extract_strided_slice %156 {offsets = [0, 384], sizes = [2, 128], strides = [1, 1]} : vector<2x512xf32> to vector<2x128xf32>
    %172 = arith.negf %171 : vector<2x128xf32>
    %173 = math.exp %172 : vector<2x128xf32>
    %cst_43 = arith.constant 1.000000e+00 : f32
    %174 = vector.broadcast %cst_43 : f32 to vector<2x128xf32>
    %175 = arith.addf %174, %173 : vector<2x128xf32>
    %176 = arith.divf %174, %175 : vector<2x128xf32>
    %177 = arith.mulf %168, %143 : vector<2x128xf32>
    %178 = arith.mulf %162, %170 : vector<2x128xf32>
    %179 = arith.addf %177, %178 : vector<2x128xf32>
    %180 = math.tanh %179 : vector<2x128xf32>
    %181 = arith.mulf %176, %180 : vector<2x128xf32>
    %182 = arith.index_cast %c4_i32 : i32 to index
    %c0_44 = arith.constant 0 : index
    %c0_45 = arith.constant 0 : index
    %183 = vector.load %arg5[%182, %c0_44, %c0_45] : memref<8x2x128xf32, #tpu.memory_space<vmem>>, vector<1x2x128xf32>
    %184 = vector.shape_cast %183 : vector<1x2x128xf32> to vector<2x128xf32>
    %185 = vector.shape_cast %181 : vector<2x128xf32> to vector<1x2x128xf32>
    tpu.vector_store %arg5[%182, %c0_44, %c0_45], %185 {strides = array<i32>} : memref<8x2x128xf32, #tpu.memory_space<vmem>>, vector<1x2x128xf32>,
    %c5_i32 = arith.constant 5 : i32
    %186 = arith.index_cast %c5_i32 : i32 to index
    %c0_46 = arith.constant 0 : index
    %c0_47 = arith.constant 0 : index
    %187 = vector.load %arg3[%186, %c0_46, %c0_47] : memref<8x2x512xbf16, #tpu.memory_space<vmem>>, vector<1x2x512xbf16>
    %188 = vector.shape_cast %187 : vector<1x2x512xbf16> to vector<2x512xbf16>
    %189 = arith.extf %188 : vector<2x512xbf16> to vector<2x512xf32>
    %190 = arith.truncf %181 : vector<2x128xf32> to vector<2x128xbf16>
    %cst_48 = arith.constant dense<0.000000e+00> : vector<2x512xf32>
    %191 = tpu.matmul %190, %3, %cst_48 {dimension_numbers = #tpu.dot_dimension_numbers<[1], [0], [0], [1], [0, 0, 1, 1], [], []>} : vector<2x128xbf16>, vector<128x512xbf16>, vector<2x512xf32> -> vector<2x512xf32>
    %192 = arith.addf %189, %191 : vector<2x512xf32>
    %193 = vector.extract_strided_slice %192 {offsets = [0, 0], sizes = [2, 128], strides = [1, 1]} : vector<2x512xf32> to vector<2x128xf32>
    %194 = arith.negf %193 : vector<2x128xf32>
    %195 = math.exp %194 : vector<2x128xf32>
    %cst_49 = arith.constant 1.000000e+00 : f32
    %196 = vector.broadcast %cst_49 : f32 to vector<2x128xf32>
    %197 = arith.addf %196, %195 : vector<2x128xf32>
    %198 = arith.divf %196, %197 : vector<2x128xf32>
    %199 = vector.extract_strided_slice %192 {offsets = [0, 128], sizes = [2, 128], strides = [1, 1]} : vector<2x512xf32> to vector<2x128xf32>
    %200 = arith.negf %199 : vector<2x128xf32>
    %201 = math.exp %200 : vector<2x128xf32>
    %cst_50 = arith.constant 1.000000e+00 : f32
    %202 = vector.broadcast %cst_50 : f32 to vector<2x128xf32>
    %203 = arith.addf %202, %201 : vector<2x128xf32>
    %204 = arith.divf %202, %203 : vector<2x128xf32>
    %205 = vector.extract_strided_slice %192 {offsets = [0, 256], sizes = [2, 128], strides = [1, 1]} : vector<2x512xf32> to vector<2x128xf32>
    %206 = math.tanh %205 : vector<2x128xf32>
    %207 = vector.extract_strided_slice %192 {offsets = [0, 384], sizes = [2, 128], strides = [1, 1]} : vector<2x512xf32> to vector<2x128xf32>
    %208 = arith.negf %207 : vector<2x128xf32>
    %209 = math.exp %208 : vector<2x128xf32>
    %cst_51 = arith.constant 1.000000e+00 : f32
    %210 = vector.broadcast %cst_51 : f32 to vector<2x128xf32>
    %211 = arith.addf %210, %209 : vector<2x128xf32>
    %212 = arith.divf %210, %211 : vector<2x128xf32>
    %213 = arith.mulf %204, %179 : vector<2x128xf32>
    %214 = arith.mulf %198, %206 : vector<2x128xf32>
    %215 = arith.addf %213, %214 : vector<2x128xf32>
    %216 = math.tanh %215 : vector<2x128xf32>
    %217 = arith.mulf %212, %216 : vector<2x128xf32>
    %218 = arith.index_cast %c5_i32 : i32 to index
    %c0_52 = arith.constant 0 : index
    %c0_53 = arith.constant 0 : index
    %219 = vector.load %arg5[%218, %c0_52, %c0_53] : memref<8x2x128xf32, #tpu.memory_space<vmem>>, vector<1x2x128xf32>
    %220 = vector.shape_cast %219 : vector<1x2x128xf32> to vector<2x128xf32>
    %221 = vector.shape_cast %217 : vector<2x128xf32> to vector<1x2x128xf32>
    tpu.vector_store %arg5[%218, %c0_52, %c0_53], %221 {strides = array<i32>} : memref<8x2x128xf32, #tpu.memory_space<vmem>>, vector<1x2x128xf32>,
    %c6_i32 = arith.constant 6 : i32
    %222 = arith.index_cast %c6_i32 : i32 to index
    %c0_54 = arith.constant 0 : index
    %c0_55 = arith.constant 0 : index
    %223 = vector.load %arg3[%222, %c0_54, %c0_55] : memref<8x2x512xbf16, #tpu.memory_space<vmem>>, vector<1x2x512xbf16>
    %224 = vector.shape_cast %223 : vector<1x2x512xbf16> to vector<2x512xbf16>
    %225 = arith.extf %224 : vector<2x512xbf16> to vector<2x512xf32>
    %226 = arith.truncf %217 : vector<2x128xf32> to vector<2x128xbf16>
    %cst_56 = arith.constant dense<0.000000e+00> : vector<2x512xf32>
    %227 = tpu.matmul %226, %3, %cst_56 {dimension_numbers = #tpu.dot_dimension_numbers<[1], [0], [0], [1], [0, 0, 1, 1], [], []>} : vector<2x128xbf16>, vector<128x512xbf16>, vector<2x512xf32> -> vector<2x512xf32>
    %228 = arith.addf %225, %227 : vector<2x512xf32>
    %229 = vector.extract_strided_slice %228 {offsets = [0, 0], sizes = [2, 128], strides = [1, 1]} : vector<2x512xf32> to vector<2x128xf32>
    %230 = arith.negf %229 : vector<2x128xf32>
    %231 = math.exp %230 : vector<2x128xf32>
    %cst_57 = arith.constant 1.000000e+00 : f32
    %232 = vector.broadcast %cst_57 : f32 to vector<2x128xf32>
    %233 = arith.addf %232, %231 : vector<2x128xf32>
    %234 = arith.divf %232, %233 : vector<2x128xf32>
    %235 = vector.extract_strided_slice %228 {offsets = [0, 128], sizes = [2, 128], strides = [1, 1]} : vector<2x512xf32> to vector<2x128xf32>
    %236 = arith.negf %235 : vector<2x128xf32>
    %237 = math.exp %236 : vector<2x128xf32>
    %cst_58 = arith.constant 1.000000e+00 : f32
    %238 = vector.broadcast %cst_58 : f32 to vector<2x128xf32>
    %239 = arith.addf %238, %237 : vector<2x128xf32>
    %240 = arith.divf %238, %239 : vector<2x128xf32>
    %241 = vector.extract_strided_slice %228 {offsets = [0, 256], sizes = [2, 128], strides = [1, 1]} : vector<2x512xf32> to vector<2x128xf32>
    %242 = math.tanh %241 : vector<2x128xf32>
    %243 = vector.extract_strided_slice %228 {offsets = [0, 384], sizes = [2, 128], strides = [1, 1]} : vector<2x512xf32> to vector<2x128xf32>
    %244 = arith.negf %243 : vector<2x128xf32>
    %245 = math.exp %244 : vector<2x128xf32>
    %cst_59 = arith.constant 1.000000e+00 : f32
    %246 = vector.broadcast %cst_59 : f32 to vector<2x128xf32>
    %247 = arith.addf %246, %245 : vector<2x128xf32>
    %248 = arith.divf %246, %247 : vector<2x128xf32>
    %249 = arith.mulf %240, %215 : vector<2x128xf32>
    %250 = arith.mulf %234, %242 : vector<2x128xf32>
    %251 = arith.addf %249, %250 : vector<2x128xf32>
    %252 = math.tanh %251 : vector<2x128xf32>
    %253 = arith.mulf %248, %252 : vector<2x128xf32>
    %254 = arith.index_cast %c6_i32 : i32 to index
    %c0_60 = arith.constant 0 : index
    %c0_61 = arith.constant 0 : index
    %255 = vector.load %arg5[%254, %c0_60, %c0_61] : memref<8x2x128xf32, #tpu.memory_space<vmem>>, vector<1x2x128xf32>
    %256 = vector.shape_cast %255 : vector<1x2x128xf32> to vector<2x128xf32>
    %257 = vector.shape_cast %253 : vector<2x128xf32> to vector<1x2x128xf32>
    tpu.vector_store %arg5[%254, %c0_60, %c0_61], %257 {strides = array<i32>} : memref<8x2x128xf32, #tpu.memory_space<vmem>>, vector<1x2x128xf32>,
    %c7_i32 = arith.constant 7 : i32
    %258 = arith.index_cast %c7_i32 : i32 to index
    %c0_62 = arith.constant 0 : index
    %c0_63 = arith.constant 0 : index
    %259 = vector.load %arg3[%258, %c0_62, %c0_63] : memref<8x2x512xbf16, #tpu.memory_space<vmem>>, vector<1x2x512xbf16>
    %260 = vector.shape_cast %259 : vector<1x2x512xbf16> to vector<2x512xbf16>
    %261 = arith.extf %260 : vector<2x512xbf16> to vector<2x512xf32>
    %262 = arith.truncf %253 : vector<2x128xf32> to vector<2x128xbf16>
    %cst_64 = arith.constant dense<0.000000e+00> : vector<2x512xf32>
    %263 = tpu.matmul %262, %3, %cst_64 {dimension_numbers = #tpu.dot_dimension_numbers<[1], [0], [0], [1], [0, 0, 1, 1], [], []>} : vector<2x128xbf16>, vector<128x512xbf16>, vector<2x512xf32> -> vector<2x512xf32>
    %264 = arith.addf %261, %263 : vector<2x512xf32>
    %265 = vector.extract_strided_slice %264 {offsets = [0, 0], sizes = [2, 128], strides = [1, 1]} : vector<2x512xf32> to vector<2x128xf32>
    %266 = arith.negf %265 : vector<2x128xf32>
    %267 = math.exp %266 : vector<2x128xf32>
    %cst_65 = arith.constant 1.000000e+00 : f32
    %268 = vector.broadcast %cst_65 : f32 to vector<2x128xf32>
    %269 = arith.addf %268, %267 : vector<2x128xf32>
    %270 = arith.divf %268, %269 : vector<2x128xf32>
    %271 = vector.extract_strided_slice %264 {offsets = [0, 128], sizes = [2, 128], strides = [1, 1]} : vector<2x512xf32> to vector<2x128xf32>
    %272 = arith.negf %271 : vector<2x128xf32>
    %273 = math.exp %272 : vector<2x128xf32>
    %cst_66 = arith.constant 1.000000e+00 : f32
    %274 = vector.broadcast %cst_66 : f32 to vector<2x128xf32>
    %275 = arith.addf %274, %273 : vector<2x128xf32>
    %276 = arith.divf %274, %275 : vector<2x128xf32>
    %277 = vector.extract_strided_slice %264 {offsets = [0, 256], sizes = [2, 128], strides = [1, 1]} : vector<2x512xf32> to vector<2x128xf32>
    %278 = math.tanh %277 : vector<2x128xf32>
    %279 = vector.extract_strided_slice %264 {offsets = [0, 384], sizes = [2, 128], strides = [1, 1]} : vector<2x512xf32> to vector<2x128xf32>
    %280 = arith.negf %279 : vector<2x128xf32>
    %281 = math.exp %280 : vector<2x128xf32>
    %cst_67 = arith.constant 1.000000e+00 : f32
    %282 = vector.broadcast %cst_67 : f32 to vector<2x128xf32>
    %283 = arith.addf %282, %281 : vector<2x128xf32>
    %284 = arith.divf %282, %283 : vector<2x128xf32>
    %285 = arith.mulf %276, %251 : vector<2x128xf32>
    %286 = arith.mulf %270, %278 : vector<2x128xf32>
    %287 = arith.addf %285, %286 : vector<2x128xf32>
    %288 = math.tanh %287 : vector<2x128xf32>
    %289 = arith.mulf %284, %288 : vector<2x128xf32>
    %290 = arith.index_cast %c7_i32 : i32 to index
    %c0_68 = arith.constant 0 : index
    %c0_69 = arith.constant 0 : index
    %291 = vector.load %arg5[%290, %c0_68, %c0_69] : memref<8x2x128xf32, #tpu.memory_space<vmem>>, vector<1x2x128xf32>
    %292 = vector.shape_cast %291 : vector<1x2x128xf32> to vector<2x128xf32>
    %293 = vector.shape_cast %289 : vector<2x128xf32> to vector<1x2x128xf32>
    tpu.vector_store %arg5[%290, %c0_68, %c0_69], %293 {strides = array<i32>} : memref<8x2x128xf32, #tpu.memory_space<vmem>>, vector<1x2x128xf32>,
    %c8_i32 = arith.constant 8 : i32
    %c0_70 = arith.constant 0 : index
    %c0_71 = arith.constant 0 : index
    %294 = vector.load %arg6[%c0_70, %c0_71] : memref<2x128xf32, #tpu.memory_space<vmem>>, vector<2x128xf32>
    tpu.vector_store %arg6[%c0_70, %c0_71], %289 {strides = array<i32>} : memref<2x128xf32, #tpu.memory_space<vmem>>, vector<2x128xf32>,
    %c0_72 = arith.constant 0 : index
    %c0_73 = arith.constant 0 : index
    %295 = vector.load %arg7[%c0_72, %c0_73] : memref<2x128xf32, #tpu.memory_space<vmem>>, vector<2x128xf32>
    tpu.vector_store %arg7[%c0_72, %c0_73], %287 {strides = array<i32>} : memref<2x128xf32, #tpu.memory_space<vmem>>, vector<2x128xf32>,
    return
  }
  func.func @transform_0(%arg0: i32, %arg1: i32) -> (i32, i32) {
    %c0_i32 = arith.constant 0 : i32
    %c0_i32_0 = arith.constant 0 : i32
    return %arg0, %c0_i32 : i32, i32
  }
  func.func @transform_1(%arg0: i32, %arg1: i32) -> (i32, i32, i32) {
    %c0_i32 = arith.constant 0 : i32
    %c0_i32_0 = arith.constant 0 : i32
    return %arg1, %arg0, %c0_i32 : i32, i32, i32
  }
  func.func @transform_2(%arg0: i32, %arg1: i32) -> (i32, i32) {
    %c0_i32 = arith.constant 0 : i32
    %c0_i32_0 = arith.constant 0 : i32
    %c0_i32_1 = arith.constant 0 : i32
    return %c0_i32, %c0_i32_0 : i32, i32
  }
  func.func @transform_3(%arg0: i32, %arg1: i32) -> (i32, i32, i32) {
    %c0_i32 = arith.constant 0 : i32
    %c0_i32_0 = arith.constant 0 : i32
    return %arg1, %arg0, %c0_i32 : i32, i32, i32
  }
}

module attributes {stable_mosaic.version = 11 : i64} {
  func.func @_linear_kernel(%arg0: i32, %arg1: i32, %arg2: memref<16x128xf32, #tpu.memory_space<vmem>>, %arg3: memref<128x128xbf16, #tpu.memory_space<vmem>>, %arg4: memref<1x128xf32, #tpu.memory_space<vmem>>, %arg5: memref<16x128xf32, #tpu.memory_space<vmem>>) attributes {dimension_semantics = [#tpu.dimension_semantics<parallel>, #tpu.dimension_semantics<parallel>], iteration_bounds = array<i64: 1, 1>, scalar_prefetch = 0 : i64, scratch_operands = 0 : i64, tpu.core_type = #tpu.core_type<tc>, window_params = [{transform_indices = @transform_0, window_bounds = array<i64: 16, 128>}, {transform_indices = @transform_1, window_bounds = array<i64: 128, 128>}, {transform_indices = @transform_2, window_bounds = array<i64: 1, 128>}, {transform_indices = @transform_3, window_bounds = array<i64: 16, 128>}]} {
    %c0 = arith.constant 0 : index
    %c0_0 = arith.constant 0 : index
    %0 = vector.load %arg2[%c0, %c0_0] : memref<16x128xf32, #tpu.memory_space<vmem>>, vector<16x128xf32>
    %1 = arith.truncf %0 : vector<16x128xf32> to vector<16x128xbf16>
    %c0_1 = arith.constant 0 : index
    %c0_2 = arith.constant 0 : index
    %2 = vector.load %arg3[%c0_1, %c0_2] : memref<128x128xbf16, #tpu.memory_space<vmem>>, vector<128x128xbf16>
    %cst = arith.constant dense<0.000000e+00> : vector<16x128xf32>
    %3 = tpu.matmul %1, %2, %cst {dimension_numbers = #tpu.dot_dimension_numbers<[1], [0], [0], [1], [0, 0, 1, 1], [], []>} : vector<16x128xbf16>, vector<128x128xbf16>, vector<16x128xf32> -> vector<16x128xf32>
    %c0_3 = arith.constant 0 : index
    %c0_4 = arith.constant 0 : index
    %4 = vector.load %arg4[%c0_3, %c0_4] : memref<1x128xf32, #tpu.memory_space<vmem>>, vector<1x128xf32>
    %5 = vector.broadcast %4 : vector<1x128xf32> to vector<16x128xf32>
    %6 = arith.addf %3, %5 : vector<16x128xf32>
    %c0_5 = arith.constant 0 : index
    %c0_6 = arith.constant 0 : index
    %7 = vector.load %arg5[%c0_5, %c0_6] : memref<16x128xf32, #tpu.memory_space<vmem>>, vector<16x128xf32>
    tpu.vector_store %arg5[%c0_5, %c0_6], %6 {strides = array<i32>} : memref<16x128xf32, #tpu.memory_space<vmem>>, vector<16x128xf32>,
    return
  }
  func.func @transform_0(%arg0: i32, %arg1: i32) -> (i32, i32) {
    %c0_i32 = arith.constant 0 : i32
    %c0_i32_0 = arith.constant 0 : i32
    return %arg1, %c0_i32 : i32, i32
  }
  func.func @transform_1(%arg0: i32, %arg1: i32) -> (i32, i32) {
    %c0_i32 = arith.constant 0 : i32
    %c0_i32_0 = arith.constant 0 : i32
    return %c0_i32, %arg0 : i32, i32
  }
  func.func @transform_2(%arg0: i32, %arg1: i32) -> (i32, i32) {
    %c0_i32 = arith.constant 0 : i32
    %c0_i32_0 = arith.constant 0 : i32
    return %c0_i32, %arg0 : i32, i32
  }
  func.func @transform_3(%arg0: i32, %arg1: i32) -> (i32, i32) {
    %c0_i32 = arith.constant 0 : i32
    return %arg1, %arg0 : i32, i32
  }
}

</mosaic_0001>

<bundles_post_ra>
// kernel: _lambda_.6
= control target key start
LH: loop header
LB: loop body
LE: loop exit
PB: predicated region body
PF: predicated region fallthrough
CT: control target
= control target key end

     0   :  { %v238_v1 = vmov 0   ;;  %vm87_vm0 = vcmask 261120   ;;  %v27_v11 = vlaneseq  ;;  %v239_v17 = vmov 1966171168   ;;  %s293_s1 = inlined_call_operand.vmem [shape: bf16[32,512], index: 1, kind: input, shape index: {}]   ;;  %s294_s0 = inlined_call_operand.vmem [shape: f32[2,32], index: 0, kind: input, shape index: {}]   ;;  %s295_s2 = inlined_call_operand.vmem [shape: f32[1,512], index: 2, kind: input, shape index: {}]   ;;  %s296_s3 = inlined_call_operand.vmem [shape: bf16[2,512], index: 3, kind: output, shape index: {}]  }
   0x1   :  { %v226_v0 = vld [vmem:[%s293_s1 + $0x4] ss:$16 sps:$4 sm:$0xff]   ;;  %123 = vmatprep.mubr.bf16.mxu0 %v238_v1  ;;  %164 = vmatprep.mubr.bf16.mxu1 %v238_v1  ;;  %v228_v2 = vld [vmem:[%s293_s1 + $0xc] ss:$16 sps:$4 sm:$0xff]   ;;  %v230_v3 = vld [vmem:[%s293_s1] ss:$16 sps:$4 sm:$0xff]   ;;  %v184_v18 = vunpack.c.l.s4 %v239_v17 }
   0x2   :  { %91 = vmatprep.subr.bf16.mxu0 %v226_v0  ;;  %v231_v4 = vld [vmem:[%s293_s1 + $0x8] ss:$16 sps:$4 sm:$0xff]   ;;  %132 = vmatprep.subr.bf16.mxu1 %v228_v2  ;;  %v232_v5 = vld [vmem:[%s293_s1 + $0x24] ss:$16 sps:$4 sm:$0xff]   ;;  %v234_v6 = vld [vmem:[%s293_s1 + $0x2c] ss:$16 sps:$4 sm:$0xff]  }
   0x3   :  { %92 = vmatpush1.bf16.msra.mxu0 %v230_v3  ;;  %133 = vmatpush1.bf16.msra.mxu1 %v231_v4  ;;  %v236_v7 = vld [vmem:[%s293_s1 + $0x20] ss:$16 sps:$4 sm:$0xff]   ;;  %v237_v8 = vld [vmem:[%s293_s1 + $0x28] ss:$16 sps:$4 sm:$0xff]   ;;  %v28_v12 = vshrl.u32 %v27_v11, 7  ;;  %v185_v23 = vunpack.c.0.s8 %v184_v18 }
   0x4   :  { %93 = vmatprep.subr.bf16.mxu0 %v232_v5  ;;  %v15_v9 = vld [vmem:[%s294_s0] sm:$0x3]  ;;  %134 = vmatprep.subr.bf16.mxu1 %v234_v6 }
   0x5   :  { %v16_v10 = vpack.c.bf16 %v15_v9, %v15_v9  ;;  %v29_v13 = vsub.s32 0, %v28_v12  ;;  %v37_v14 = vsub.s32 2, %v28_v12  ;;  %v25_v15 = vld [vmem:[%s295_s2] sm:$0xf]  ;;  %v33_v16 = vsub.s32 1, %v28_v12 }
   0x6   :  { %v41_v19 = vsub.s32 3, %v28_v12  ;;  %v188_v32 = vsub.s32 %v185_v23, %v28_v12 }
   0x7   :  { %94 = vmatpush1.bf16.msra.mxu0 %v236_v7  ;;  %135 = vmatpush1.bf16.msra.mxu1 %v237_v8  ;;  %v30_v20 = vrot.slane %v25_v15, %v29_v13  ;;  %v38_v21 = vrot.slane %v25_v15, %v37_v14  ;;  %v34_v22 = vrot.slane %v25_v15, %v33_v16 }
   0x8   :  { %v42_v24 = vrot.slane %v25_v15, %v41_v19 }
   0xa   :  { %219 = vmatmul.mubr.msk.bf16.vlgmr.msra.gmra.mrb[0].mxu0 %vm87_vm0, %v16_v10  ;;  %220 = vmatmul.mubr.msk.bf16.vlgmr.msra.gmra.mrb[0].mxu1 %vm87_vm0, %v16_v10 }
  0xdd   :  { %v125_v25 = vpop.f32.mrb[0].mxu0  ;;  %v166_v26 = vpop.f32.mrb[0].mxu1 }
  0xde   :  { %v126_v27 = vadd.f32 %v125_v25, %v30_v20  ;;  %v167_v28 = vadd.f32 %v166_v26, %v38_v21  ;;  %v127_v29 = vpop.f32.mrb[1].mxu0  ;;  %v168_v30 = vpop.f32.mrb[1].mxu1 }
  0xdf   :  { %v128_v31 = vadd.f32 %v127_v29, %v34_v22  ;;  %v169_v33 = vadd.f32 %v168_v30, %v42_v24  ;;  %v129_v34 = vpop.f32.mrb[2].mxu0  ;;  %v170_v35 = vpop.f32.mrb[2].mxu1 }
  0xe0   :  { %v130_v36 = vpop.f32.mrb[3].mxu0  ;;  %v171_v37 = vpop.f32.mrb[3].mxu1 }
  0xe1   :  { %v221_v38 = vpack.c.bf16 %v128_v31, %v126_v27  ;;  %v222_v39 = vpack.c.bf16 %v169_v33, %v167_v28 }
  0xe3   :  { %v189_v40 = vrot.slane %v221_v38, %v188_v32  ;;  %v196_v41 = vrot.slane %v222_v39, %v188_v32 }
  0xe5   :  { %v197_v42 = vcombine.low %v189_v40, %v196_v41 }
  0xe7   :  { %223 = vst.sshfl [vmem:[%s296_s3] sm:$0x55 pattern:$0x73625140] %v197_v42 }

// kernel: _lambda_.7
= control target key start
LH: loop header
LB: loop body
LE: loop exit
PB: predicated region body
PF: predicated region fallthrough
CT: control target
= control target key end

     0   :  { %v241_v1 = vmov 0   ;;  %vm88_vm0 = vcmask 261120   ;;  %v28_v12 = vlaneseq  ;;  %s307_s1 = inlined_call_operand.vmem [shape: bf16[32,512], index: 1, kind: input, shape index: {}]   ;;  %s308_s0 = inlined_call_operand.vmem [shape: f32[14,32], index: 0, kind: input, shape index: {}]   ;;  %s309_s2 = inlined_call_operand.vmem [shape: f32[1,512], index: 2, kind: input, shape index: {}]   ;;  %s310_s3 = inlined_call_operand.vmem [shape: bf16[14,512], index: 3, kind: output, shape index: {}]  }
   0x1   :  { %v229_v0 = vld [vmem:[%s307_s1 + $0x4] ss:$16 sps:$4 sm:$0xff]   ;;  %124 = vmatprep.mubr.bf16.mxu0 %v241_v1  ;;  %167 = vmatprep.mubr.bf16.mxu1 %v241_v1  ;;  %v231_v2 = vld [vmem:[%s307_s1 + $0xc] ss:$16 sps:$4 sm:$0xff]   ;;  %v233_v3 = vld [vmem:[%s307_s1] ss:$16 sps:$4 sm:$0xff]  }
   0x2   :  { %92 = vmatprep.subr.bf16.mxu0 %v229_v0  ;;  %v234_v4 = vld [vmem:[%s307_s1 + $0x8] ss:$16 sps:$4 sm:$0xff]   ;;  %135 = vmatprep.subr.bf16.mxu1 %v231_v2  ;;  %v235_v5 = vld [vmem:[%s307_s1 + $0x24] ss:$16 sps:$4 sm:$0xff]   ;;  %v237_v6 = vld [vmem:[%s307_s1 + $0x2c] ss:$16 sps:$4 sm:$0xff]  }
   0x3   :  { %93 = vmatpush1.bf16.msra.mxu0 %v233_v3  ;;  %136 = vmatpush1.bf16.msra.mxu1 %v234_v4  ;;  %v239_v7 = vld [vmem:[%s307_s1 + $0x20] ss:$16 sps:$4 sm:$0xff]   ;;  %v240_v8 = vld [vmem:[%s307_s1 + $0x28] ss:$16 sps:$4 sm:$0xff]   ;;  %v29_v13 = vshrl.u32 %v28_v12, 7 }
   0x4   :  { %94 = vmatprep.subr.bf16.mxu0 %v235_v5  ;;  %v15_v9 = vld [vmem:[%s308_s0] sm:$0xff]  ;;  %v16_v10 = vld [vmem:[%s308_s0 + $0x8] sm:$0x3f]  ;;  %137 = vmatprep.subr.bf16.mxu1 %v237_v6 }
   0x5   :  { %v17_v11 = vpack.c.bf16 %v16_v10, %v15_v9  ;;  %v30_v14 = vsub.s32 0, %v29_v13  ;;  %v38_v15 = vsub.s32 2, %v29_v13  ;;  %v26_v16 = vld [vmem:[%s309_s2] sm:$0xf]  ;;  %v34_v17 = vsub.s32 1, %v29_v13 }
   0x6   :  { %v42_v18 = vsub.s32 3, %v29_v13 }
   0x7   :  { %95 = vmatpush1.bf16.msra.mxu0 %v239_v7  ;;  %138 = vmatpush1.bf16.msra.mxu1 %v240_v8  ;;  %v31_v19 = vrot.slane %v26_v16, %v30_v14  ;;  %v39_v20 = vrot.slane %v26_v16, %v38_v15  ;;  %v35_v21 = vrot.slane %v26_v16, %v34_v17 }
   0x8   :  { %v43_v22 = vrot.slane %v26_v16, %v42_v18 }
   0xa   :  { %218 = vmatmul.mubr.msk.bf16.vlgmr.msra.gmra.mrb[0].mxu0 %vm88_vm0, %v17_v11  ;;  %219 = vmatmul.mubr.msk.bf16.vlgmr.msra.gmra.mrb[0].mxu1 %vm88_vm0, %v17_v11 }
  0xdd   :  { %v126_v23 = vpop.f32.mrb[0].mxu0  ;;  %v169_v24 = vpop.f32.mrb[0].mxu1 }
  0xde   :  { %v127_v25 = vadd.f32 %v126_v23, %v31_v19  ;;  %v170_v26 = vadd.f32 %v169_v24, %v39_v20  ;;  %v128_v27 = vpop.f32.mrb[1].mxu0  ;;  %v171_v28 = vpop.f32.mrb[1].mxu1 }
  0xdf   :  { %v129_v29 = vadd.f32 %v128_v27, %v35_v21  ;;  %v172_v30 = vadd.f32 %v171_v28, %v43_v22  ;;  %v130_v31 = vpop.f32.mrb[2].mxu0  ;;  %v173_v32 = vpop.f32.mrb[2].mxu1 }
  0xe0   :  { %v131_v33 = vadd.f32 %v130_v31, %v31_v19  ;;  %v174_v34 = vadd.f32 %v173_v32, %v39_v20  ;;  %v132_v35 = vpop.f32.mrb[3].mxu0  ;;  %v175_v36 = vpop.f32.mrb[3].mxu1 }
  0xe1   :  { %v224_v37 = vpack.c.bf16 %v129_v29, %v127_v25  ;;  %v225_v38 = vpack.c.bf16 %v172_v30, %v170_v26  ;;  %v133_v39 = vadd.f32 %v132_v35, %v35_v21  ;;  %v176_v40 = vadd.f32 %v175_v36, %v43_v22 }
  0xe3   :  { %202 = vst [vmem:[%s310_s3] sm:$0xff] %v224_v37  ;;  %203 = vst [vmem:[%s310_s3 + $0x8] sm:$0xff] %v225_v38  ;;  %v226_v41 = vpack.c.bf16 %v133_v39, %v131_v33  ;;  %v227_v42 = vpack.c.bf16 %v176_v40, %v174_v34 }
  0xe5   :  { %204 = vst [vmem:[%s310_s3 + $0x10] sm:$0x77] %v226_v41  ;;  %205 = vst [vmem:[%s310_s3 + $0x18] sm:$0x77] %v227_v42 }

// kernel: _lambda_.5
= control target key start
LH: loop header
LB: loop body
LE: loop exit
PB: predicated region body
PF: predicated region fallthrough
CT: control target
= control target key end

     0   :  { %v873_v0 = vmov 0.0   ;;  %vm874_vm0 = vmmov 0   ;;  %vm79_vm1 = vcmask 130048   ;;  %v875_v7 = vmov 1966171168   ;;  %s878_s21 = smov 8   ;;  %s1107_s4 = inlined_call_operand.vmem [shape: bf16[16,16], index: 4, kind: input, shape index: {}]   ;;  %s1108_s0 = inlined_call_operand.vmem [shape: f32[2,16], index: 0, kind: input, shape index: {}]   ;;  %s1109_s6 = inlined_call_operand.vmem [shape: bf16[16,16], index: 6, kind: input, shape index: {}]   ;;  %s1110_s1 = inlined_call_operand.vmem [shape: f32[2,4,16], index: 1, kind: input, shape index: {}]   ;;  %s1111_s5 = inlined_call_operand.vmem [shape: f32[1,16], index: 5, kind: input, shape index: {}]   ;;  %s1112_s7 = inlined_call_operand.vmem [shape: f32[1,16], index: 7, kind: input, shape index: {}]   ;;  %s1113_s2 = inlined_call_operand.vmem [shape: f32[2,4], index: 2, kind: input, shape index: {}]   ;;  %s1114_s8 = inlined_call_operand.vmem [shape: bf16[16,16], index: 8, kind: input, shape index: {}]   ;;  %s1115_s9 = inlined_call_operand.vmem [shape: f32[1,16], index: 9, kind: input, shape index: {}]   ;;  %s1116_s10 = inlined_call_operand.vmem [shape: bf16[16,16], index: 10, kind: input, shape index: {}]   ;;  %s1117_s13 = inlined_call_operand.vmem [shape: bf16[16,32], index: 13, kind: input, shape index: {}]   ;;  %s1118_s12 = inlined_call_operand.vmem [shape: bf16[16,32], index: 12, kind: input, shape index: {}]   ;;  %s1119_s14 = inlined_call_operand.vmem [shape: bf16[16,32], index: 14, kind: input, shape index: {}]   ;;  %s1120_s11 = inlined_call_operand.vmem [shape: f32[1,16], index: 11, kind: input, shape index: {}]   ;;  %s1121_s3 = inlined_call_operand.vmem [shape: f32[2,16], index: 3, kind: input, shape index: {}]   ;;  %s1122_s15 = inlined_call_operand.vmem [shape: f32[1,32], index: 15, kind: input, shape index: {}]   ;;  %s1123_s16 = inlined_call_operand.vmem [shape: f32[2,32], index: 16, kind: output, shape index: {}]  }
   0x1   :  { %1124 = sst [smem:[#allocation2_spill]] %s1107_s4  ;;  %801 = vmatprep.subr.bf16.mxu0 %v873_v0  ;;  %803 = vmatprep.mubr.msk.bf16.mxu0 %vm874_vm0, %v873_v0  ;;  %v54_v2 = vld [vmem:[%s1108_s0] sm:$0x3]  ;;  %v245_v8 = vunpack.c.l.s4 %v875_v7  ;;  %v247_v9 = vlaneseq  ;;  %vm278_vm2 = vcmask 60416   ;;  %v877_v44 = vmov 0  }
   0x2   :  { %s1125_s23 = sld [smem:[#allocation2_spill]]  ;;  %807 = vmatprep.subr.bf16.mxu1 %v873_v0  ;;  %809 = vmatprep.mubr.msk.bf16.mxu1 %vm874_vm0, %v873_v0  ;;  %v976_v3 = vpack.c.bf16 %v54_v2, %v54_v2  ;;  %v852_v4 = vld [vmem:[%s1109_s6] sm:$0xff]   ;;  %vm322_vm3 = vcmask 1041409   ;;  %vm325_vm4 = vcmask 25600   ;;  %vm538_vm5 = vcmask 64512  }
   0x3   :  { %v853_v5 = vld [vmem:[%s1110_s1] sm:$0xff]   ;;  %808 = vmatpush3.bf16.msra.mxu1 %v852_v4  ;;  %v246_v10 = vunpack.c.0.s8 %v245_v8  ;;  %v997_v11 = vshrl.u32 %v247_v9, 7  ;;  %849 = vset.pattern.permute.xlu0 %v877_v44  ;;  %v313_v57 = vand.u32 127, %v247_v9  ;;  %vm762_vm6 = vcmask 254976  }
   0x4   :  { %v987_v6 = vpack.c.bf16 %v853_v5, %v853_v5  ;;  %819 = vmatprep.subr.bf16.mxu1 %v873_v0  ;;  %v768_v12 = vld [vmem:[%s1111_s5] ss:$0 sm:$0xff]  ;;  %s876_s5 = smov 120   ;;  %850 = vset.pattern.permute.xlu1 %v877_v44 }
   0x5   :  { %v249_v15 = vsub.s32 %v246_v10, %v997_v11  ;;  %v771_v18 = vld [vmem:[%s1112_s7] ss:$0 sm:$0xff]  ;;  %v1007_v25 = vsub.s32 0, %v997_v11  ;;  %v1021_v43 = vsub.s32 1, %v997_v11  ;;  %v1027_v58 = vsub.s32 %v313_v57, %v997_v11 }
   0x6   :  { %810 = vmatmul.mubr.msk.bf16.vlgmr.msra.gmra.mrb[0].mxu1 %vm79_vm1, %v987_v6  ;;  %v57_v36 = vld [vmem:[%s1113_s2] sm:$0x3] }
   0x7   :  { %821 = vmatprep.mubr.msk.bf16.mxu1 %vm874_vm0, %v873_v0  ;;  %v289_v37 = vrot.slane %v57_v36, %v1007_v25  ;;  %v296_v45 = vrot.slane %v57_v36, %v1021_v43  ;;  %v854_v10 = vld [vmem:[%s1114_s8] sm:$0xff]  }
   0x8   :  { %v851_v1 = vld [vmem:[%s1125_s23] sm:$0xff]  }
   0x9   :  { %802 = vmatpush3.bf16.msra.mxu0 %v851_v1 }
   0xa   :  { %813 = vmatprep.subr.bf16.mxu0 %v873_v0 }
   0xc   :  { %804 = vmatmul.mubr.msk.bf16.vlgmr.msra.gmra.mrb[0].mxu0 %vm79_vm1, %v976_v3 }
   0xd   :  { %815 = vmatprep.mubr.msk.bf16.mxu0 %vm874_vm0, %v873_v0  ;;  %814 = vmatpush3.bf16.msra.mxu0 %v854_v10 }
   0xe   :  { %825 = vmatprep.subr.bf16.mxu0 %v873_v0 }
  0x14   :  { %816 = vmatmul.mubr.msk.bf16.vlgmr.msra.gmra.mrb[4].mxu0 %vm79_vm1, %v987_v6 }
  0x15   :  { %827 = vmatprep.mubr.msk.bf16.mxu0 %vm874_vm0, %v873_v0 }
  0xd9   :  { %v176_v19 = vpop.f32.mrb[0].mxu1 }
  0xda   :  { %v811_v22 = vpop.f32.mrb[1].mxu1  ;;  %v177_v26 = vadd.f32 %v771_v18, %v176_v19 }
  0xdb   :  { %v179_v23 = vpop.f32.mrb[2].mxu1 }
  0xdc   :  { %v812_v27 = vpop.f32.mrb[3].mxu1  ;;  %v183_v31 = vcombine.high %v177_v26, %v177_v26 }
  0xdf   :  { %v117_v13 = vpop.f32.mrb[0].mxu0 }
  0xe0   :  { %v118_v14 = vadd.f32 %v768_v12, %v117_v13  ;;  %v805_v16 = vpop.f32.mrb[1].mxu0 }
  0xe1   :  { %v120_v17 = vpop.f32.mrb[2].mxu0 }
  0xe2   :  { %v123_v20 = vmul.f32 0.35355338, %v118_v14  ;;  %v806_v21 = vpop.f32.mrb[3].mxu0 }
  0xe4   :  { %v250_v24 = vrot.slane %v123_v20, %v249_v15 }
  0xe6   :  { %v251_v28 = vcombine.high %v250_v24, %v250_v24  ;;  %v258_v29 = vrot.slane %v250_v24, %v249_v15 }
  0xe8   :  { %v265_v30 = vrot.slane %v251_v28, %v249_v15  ;;  %v269_v32 = vrot.slane %v258_v29, %v1007_v25 }
  0xea   :  { %v276_v33 = vmul.f32 %v269_v32, %v177_v26  ;;  %v273_v34 = vrot.slane %v265_v30, %v1007_v25 }
  0xec   :  { %409 = vrot.lane.b32.xlu0 %v276_v33, %s876_s5  ;;  %v277_v35 = vmul.f32 %v273_v34, %v183_v31  ;;  %v279_v38 = vsel %vm278_vm2, %v276_v33, 0.0 }
  0xee   :  { %v282_v46 = vsel %vm278_vm2, %v277_v35, 0.0 }
  0xf0   :  { %411 = vrot.lane.b32.xlu0 %v277_v35, %s876_s5  ;;  %v234_v35 = vpop.f32.mrb[4].mxu0 }
  0xf1   :  { %v817_v36 = vpop.f32.mrb[5].mxu0 }
  0xf4   :  { %291 = vbcast.lane.b32.xlu0 %v289_v37, 256  ;;  %v237_v37 = vpop.f32.mrb[6].mxu0 }
 0x113   :  { %280 = vadd.xlane.f32.xlu0 %v279_v38  ;;  %v818_v38 = vpop.f32.mrb[7].mxu0 }
 0x15e   :  { %v410_v39 = vpop.permute.xlu0 %409 }
 0x15f   :  { %v415_v40 = vsel %vm278_vm2, %v410_v39, 0.0 }
 0x160   :  { %416 = vadd.xlane.f32.xlu1 %v415_v40 }
 0x162   :  { %v412_v41 = vpop.permute.xlu0 %411 }
 0x163   :  { %v418_v42 = vsel %vm278_vm2, %v412_v41, 0.0 }
 0x164   :  { %419 = vadd.xlane.f32.xlu1 %v418_v42 }
 0x166   :  { %v292_v47 = vpop.permute.xlu0 %291 }
 0x175   :  { %298 = vbcast.lane.b32.xlu1 %v296_v45, 256 }
 0x199   :  { %283 = vadd.xlane.f32.xlu1 %v282_v46 }
 0x1a0   :  { %v281_v53 = vpop.xlane.xlu0 %280 }
 0x1a1   :  { %v302_v54 = vadd.f32 %v292_v47, %v281_v53 }
 0x1ed   :  { %v417_v48 = vpop.xlane.xlu1 %416 }
 0x1ee   :  { %v421_v49 = vadd.f32 %v417_v48, %v292_v47  ;;  %v774_v47 = vld [vmem:[%s1115_s9] ss:$0 sm:$0xff] }
 0x1f0   :  { %426 = vperm.xlu0 %849, %v421_v49  }
 0x1f1   :  { %v420_v50 = vpop.xlane.xlu1 %419 }
 0x1f5   :  { %v299_v51 = vpop.permute.xlu1 %298 }
 0x1f6   :  { %v422_v52 = vadd.f32 %v420_v50, %v299_v51 }
 0x1f8   :  { %429 = vperm.xlu1 %850, %v422_v52  }
 0x1fc   :  { %307 = vperm.xlu1 %850, %v302_v54  }
 0x226   :  { %v284_v55 = vpop.xlane.xlu1 %283 }
 0x227   :  { %v303_v56 = vadd.f32 %v299_v51, %v284_v55  ;;  %v235_v51 = vadd.f32 %v774_v47, %v234_v35 }
 0x229   :  { %310 = vperm.xlu1 %850, %v303_v56  }
 0x26f   :  { %v427_v59 = vpop.permute.xlu0 %426 }
 0x270   :  { %v434_v61 = vrot.slane %v427_v59, %v1027_v58 }
 0x277   :  { %v430_v60 = vpop.permute.xlu1 %429 }
 0x278   :  { %v438_v62 = vrot.slane %v430_v60, %v1027_v58 }
 0x27a   :  { %v439_v63 = vsel %vm322_vm3, %v438_v62, %v434_v61  ;;  %v855_v61 = vld [vmem:[%s1116_s10] sm:$0xff]  }
 0x27b   :  { %v441_v1 = vsel %vm325_vm4, %v439_v63, -inf  ;;  %v308_v2 = vpop.permute.xlu1 %307  ;;  %820 = vmatpush3.bf16.msra.mxu1 %v855_v61 }
 0x27c   :  { %442 = vmax.xlane.f32.xlu1 %v441_v1  ;;  %v317_v5 = vrot.slane %v308_v2, %v1027_v58  ;;  %831 = vmatprep.subr.bf16.mxu1 %v873_v0 }
 0x2a8   :  { %v311_v4 = vpop.permute.xlu1 %310 }
 0x2a9   :  { %v321_v7 = vrot.slane %v311_v4, %v1027_v58 }
 0x2ab   :  { %v323_v8 = vsel %vm322_vm3, %v321_v7, %v317_v5 }
 0x2ac   :  { %v326_v9 = vsel %vm325_vm4, %v323_v8, -inf }
 0x2ad   :  { %327 = vmax.xlane.f32.xlu0 %v326_v9 }
 0x309   :  { %v443_v11 = vpop.xlane.xlu1 %442 }
 0x30a   :  { %v448_v12 = vrot.slane %v443_v11, %v1007_v25  ;;  %v452_v13 = vrot.slane %v443_v11, %v1021_v43 }
 0x30c   :  { %v455_v14 = vsub.f32 %v421_v49, %v448_v12  ;;  %v456_v15 = vsub.f32 %v422_v52, %v452_v13  ;;  %v856_v13 = vld [vmem:[%s1117_s13] sm:$0xff]  }
 0x30d   :  { %826 = vmatpush3.bf16.msra.mxu0 %v856_v13 }
 0x30e   :  { %v457_v16 = vmul.f32 1.442695, %v455_v14  ;;  %v459_v17 = vmul.f32 1.442695, %v456_v15  ;;  %837 = vmatprep.subr.bf16.mxu0 %v873_v0 }
 0x310   :  { %859 = vpow2.f32 %v457_v16 }
 0x311   :  { %861 = vpow2.f32 %v459_v17 }
 0x31a   :  { %v860_v18 = vpop.eup %859 }
 0x31b   :  { %v862_v19 = vpop.eup %861  ;;  %464 = vperm.xlu0 %849, %v860_v18  }
 0x31c   :  { %467 = vperm.xlu1 %850, %v862_v19  }
 0x33a   :  { %v328_v20 = vpop.xlane.xlu0 %327 }
 0x33b   :  { %v333_v6 = vrot.slane %v328_v20, %v1007_v25  ;;  %v337_v21 = vrot.slane %v328_v20, %v1021_v43 }
 0x33d   :  { %v340_v22 = vsub.f32 %v302_v54, %v333_v6  ;;  %v341_v23 = vsub.f32 %v303_v56, %v337_v21  ;;  %v241_v54 = vcombine.high %v235_v51, %v235_v51 }
 0x33f   :  { %v342_v24 = vmul.f32 1.442695, %v340_v22  ;;  %v344_v26 = vmul.f32 1.442695, %v341_v23 }
 0x341   :  { %863 = vpow2.f32 %v342_v24 }
 0x342   :  { %865 = vpow2.f32 %v344_v26 }
 0x34b   :  { %v864_v27 = vpop.eup %863 }
 0x34c   :  { %v866_v28 = vpop.eup %865  ;;  %349 = vperm.xlu1 %850, %v864_v27  }
 0x34d   :  { %352 = vperm.xlu0 %849, %v866_v28  }
 0x39a   :  { %v465_v29 = vpop.permute.xlu0 %464 }
 0x39b   :  { %v468_v30 = vpop.permute.xlu1 %467  ;;  %v472_v31 = vrot.slane %v465_v29, %v1027_v58 }
 0x39c   :  { %v476_v32 = vrot.slane %v468_v30, %v1027_v58 }
 0x39e   :  { %v477_v33 = vsel %vm322_vm3, %v476_v32, %v472_v31 }
 0x39f   :  { %v479_v34 = vsel %vm325_vm4, %v477_v33, 0.0 }
 0x3a0   :  { %480 = vadd.xlane.f32.xlu1 %v479_v34 }
 0x3cb   :  { %v350_v39 = vpop.permute.xlu1 %349 }
 0x3cc   :  { %v357_v40 = vrot.slane %v350_v39, %v1027_v58  ;;  %v353_v41 = vpop.permute.xlu0 %352 }
 0x3cd   :  { %v361_v42 = vrot.slane %v353_v41, %v1027_v58 }
 0x3cf   :  { %v362_v44 = vsel %vm322_vm3, %v361_v42, %v357_v40 }
 0x3d0   :  { %v364_v45 = vsel %vm325_vm4, %v362_v44, 0.0  ;;  %v857_v44 = vld [vmem:[%s1118_s12] sm:$0xff]  }
 0x3d1   :  { %365 = vadd.xlane.f32.xlu0 %v364_v45  ;;  %v777_v45 = vld [vmem:[%s1120_s11] ss:$0 sm:$0xff] }
 0x42d   :  { %v481_v46 = vpop.xlane.xlu1 %480 }
 0x42e   :  { %867 = vrcp.f32 %v481_v46 }
 0x438   :  { %v868_v48 = vpop.eup %867 }
 0x439   :  { %v491_v49 = vrot.slane %v868_v48, %v1021_v43  ;;  %v487_v50 = vrot.slane %v868_v48, %v1007_v25 }
 0x43b   :  { %v495_v52 = vmul.f32 %v862_v19, %v491_v49  ;;  %v494_v53 = vmul.f32 %v860_v18, %v487_v50  ;;  %v858_v50 = vld [vmem:[%s1119_s14] sm:$0xff]  }
 0x43d   :  { %503 = vperm.xlu1 %850, %v495_v52   ;;  %498 = vperm.xlu0 %849, %v494_v53  }
 0x441   :  { %506 = vrot.lane.b32.xlu1 %v235_v51, %s876_s5  ;;  %508 = vrot.lane.b32.xlu0 %v241_v54, %s876_s5 }
 0x45e   :  { %v366_v55 = vpop.xlane.xlu0 %365 }
 0x45f   :  { %869 = vrcp.f32 %v366_v55 }
 0x469   :  { %v870_v56 = vpop.eup %869 }
 0x46a   :  { %v372_v57 = vrot.slane %v870_v56, %v1007_v25  ;;  %v376_v58 = vrot.slane %v870_v56, %v1021_v43 }
 0x46c   :  { %v379_v59 = vmul.f32 %v864_v27, %v372_v57  ;;  %v380_v60 = vmul.f32 %v866_v28, %v376_v58 }
 0x46e   :  { %383 = vperm.xlu1 %850, %v379_v59   ;;  %388 = vperm.xlu0 %849, %v380_v60  }
 0x4bc   :  { %v504_v62 = vpop.permute.xlu1 %503  ;;  %v499_v63 = vpop.permute.xlu0 %498 }
 0x4c0   :  { %v507_v1 = vpop.permute.xlu1 %506  ;;  %v509_v2 = vpop.permute.xlu0 %508 }
 0x4c1   :  { %v512_v4 = vmul.f32 %v507_v1, %v499_v63  ;;  %v513_v5 = vmul.f32 %v509_v2, %v504_v62 }
 0x4c3   :  { %v514_v25 = vsel %vm278_vm2, %v512_v4, 0.0  ;;  %v521_v43 = vsel %vm278_vm2, %v513_v5, 0.0 }
 0x4c4   :  { %v515_v7 = vrot.slane %v514_v25, 4  ;;  %v522_v8 = vrot.slane %v521_v43, 4 }
 0x4c6   :  { %v516_v9 = vadd.f32 %v515_v7, %v514_v25  ;;  %v523_v10 = vadd.f32 %v522_v8, %v521_v43 }
 0x4c8   :  { %v517_v11 = vrot.slane %v516_v9, 2  ;;  %v524_v12 = vrot.slane %v523_v10, 2 }
 0x4ca   :  { %v518_v14 = vadd.f32 %v517_v11, %v516_v9  ;;  %v525_v15 = vadd.f32 %v524_v12, %v523_v10 }
 0x4cc   :  { %v519_v16 = vrot.slane %v518_v14, 1  ;;  %v526_v17 = vrot.slane %v525_v15, 1 }
 0x4ce   :  { %v520_v18 = vadd.f32 %v519_v16, %v518_v14  ;;  %v527_v19 = vadd.f32 %v526_v17, %v525_v15 }
 0x4d0   :  { %v534_v20 = vsel %vm322_vm3, %v527_v19, %v520_v18 }
 0x4d1   :  { %535 = vrot.lane.b32.xlu1 %v534_v20, %s878_s21 }
 0x4ed   :  { %v384_v6 = vpop.permute.xlu1 %383  ;;  %v389_v21 = vpop.permute.xlu0 %388 }
 0x4ee   :  { %v391_v22 = vmul.f32 %v384_v6, %v235_v51  ;;  %v392_v23 = vmul.f32 %v389_v21, %v241_v54 }
 0x4f0   :  { %v393_v24 = vsel %vm278_vm2, %v391_v22, 0.0  ;;  %v400_v26 = vsel %vm278_vm2, %v392_v23, 0.0 }
 0x4f1   :  { %v394_v27 = vrot.slane %v393_v24, 4  ;;  %v401_v28 = vrot.slane %v400_v26, 4 }
 0x4f3   :  { %v395_v29 = vadd.f32 %v394_v27, %v393_v24  ;;  %v402_v30 = vadd.f32 %v401_v28, %v400_v26 }
 0x4f5   :  { %v396_v31 = vrot.slane %v395_v29, 2  ;;  %v403_v32 = vrot.slane %v402_v30, 2 }
 0x4f7   :  { %v397_v33 = vadd.f32 %v396_v31, %v395_v29  ;;  %v404_v34 = vadd.f32 %v403_v32, %v402_v30 }
 0x4f9   :  { %v398_v35 = vrot.slane %v397_v33, 1  ;;  %v405_v36 = vrot.slane %v404_v34, 1 }
 0x4fb   :  { %v399_v37 = vadd.f32 %v398_v35, %v397_v33  ;;  %v406_v38 = vadd.f32 %v405_v36, %v404_v34 }
 0x4fd   :  { %v530_v40 = vsel %vm322_vm3, %v406_v38, %v399_v37 }
 0x543   :  { %v536_v39 = vpop.permute.xlu1 %535 }
 0x544   :  { %v539_v41 = vsel %vm538_vm5, %v530_v40, %v536_v39 }
 0x545   :  { %v540_v42 = vpack.c.bf16 %v539_v41, %v539_v41 }
 0x547   :  { %822 = vmatmul.mubr.msk.bf16.vlgmr.msra.gmra.mrb[4].mxu1 %vm79_vm1, %v540_v42 }
 0x548   :  { %833 = vmatprep.mubr.msk.bf16.mxu1 %vm874_vm0, %v873_v0  ;;  %832 = vmatpush3.bf16.msra.mxu1 %v857_v44 }
 0x54f   :  { %834 = vmatmul.mubr.msk.bf16.vlgmr.msra.gmra.mrb[8].mxu1 %vm79_vm1, %v976_v3  ;;  %v699_v3 = vld [vmem:[%s1121_s3] sm:$0x3] }
 0x550   :  { %v700_v53 = vpack.c.bf16 %v699_v3, %v699_v3 }
 0x61a   :  { %v593_v46 = vpop.f32.mrb[4].mxu1 }
 0x61b   :  { %v594_v47 = vadd.f32 %v777_v45, %v593_v46  ;;  %v823_v48 = vpop.f32.mrb[5].mxu1 }
 0x61c   :  { %v596_v49 = vpop.f32.mrb[6].mxu1 }
 0x61d   :  { %v601_v51 = vpack.c.bf16 %v594_v47, %v594_v47  ;;  %v824_v52 = vpop.f32.mrb[7].mxu1 }
 0x61f   :  { %828 = vmatmul.mubr.msk.bf16.vlgmr.msra.gmra.mrb[8].mxu0 %vm79_vm1, %v601_v51 }
 0x620   :  { %838 = vmatpush3.bf16.msra.mxu0 %v858_v50  ;;  %839 = vmatprep.mubr.msk.bf16.mxu0 %vm874_vm0, %v873_v0  ;;  %v786_v0 = vld [vmem:[%s1122_s15] ss:$0 sm:$0xff] }
 0x622   :  { %v693_v54 = vpop.f32.mrb[8].mxu1 }
 0x623   :  { %v835_v55 = vpop.f32.mrb[9].mxu1 }
 0x624   :  { %v696_v56 = vpop.f32.mrb[10].mxu1 }
 0x625   :  { %v836_v57 = vpop.f32.mrb[11].mxu1 }
 0x627   :  { %840 = vmatmul.mubr.msk.bf16.vlgmr.msra.gmra.mrb[12].mxu0 %vm79_vm1, %v700_v53 }
 0x6f2   :  { %v647_v58 = vpop.f32.mrb[8].mxu0 }
 0x6f3   :  { %v694_v59 = vadd.f32 %v693_v54, %v647_v58  ;;  %v829_v60 = vpop.f32.mrb[9].mxu0 }
 0x6f4   :  { %v650_v61 = vpop.f32.mrb[10].mxu0 }
 0x6f5   :  { %v830_v62 = vpop.f32.mrb[11].mxu0 }
 0x6fa   :  { %v746_v63 = vpop.f32.mrb[12].mxu0 }
 0x6fb   :  { %v752_v1 = vadd.f32 %v746_v63, %v694_v59  ;;  %v841_v2 = vpop.f32.mrb[13].mxu0 }
 0x6fc   :  { %v749_v4 = vpop.f32.mrb[14].mxu0 }
 0x6fd   :  { %v760_v5 = vadd.f32 %v786_v0, %v752_v1  ;;  %v842_v25 = vpop.f32.mrb[15].mxu0 }
 0x6ff   :  { %871 = vtanh.f32 %v760_v5 }
 0x709   :  { %v872_v43 = vpop.eup %871 }
 0x70a   :  { %763 = vst.msk [vmem:[%s1123_s16] sm:$0x3] %vm762_vm6, %v872_v43 }

// kernel: _lambda_.9
= control target key start
LH: loop header
LB: loop body
LE: loop exit
PB: predicated region body
PF: predicated region fallthrough
CT: control target
= control target key end

     0   :  { %v184_v0 = vmov 0.0   ;;  %vm185_vm0 = vmmov 0   ;;  %s245_s1 = inlined_call_operand.vmem [shape: bf16[128,128], index: 1, kind: input, shape index: {}]   ;;  %s246_s0 = inlined_call_operand.vmem [shape: f32[16,128], index: 0, kind: input, shape index: {}]   ;;  %s247_s2 = inlined_call_operand.vmem [shape: f32[1,128], index: 2, kind: input, shape index: {}]   ;;  %s248_s3 = inlined_call_operand.vmem [shape: f32[16,128], index: 3, kind: output, shape index: {}]  }
   0x1   :  { %154 = vmatprep.subr.bf16.mxu0 %v184_v0  ;;  %v176_v1 = vld [vmem:[%s245_s1] sm:$0xff]   ;;  %170 = vmatprep.mubr.msk.bf16.mxu0 %vm185_vm0, %v184_v0  ;;  %v177_v2 = vld [vmem:[%s245_s1 + $0x8] sm:$0xff]   ;;  %v178_v3 = vld [vmem:[%s245_s1 + $0x10] sm:$0xff]  }
   0x2   :  { %155 = vmatpush3.bf16.msra.mxu0 %v176_v1  ;;  %v179_v4 = vld [vmem:[%s245_s1 + $0x18] sm:$0xff]   ;;  %v180_v5 = vld [vmem:[%s245_s1 + $0x20] sm:$0xff]   ;;  %v181_v6 = vld [vmem:[%s245_s1 + $0x28] sm:$0xff]  }
   0x3   :  { %156 = vmatprep.subr.bf16.mxu0 %v184_v0  ;;  %v182_v7 = vld [vmem:[%s245_s1 + $0x30] sm:$0xff]   ;;  %v183_v8 = vld [vmem:[%s245_s1 + $0x38] sm:$0xff]   ;;  %v15_v9 = vld [vmem:[%s246_s0] sm:$0xff] }
   0x4   :  { %v16_v10 = vld [vmem:[%s246_s0 + $0x8] sm:$0xff]  ;;  %v136_v12 = vld [vmem:[%s247_s2] ss:$0 sm:$0xff] }
   0x5   :  { %v17_v11 = vpack.c.bf16 %v16_v10, %v15_v9 }
   0x6   :  { %157 = vmatpush3.bf16.msra.mxu0 %v177_v2 }
   0x7   :  { %158 = vmatprep.subr.bf16.mxu0 %v184_v0 }
   0xa   :  { %159 = vmatpush3.bf16.msra.mxu0 %v178_v3 }
   0xb   :  { %160 = vmatprep.subr.bf16.mxu0 %v184_v0 }
   0xe   :  { %161 = vmatpush3.bf16.msra.mxu0 %v179_v4 }
   0xf   :  { %162 = vmatprep.subr.bf16.mxu0 %v184_v0 }
  0x12   :  { %163 = vmatpush3.bf16.msra.mxu0 %v180_v5 }
  0x13   :  { %164 = vmatprep.subr.bf16.mxu0 %v184_v0 }
  0x16   :  { %165 = vmatpush3.bf16.msra.mxu0 %v181_v6 }
  0x17   :  { %166 = vmatprep.subr.bf16.mxu0 %v184_v0 }
  0x1a   :  { %167 = vmatpush3.bf16.msra.mxu0 %v182_v7 }
  0x1b   :  { %168 = vmatprep.subr.bf16.mxu0 %v184_v0 }
  0x1e   :  { %169 = vmatpush3.bf16.msra.mxu0 %v183_v8 }
  0x21   :  { %171 = vmatmul.mubr.bf16.vlgmr.msra.gmra.mrb[0].mxu0 %v17_v11 }
  0xf4   :  { %v123_v13 = vpop.f32.mrb[0].mxu0 }
  0xf5   :  { %v124_v14 = vadd.f32 %v136_v12, %v123_v13  ;;  %v172_v15 = vpop.f32.mrb[1].mxu0 }
  0xf6   :  { %v126_v16 = vpop.f32.mrb[2].mxu0 }
  0xf7   :  { %130 = vst [vmem:[%s248_s3] sm:$0xff] %v124_v14  ;;  %v127_v17 = vadd.f32 %v136_v12, %v126_v16  ;;  %v173_v18 = vpop.f32.mrb[3].mxu0 }
  0xf9   :  { %131 = vst [vmem:[%s248_s3 + $0x8] sm:$0xff] %v127_v17 }

// kernel: _lambda_.8
= control target key start
LH: loop header
LB: loop body
LE: loop exit
PB: predicated region body
PF: predicated region fallthrough
CT: control target
= control target key end

     0   :  { %v1672_v1 = vmov 0   ;;  %v1673_v51 = vmov 1983009808   ;;  %v332_v53 = vlaneseq  ;;  %s2334_s2 = inlined_call_operand.vmem [shape: bf16[128,512], index: 2, kind: input, shape index: {}]   ;;  %s2335_s0 = inlined_call_operand.vmem [shape: bf16[2,512], index: 0, kind: input, shape index: {}]   ;;  %s2336_s1 = inlined_call_operand.vmem [shape: bf16[8,2,512], index: 1, kind: input, shape index: {}]   ;;  %s2337_s3 = inlined_call_operand.vmem [shape: f32[8,2,128], index: 3, kind: output, shape index: {}]  }
   0x1   :  { %v1697_v0 = vld [vmem:[%s2334_s2 + $0x4] ss:$16 sps:$4 sm:$0xff]   ;;  %273 = vmatprep.mubr.bf16.mxu0 %v1672_v1  ;;  %314 = vmatprep.mubr.bf16.mxu1 %v1672_v1  ;;  %v1704_v2 = vld [vmem:[%s2334_s2 + $0xc] ss:$16 sps:$4 sm:$0xff]   ;;  %v1710_v3 = vld [vmem:[%s2334_s2] ss:$16 sps:$4 sm:$0xff]   ;;  %v330_v52 = vunpack.c.l.s4 %v1673_v51 }
   0x2   :  { %241 = vmatprep.subr.bf16.mxu0 %v1697_v0  ;;  %v1715_v4 = vld [vmem:[%s2334_s2 + $0x8] ss:$16 sps:$4 sm:$0xff]   ;;  %282 = vmatprep.subr.bf16.mxu1 %v1704_v2  ;;  %v1721_v5 = vld [vmem:[%s2334_s2 + $0x24] ss:$16 sps:$4 sm:$0xff]   ;;  %v1728_v6 = vld [vmem:[%s2334_s2 + $0x2c] ss:$16 sps:$4 sm:$0xff]  }
   0x3   :  { %242 = vmatpush1.bf16.msra.mxu0 %v1710_v3  ;;  %283 = vmatpush1.bf16.msra.mxu1 %v1715_v4  ;;  %v1733_v7 = vld [vmem:[%s2334_s2 + $0x20] ss:$16 sps:$4 sm:$0xff]   ;;  %v1739_v8 = vld [vmem:[%s2334_s2 + $0x28] ss:$16 sps:$4 sm:$0xff]   ;;  %v1745_v9 = vld [vmem:[%s2334_s2 + $0x44] ss:$16 sps:$4 sm:$0xff]   ;;  %v331_v54 = vunpack.c.0.s8 %v330_v52 }
   0x4   :  { %243 = vmatprep.subr.bf16.mxu0 %v1721_v5  ;;  %284 = vmatprep.subr.bf16.mxu1 %v1728_v6  ;;  %v1750_v10 = vld [vmem:[%s2334_s2 + $0x4c] ss:$16 sps:$4 sm:$0xff]   ;;  %v1755_v11 = vld [vmem:[%s2334_s2 + $0x40] ss:$16 sps:$4 sm:$0xff]   ;;  %v1760_v12 = vld [vmem:[%s2334_s2 + $0x48] ss:$16 sps:$4 sm:$0xff]  }
   0x5   :  { %v1767_v13 = vld [vmem:[%s2334_s2 + $0x64] ss:$16 sps:$4 sm:$0xff]   ;;  %v1774_v14 = vld [vmem:[%s2334_s2 + $0x6c] ss:$16 sps:$4 sm:$0xff]   ;;  %v1779_v15 = vld [vmem:[%s2334_s2 + $0x60] ss:$16 sps:$4 sm:$0xff]  }
   0x6   :  { %v1786_v16 = vld [vmem:[%s2334_s2 + $0x68] ss:$16 sps:$4 sm:$0xff]   ;;  %v1791_v17 = vld [vmem:[%s2334_s2 + $0x84] ss:$16 sps:$4 sm:$0xff]   ;;  %v1798_v18 = vld [vmem:[%s2334_s2 + $0x8c] ss:$16 sps:$4 sm:$0xff]  }
   0x7   :  { %244 = vmatpush1.bf16.msra.mxu0 %v1733_v7  ;;  %285 = vmatpush1.bf16.msra.mxu1 %v1739_v8  ;;  %v1803_v19 = vld [vmem:[%s2334_s2 + $0x80] ss:$16 sps:$4 sm:$0xff]   ;;  %v1808_v20 = vld [vmem:[%s2334_s2 + $0x88] ss:$16 sps:$4 sm:$0xff]   ;;  %v1815_v21 = vld [vmem:[%s2334_s2 + $0xa4] ss:$16 sps:$4 sm:$0xff]  }
   0x8   :  { %245 = vmatprep.subr.bf16.mxu0 %v1745_v9  ;;  %286 = vmatprep.subr.bf16.mxu1 %v1750_v10  ;;  %v1822_v22 = vld [vmem:[%s2334_s2 + $0xac] ss:$16 sps:$4 sm:$0xff]   ;;  %v1829_v23 = vld [vmem:[%s2334_s2 + $0xa0] ss:$16 sps:$4 sm:$0xff]   ;;  %v1834_v24 = vld [vmem:[%s2334_s2 + $0xa8] ss:$16 sps:$4 sm:$0xff]  }
   0x9   :  { %v1841_v25 = vld [vmem:[%s2334_s2 + $0xc4] ss:$16 sps:$4 sm:$0xff]   ;;  %v1846_v26 = vld [vmem:[%s2334_s2 + $0xcc] ss:$16 sps:$4 sm:$0xff]   ;;  %v19_v27 = vld [vmem:[%s2335_s0] sm:$0xf] }
   0xa   :  { %v20_v28 = vunpack.c.l.bf16 %v19_v27  ;;  %v1856_v29 = vld [vmem:[%s2334_s2 + $0xc0] ss:$16 sps:$4 sm:$0xff]   ;;  %v1861_v30 = vld [vmem:[%s2334_s2 + $0xc8] ss:$16 sps:$4 sm:$0xff]   ;;  %v1868_v32 = vld [vmem:[%s2334_s2 + $0xe4] ss:$16 sps:$4 sm:$0xff]  }
   0xb   :  { %246 = vmatpush1.bf16.msra.mxu0 %v1755_v11  ;;  %287 = vmatpush1.bf16.msra.mxu1 %v1760_v12  ;;  %v1873_v33 = vld [vmem:[%s2334_s2 + $0xec] ss:$16 sps:$4 sm:$0xff]   ;;  %v1880_v35 = vld [vmem:[%s2334_s2 + $0xe0] ss:$16 sps:$4 sm:$0xff]   ;;  %v1885_v36 = vld [vmem:[%s2334_s2 + $0xe8] ss:$16 sps:$4 sm:$0xff]  }
   0xc   :  { %247 = vmatprep.subr.bf16.mxu0 %v1767_v13  ;;  %288 = vmatprep.subr.bf16.mxu1 %v1774_v14  ;;  %v1378_v31 = vmul.f32 -1.442695, %v20_v28  ;;  %v31_v34 = vrot.slane %v20_v28, 6  ;;  %v28_v38 = vrot.slane %v20_v28, 4  ;;  %v333_v55 = vshrl.u32 %v332_v53, 7 }
   0xd   :  { %v78_v60 = vld [vmem:[%s2336_s1] sm:$0xf] }
   0xe   :  { %1500 = vpow2.f32 %v1378_v31  ;;  %v1379_v37 = vmul.f32 -1.442695, %v31_v34  ;;  %v1927_v58 = vsub.s32 %v331_v54, %v333_v55 }
   0xf   :  { %248 = vmatpush1.bf16.msra.mxu0 %v1779_v15  ;;  %289 = vmatpush1.bf16.msra.mxu1 %v1786_v16 }
  0x10   :  { %249 = vmatprep.subr.bf16.mxu0 %v1791_v17  ;;  %290 = vmatprep.subr.bf16.mxu1 %v1798_v18  ;;  %1502 = vpow2.f32 %v1379_v37 }
  0x11   :  { %1504 = vtanh.f32 %v28_v38  ;;  %v79_v38 = vunpack.c.l.bf16 %v78_v60 }
  0x13   :  { %250 = vmatpush1.bf16.msra.mxu0 %v1803_v19  ;;  %291 = vmatpush1.bf16.msra.mxu1 %v1808_v20 }
  0x14   :  { %251 = vmatprep.subr.bf16.mxu0 %v1815_v21  ;;  %292 = vmatprep.subr.bf16.mxu1 %v1822_v22 }
  0x17   :  { %252 = vmatpush1.bf16.msra.mxu0 %v1829_v23  ;;  %293 = vmatpush1.bf16.msra.mxu1 %v1834_v24 }
  0x18   :  { %253 = vmatprep.subr.bf16.mxu0 %v1841_v25  ;;  %294 = vmatprep.subr.bf16.mxu1 %v1846_v26  ;;  %v1501_v39 = vpop.eup %1500 }
  0x19   :  { %v24_v40 = vadd.f32 1.0, %v1501_v39 }
  0x1a   :  { %v1503_v41 = vpop.eup %1502 }
  0x1b   :  { %254 = vmatpush1.bf16.msra.mxu0 %v1856_v29  ;;  %295 = vmatpush1.bf16.msra.mxu1 %v1861_v30  ;;  %1506 = vrcp.f32 %v24_v40  ;;  %v36_v42 = vadd.f32 1.0, %v1503_v41  ;;  %v1505_v43 = vpop.eup %1504 }
  0x1c   :  { %255 = vmatprep.subr.bf16.mxu0 %v1868_v32  ;;  %296 = vmatprep.subr.bf16.mxu1 %v1873_v33 }
  0x1d   :  { %1508 = vrcp.f32 %v36_v42 }
  0x1f   :  { %256 = vmatpush1.bf16.msra.mxu0 %v1880_v35  ;;  %297 = vmatpush1.bf16.msra.mxu1 %v1885_v36 }
  0x20   :  { %382 = vmatprep.subr.bf16.mxu0 %v1697_v0  ;;  %423 = vmatprep.subr.bf16.mxu1 %v1704_v2 }
  0x25   :  { %v1507_v44 = vpop.eup %1506 }
  0x26   :  { %v39_v45 = vmul.f32 %v1507_v44, %v1505_v43 }
  0x27   :  { %v1509_v46 = vpop.eup %1508 }
  0x28   :  { %1510 = vtanh.f32 %v39_v45  ;;  %43 = vst [vmem:[#allocation3] sm:$0x3] %v39_v45 }
  0x2f   :  { %v77_v54 = vld [vmem:[#allocation3] sm:$0x3] }
  0x32   :  { %v1511_v47 = vpop.eup %1510 }
  0x33   :  { %v41_v48 = vmul.f32 %v1511_v47, %v1509_v46 }
  0x35   :  { %42 = vst [vmem:[#allocation2] sm:$0x3] %v41_v48 }
  0x3c   :  { %v76_v49 = vld [vmem:[#allocation2] sm:$0x3] }
  0x3d   :  { %v80_v50 = vpack.c.bf16 %v76_v49, %v76_v49 }
  0x3f   :  { %274 = vmatmul.mubr.bf16.vlgmr.msra.gmra.mrb[0].mxu0 %v80_v50  ;;  %315 = vmatmul.mubr.bf16.vlgmr.msra.gmra.mrb[0].mxu1 %v80_v50 }
  0x40   :  { %383 = vmatpush1.bf16.msra.mxu0 %v1710_v3  ;;  %424 = vmatpush1.bf16.msra.mxu1 %v1715_v4 }
  0x41   :  { %384 = vmatprep.subr.bf16.mxu0 %v1721_v5  ;;  %425 = vmatprep.subr.bf16.mxu1 %v1728_v6 }
  0x42   :  { %414 = vmatprep.mubr.bf16.mxu0 %v1672_v1  ;;  %455 = vmatprep.mubr.bf16.mxu1 %v1672_v1 }
  0x44   :  { %385 = vmatpush1.bf16.msra.mxu0 %v1733_v7  ;;  %426 = vmatpush1.bf16.msra.mxu1 %v1739_v8 }
  0x45   :  { %386 = vmatprep.subr.bf16.mxu0 %v1745_v9  ;;  %427 = vmatprep.subr.bf16.mxu1 %v1750_v10 }
  0x48   :  { %387 = vmatpush1.bf16.msra.mxu0 %v1755_v11  ;;  %428 = vmatpush1.bf16.msra.mxu1 %v1760_v12 }
  0x49   :  { %388 = vmatprep.subr.bf16.mxu0 %v1767_v13  ;;  %429 = vmatprep.subr.bf16.mxu1 %v1774_v14 }
  0x4c   :  { %389 = vmatpush1.bf16.msra.mxu0 %v1779_v15  ;;  %430 = vmatpush1.bf16.msra.mxu1 %v1786_v16 }
  0x4d   :  { %390 = vmatprep.subr.bf16.mxu0 %v1791_v17  ;;  %431 = vmatprep.subr.bf16.mxu1 %v1798_v18 }
  0x50   :  { %391 = vmatpush1.bf16.msra.mxu0 %v1803_v19  ;;  %432 = vmatpush1.bf16.msra.mxu1 %v1808_v20 }
  0x51   :  { %392 = vmatprep.subr.bf16.mxu0 %v1815_v21  ;;  %433 = vmatprep.subr.bf16.mxu1 %v1822_v22 }
  0x54   :  { %393 = vmatpush1.bf16.msra.mxu0 %v1829_v23  ;;  %434 = vmatpush1.bf16.msra.mxu1 %v1834_v24 }
  0x55   :  { %394 = vmatprep.subr.bf16.mxu0 %v1841_v25  ;;  %435 = vmatprep.subr.bf16.mxu1 %v1846_v26 }
  0x58   :  { %395 = vmatpush1.bf16.msra.mxu0 %v1856_v29  ;;  %436 = vmatpush1.bf16.msra.mxu1 %v1861_v30 }
  0x59   :  { %396 = vmatprep.subr.bf16.mxu0 %v1868_v32  ;;  %437 = vmatprep.subr.bf16.mxu1 %v1873_v33 }
  0x5c   :  { %397 = vmatpush1.bf16.msra.mxu0 %v1880_v35  ;;  %438 = vmatpush1.bf16.msra.mxu1 %v1885_v36 }
  0x5d   :  { %524 = vmatprep.subr.bf16.mxu0 %v1697_v0  ;;  %565 = vmatprep.subr.bf16.mxu1 %v1704_v2 }
 0x112   :  { %v275_v56 = vpop.f32.mrb[0].mxu0  ;;  %v316_v57 = vpop.f32.mrb[0].mxu1 }
 0x113   :  { %v277_v59 = vpop.f32.mrb[1].mxu0  ;;  %v318_v61 = vpop.f32.mrb[1].mxu1 }
 0x114   :  { %v327_v62 = vcombine.low %v275_v56, %v277_v59  ;;  %v328_v63 = vcombine.low %v316_v57, %v318_v61  ;;  %v279_v27 = vpop.f32.mrb[2].mxu0  ;;  %v320_v28 = vpop.f32.mrb[2].mxu1 }
 0x115   :  { %v280_v31 = vpop.f32.mrb[3].mxu0  ;;  %v321_v34 = vpop.f32.mrb[3].mxu1 }
 0x116   :  { %v335_v37 = vrot.slane %v327_v62, %v1927_v58  ;;  %v342_v39 = vrot.slane %v328_v63, %v1927_v58 }
 0x118   :  { %v343_v40 = vcombine.low %v335_v37, %v342_v39 }
 0x11a   :  { %v345_v41 = vadd.f32 %v343_v40, %v79_v38  ;;  %v1977_v38 = vld [vmem:[%s2336_s1 + $0x4] sm:$0xff]  }
 0x11c   :  { %v1412_v42 = vmul.f32 -1.442695, %v345_v41  ;;  %v353_v43 = vrot.slane %v345_v41, 2  ;;  %v364_v45 = vrot.slane %v345_v41, 6  ;;  %v361_v48 = vrot.slane %v345_v41, 4 }
 0x11e   :  { %1512 = vpow2.f32 %v1412_v42  ;;  %v1413_v44 = vmul.f32 -1.442695, %v353_v43  ;;  %v1414_v46 = vmul.f32 -1.442695, %v364_v45 }
 0x120   :  { %1514 = vpow2.f32 %v1413_v44 }
 0x121   :  { %1516 = vpow2.f32 %v1414_v46 }
 0x128   :  { %v1513_v47 = vpop.eup %1512 }
 0x129   :  { %v349_v49 = vadd.f32 1.0, %v1513_v47  ;;  %v380_v47 = vunpack.c.l.bf16 %v1977_v38 }
 0x12a   :  { %v1515_v50 = vpop.eup %1514 }
 0x12b   :  { %1518 = vrcp.f32 %v349_v49  ;;  %v358_v51 = vadd.f32 1.0, %v1515_v50  ;;  %v1517_v52 = vpop.eup %1516 }
 0x12c   :  { %1520 = vtanh.f32 %v361_v48  ;;  %v369_v57 = vadd.f32 1.0, %v1517_v52 }
 0x12d   :  { %1522 = vrcp.f32 %v358_v51 }
 0x12e   :  { %1524 = vrcp.f32 %v369_v57 }
 0x135   :  { %v1519_v53 = vpop.eup %1518 }
 0x136   :  { %v1521_v55 = vpop.eup %1520 }
 0x137   :  { %v1523_v56 = vpop.eup %1522  ;;  %v373_v60 = vmul.f32 %v1521_v55, %v1519_v53 }
 0x138   :  { %v372_v59 = vmul.f32 %v1523_v56, %v77_v54  ;;  %v1525_v62 = vpop.eup %1524 }
 0x13a   :  { %v1934_v61 = vadd.f32 %v373_v60, %v372_v59 }
 0x13c   :  { %1526 = vtanh.f32 %v1934_v61 }
 0x146   :  { %v1527_v63 = vpop.eup %1526 }
 0x147   :  { %v376_v27 = vmul.f32 %v1527_v63, %v1525_v62 }
 0x149   :  { %377 = vst [vmem:[%s2337_s3] sm:$0x3] %v376_v27  ;;  %v381_v28 = vpack.c.bf16 %v376_v27, %v376_v27 }
 0x14b   :  { %415 = vmatmul.mubr.bf16.vlgmr.msra.gmra.mrb[4].mxu0 %v381_v28  ;;  %456 = vmatmul.mubr.bf16.vlgmr.msra.gmra.mrb[4].mxu1 %v381_v28 }
 0x14c   :  { %525 = vmatpush1.bf16.msra.mxu0 %v1710_v3  ;;  %566 = vmatpush1.bf16.msra.mxu1 %v1715_v4 }
 0x14d   :  { %526 = vmatprep.subr.bf16.mxu0 %v1721_v5  ;;  %567 = vmatprep.subr.bf16.mxu1 %v1728_v6 }
 0x14e   :  { %556 = vmatprep.mubr.bf16.mxu0 %v1672_v1  ;;  %597 = vmatprep.mubr.bf16.mxu1 %v1672_v1 }
 0x150   :  { %527 = vmatpush1.bf16.msra.mxu0 %v1733_v7  ;;  %568 = vmatpush1.bf16.msra.mxu1 %v1739_v8 }
 0x151   :  { %528 = vmatprep.subr.bf16.mxu0 %v1745_v9  ;;  %569 = vmatprep.subr.bf16.mxu1 %v1750_v10 }
 0x154   :  { %529 = vmatpush1.bf16.msra.mxu0 %v1755_v11  ;;  %570 = vmatpush1.bf16.msra.mxu1 %v1760_v12 }
 0x155   :  { %530 = vmatprep.subr.bf16.mxu0 %v1767_v13  ;;  %571 = vmatprep.subr.bf16.mxu1 %v1774_v14 }
 0x158   :  { %531 = vmatpush1.bf16.msra.mxu0 %v1779_v15  ;;  %572 = vmatpush1.bf16.msra.mxu1 %v1786_v16 }
 0x159   :  { %532 = vmatprep.subr.bf16.mxu0 %v1791_v17  ;;  %573 = vmatprep.subr.bf16.mxu1 %v1798_v18 }
 0x15c   :  { %533 = vmatpush1.bf16.msra.mxu0 %v1803_v19  ;;  %574 = vmatpush1.bf16.msra.mxu1 %v1808_v20 }
 0x15d   :  { %534 = vmatprep.subr.bf16.mxu0 %v1815_v21  ;;  %575 = vmatprep.subr.bf16.mxu1 %v1822_v22 }
 0x160   :  { %535 = vmatpush1.bf16.msra.mxu0 %v1829_v23  ;;  %576 = vmatpush1.bf16.msra.mxu1 %v1834_v24 }
 0x161   :  { %536 = vmatprep.subr.bf16.mxu0 %v1841_v25  ;;  %577 = vmatprep.subr.bf16.mxu1 %v1846_v26 }
 0x164   :  { %537 = vmatpush1.bf16.msra.mxu0 %v1856_v29  ;;  %578 = vmatpush1.bf16.msra.mxu1 %v1861_v30 }
 0x165   :  { %538 = vmatprep.subr.bf16.mxu0 %v1868_v32  ;;  %579 = vmatprep.subr.bf16.mxu1 %v1873_v33 }
 0x168   :  { %539 = vmatpush1.bf16.msra.mxu0 %v1880_v35  ;;  %580 = vmatpush1.bf16.msra.mxu1 %v1885_v36 }
 0x169   :  { %666 = vmatprep.subr.bf16.mxu0 %v1697_v0  ;;  %707 = vmatprep.subr.bf16.mxu1 %v1704_v2 }
 0x21e   :  { %v416_v31 = vpop.f32.mrb[4].mxu0  ;;  %v457_v34 = vpop.f32.mrb[4].mxu1 }
 0x21f   :  { %v418_v37 = vpop.f32.mrb[5].mxu0  ;;  %v459_v39 = vpop.f32.mrb[5].mxu1 }
 0x220   :  { %v468_v40 = vcombine.low %v416_v31, %v418_v37  ;;  %v469_v41 = vcombine.low %v457_v34, %v459_v39  ;;  %v420_v42 = vpop.f32.mrb[6].mxu0  ;;  %v461_v43 = vpop.f32.mrb[6].mxu1 }
 0x221   :  { %v421_v44 = vpop.f32.mrb[7].mxu0  ;;  %v462_v45 = vpop.f32.mrb[7].mxu1 }
 0x222   :  { %v476_v46 = vrot.slane %v468_v40, %v1927_v58  ;;  %v483_v48 = vrot.slane %v469_v41, %v1927_v58 }
 0x224   :  { %v484_v49 = vcombine.low %v476_v46, %v483_v48 }
 0x226   :  { %v486_v50 = vadd.f32 %v484_v49, %v380_v47 }
 0x228   :  { %v1416_v51 = vmul.f32 -1.442695, %v486_v50  ;;  %v494_v52 = vrot.slane %v486_v50, 2  ;;  %v505_v54 = vrot.slane %v486_v50, 6  ;;  %v502_v57 = vrot.slane %v486_v50, 4 }
 0x22a   :  { %1528 = vpow2.f32 %v1416_v51  ;;  %v1417_v53 = vmul.f32 -1.442695, %v494_v52  ;;  %v1418_v55 = vmul.f32 -1.442695, %v505_v54 }
 0x22c   :  { %1530 = vpow2.f32 %v1417_v53 }
 0x22d   :  { %1532 = vpow2.f32 %v1418_v55  ;;  %v522_v55 = vunpack.c.h.bf16 %v1977_v38 }
 0x234   :  { %v1529_v56 = vpop.eup %1528 }
 0x235   :  { %v490_v59 = vadd.f32 1.0, %v1529_v56 }
 0x236   :  { %v1531_v60 = vpop.eup %1530 }
 0x237   :  { %1534 = vrcp.f32 %v490_v59  ;;  %v499_v62 = vadd.f32 1.0, %v1531_v60  ;;  %v1533_v63 = vpop.eup %1532 }
 0x238   :  { %1536 = vtanh.f32 %v502_v57  ;;  %v510_v34 = vadd.f32 1.0, %v1533_v63 }
 0x239   :  { %1538 = vrcp.f32 %v499_v62 }
 0x23a   :  { %1540 = vrcp.f32 %v510_v34 }
 0x241   :  { %v1535_v27 = vpop.eup %1534 }
 0x242   :  { %v1537_v28 = vpop.eup %1536 }
 0x243   :  { %v1539_v31 = vpop.eup %1538  ;;  %v514_v39 = vmul.f32 %v1537_v28, %v1535_v27 }
 0x244   :  { %v513_v37 = vmul.f32 %v1539_v31, %v1934_v61  ;;  %v1541_v41 = vpop.eup %1540 }
 0x246   :  { %v1983_v40 = vadd.f32 %v514_v39, %v513_v37 }
 0x248   :  { %1542 = vtanh.f32 %v1983_v40 }
 0x252   :  { %v1543_v42 = vpop.eup %1542 }
 0x253   :  { %v517_v43 = vmul.f32 %v1543_v42, %v1541_v41 }
 0x255   :  { %1419 = vst [vmem:[%s2337_s3 + $0x2] sm:$0x3] %v517_v43  ;;  %v523_v44 = vpack.c.bf16 %v517_v43, %v517_v43 }
 0x257   :  { %557 = vmatmul.mubr.bf16.vlgmr.msra.gmra.mrb[8].mxu0 %v523_v44  ;;  %598 = vmatmul.mubr.bf16.vlgmr.msra.gmra.mrb[8].mxu1 %v523_v44 }
 0x258   :  { %667 = vmatpush1.bf16.msra.mxu0 %v1710_v3  ;;  %708 = vmatpush1.bf16.msra.mxu1 %v1715_v4 }
 0x259   :  { %668 = vmatprep.subr.bf16.mxu0 %v1721_v5  ;;  %709 = vmatprep.subr.bf16.mxu1 %v1728_v6 }
 0x25a   :  { %698 = vmatprep.mubr.bf16.mxu0 %v1672_v1  ;;  %739 = vmatprep.mubr.bf16.mxu1 %v1672_v1 }
 0x25c   :  { %669 = vmatpush1.bf16.msra.mxu0 %v1733_v7  ;;  %710 = vmatpush1.bf16.msra.mxu1 %v1739_v8 }
 0x25d   :  { %670 = vmatprep.subr.bf16.mxu0 %v1745_v9  ;;  %711 = vmatprep.subr.bf16.mxu1 %v1750_v10 }
 0x260   :  { %671 = vmatpush1.bf16.msra.mxu0 %v1755_v11  ;;  %712 = vmatpush1.bf16.msra.mxu1 %v1760_v12 }
 0x261   :  { %672 = vmatprep.subr.bf16.mxu0 %v1767_v13  ;;  %713 = vmatprep.subr.bf16.mxu1 %v1774_v14 }
 0x264   :  { %673 = vmatpush1.bf16.msra.mxu0 %v1779_v15  ;;  %714 = vmatpush1.bf16.msra.mxu1 %v1786_v16 }
 0x265   :  { %674 = vmatprep.subr.bf16.mxu0 %v1791_v17  ;;  %715 = vmatprep.subr.bf16.mxu1 %v1798_v18 }
 0x268   :  { %675 = vmatpush1.bf16.msra.mxu0 %v1803_v19  ;;  %716 = vmatpush1.bf16.msra.mxu1 %v1808_v20 }
 0x269   :  { %676 = vmatprep.subr.bf16.mxu0 %v1815_v21  ;;  %717 = vmatprep.subr.bf16.mxu1 %v1822_v22 }
 0x26c   :  { %677 = vmatpush1.bf16.msra.mxu0 %v1829_v23  ;;  %718 = vmatpush1.bf16.msra.mxu1 %v1834_v24 }
 0x26d   :  { %678 = vmatprep.subr.bf16.mxu0 %v1841_v25  ;;  %719 = vmatprep.subr.bf16.mxu1 %v1846_v26 }
 0x270   :  { %679 = vmatpush1.bf16.msra.mxu0 %v1856_v29  ;;  %720 = vmatpush1.bf16.msra.mxu1 %v1861_v30 }
 0x271   :  { %680 = vmatprep.subr.bf16.mxu0 %v1868_v32  ;;  %721 = vmatprep.subr.bf16.mxu1 %v1873_v33 }
 0x274   :  { %681 = vmatpush1.bf16.msra.mxu0 %v1880_v35  ;;  %722 = vmatpush1.bf16.msra.mxu1 %v1885_v36 }
 0x275   :  { %808 = vmatprep.subr.bf16.mxu0 %v1697_v0  ;;  %849 = vmatprep.subr.bf16.mxu1 %v1704_v2 }
 0x32a   :  { %v558_v61 = vpop.f32.mrb[8].mxu0  ;;  %v599_v45 = vpop.f32.mrb[8].mxu1 }
 0x32b   :  { %v560_v46 = vpop.f32.mrb[9].mxu0  ;;  %v601_v47 = vpop.f32.mrb[9].mxu1 }
 0x32c   :  { %v610_v48 = vcombine.low %v558_v61, %v560_v46  ;;  %v611_v49 = vcombine.low %v599_v45, %v601_v47  ;;  %v562_v50 = vpop.f32.mrb[10].mxu0  ;;  %v603_v51 = vpop.f32.mrb[10].mxu1 }
 0x32d   :  { %v563_v52 = vpop.f32.mrb[11].mxu0  ;;  %v604_v53 = vpop.f32.mrb[11].mxu1 }
 0x32e   :  { %v618_v54 = vrot.slane %v610_v48, %v1927_v58  ;;  %v625_v56 = vrot.slane %v611_v49, %v1927_v58 }
 0x330   :  { %v626_v57 = vcombine.low %v618_v54, %v625_v56  ;;  %v2070_v54 = vld [vmem:[%s2336_s1 + $0xc] sm:$0xff]  }
 0x332   :  { %v628_v59 = vadd.f32 %v626_v57, %v522_v55 }
 0x334   :  { %v1421_v60 = vmul.f32 -1.442695, %v628_v59  ;;  %v636_v62 = vrot.slane %v628_v59, 2  ;;  %v647_v27 = vrot.slane %v628_v59, 6  ;;  %v644_v34 = vrot.slane %v628_v59, 4 }
 0x336   :  { %1544 = vpow2.f32 %v1421_v60  ;;  %v1422_v63 = vmul.f32 -1.442695, %v636_v62  ;;  %v1423_v28 = vmul.f32 -1.442695, %v647_v27 }
 0x338   :  { %1546 = vpow2.f32 %v1422_v63 }
 0x339   :  { %1548 = vpow2.f32 %v1423_v28  ;;  %v664_v28 = vunpack.c.l.bf16 %v2070_v54 }
 0x340   :  { %v1545_v31 = vpop.eup %1544 }
 0x341   :  { %v632_v37 = vadd.f32 1.0, %v1545_v31 }
 0x342   :  { %v1547_v39 = vpop.eup %1546 }
 0x343   :  { %1550 = vrcp.f32 %v632_v37  ;;  %v641_v41 = vadd.f32 1.0, %v1547_v39  ;;  %v1549_v38 = vpop.eup %1548 }
 0x344   :  { %1552 = vtanh.f32 %v644_v34  ;;  %v652_v61 = vadd.f32 1.0, %v1549_v38 }
 0x345   :  { %1554 = vrcp.f32 %v641_v41 }
 0x346   :  { %1556 = vrcp.f32 %v652_v61 }
 0x34d   :  { %v1551_v42 = vpop.eup %1550 }
 0x34e   :  { %v1553_v43 = vpop.eup %1552 }
 0x34f   :  { %v1555_v44 = vpop.eup %1554  ;;  %v656_v46 = vmul.f32 %v1553_v43, %v1551_v42 }
 0x350   :  { %v655_v45 = vmul.f32 %v1555_v44, %v1983_v40  ;;  %v1557_v48 = vpop.eup %1556 }
 0x352   :  { %v2027_v47 = vadd.f32 %v656_v46, %v655_v45 }
 0x354   :  { %1558 = vtanh.f32 %v2027_v47 }
 0x35e   :  { %v1559_v49 = vpop.eup %1558 }
 0x35f   :  { %v659_v50 = vmul.f32 %v1559_v49, %v1557_v48 }
 0x361   :  { %1424 = vst [vmem:[%s2337_s3 + $0x4] sm:$0x3] %v659_v50  ;;  %v665_v51 = vpack.c.bf16 %v659_v50, %v659_v50 }
 0x363   :  { %699 = vmatmul.mubr.bf16.vlgmr.msra.gmra.mrb[12].mxu0 %v665_v51  ;;  %740 = vmatmul.mubr.bf16.vlgmr.msra.gmra.mrb[12].mxu1 %v665_v51 }
 0x364   :  { %809 = vmatpush1.bf16.msra.mxu0 %v1710_v3  ;;  %850 = vmatpush1.bf16.msra.mxu1 %v1715_v4 }
 0x365   :  { %810 = vmatprep.subr.bf16.mxu0 %v1721_v5  ;;  %851 = vmatprep.subr.bf16.mxu1 %v1728_v6 }
 0x366   :  { %840 = vmatprep.mubr.bf16.mxu0 %v1672_v1  ;;  %881 = vmatprep.mubr.bf16.mxu1 %v1672_v1 }
 0x368   :  { %811 = vmatpush1.bf16.msra.mxu0 %v1733_v7  ;;  %852 = vmatpush1.bf16.msra.mxu1 %v1739_v8 }
 0x369   :  { %812 = vmatprep.subr.bf16.mxu0 %v1745_v9  ;;  %853 = vmatprep.subr.bf16.mxu1 %v1750_v10 }
 0x36c   :  { %813 = vmatpush1.bf16.msra.mxu0 %v1755_v11  ;;  %854 = vmatpush1.bf16.msra.mxu1 %v1760_v12 }
 0x36d   :  { %814 = vmatprep.subr.bf16.mxu0 %v1767_v13  ;;  %855 = vmatprep.subr.bf16.mxu1 %v1774_v14 }
 0x370   :  { %815 = vmatpush1.bf16.msra.mxu0 %v1779_v15  ;;  %856 = vmatpush1.bf16.msra.mxu1 %v1786_v16 }
 0x371   :  { %816 = vmatprep.subr.bf16.mxu0 %v1791_v17  ;;  %857 = vmatprep.subr.bf16.mxu1 %v1798_v18 }
 0x374   :  { %817 = vmatpush1.bf16.msra.mxu0 %v1803_v19  ;;  %858 = vmatpush1.bf16.msra.mxu1 %v1808_v20 }
 0x375   :  { %818 = vmatprep.subr.bf16.mxu0 %v1815_v21  ;;  %859 = vmatprep.subr.bf16.mxu1 %v1822_v22 }
 0x378   :  { %819 = vmatpush1.bf16.msra.mxu0 %v1829_v23  ;;  %860 = vmatpush1.bf16.msra.mxu1 %v1834_v24 }
 0x379   :  { %820 = vmatprep.subr.bf16.mxu0 %v1841_v25  ;;  %861 = vmatprep.subr.bf16.mxu1 %v1846_v26 }
 0x37c   :  { %821 = vmatpush1.bf16.msra.mxu0 %v1856_v29  ;;  %862 = vmatpush1.bf16.msra.mxu1 %v1861_v30 }
 0x37d   :  { %822 = vmatprep.subr.bf16.mxu0 %v1868_v32  ;;  %863 = vmatprep.subr.bf16.mxu1 %v1873_v33 }
 0x380   :  { %823 = vmatpush1.bf16.msra.mxu0 %v1880_v35  ;;  %864 = vmatpush1.bf16.msra.mxu1 %v1885_v36 }
 0x381   :  { %950 = vmatprep.subr.bf16.mxu0 %v1697_v0  ;;  %991 = vmatprep.subr.bf16.mxu1 %v1704_v2 }
 0x436   :  { %v700_v40 = vpop.f32.mrb[12].mxu0  ;;  %v741_v52 = vpop.f32.mrb[12].mxu1 }
 0x437   :  { %v702_v53 = vpop.f32.mrb[13].mxu0  ;;  %v743_v55 = vpop.f32.mrb[13].mxu1 }
 0x438   :  { %v752_v56 = vcombine.low %v700_v40, %v702_v53  ;;  %v753_v57 = vcombine.low %v741_v52, %v743_v55  ;;  %v704_v59 = vpop.f32.mrb[14].mxu0  ;;  %v745_v60 = vpop.f32.mrb[14].mxu1 }
 0x439   :  { %v705_v62 = vpop.f32.mrb[15].mxu0  ;;  %v746_v63 = vpop.f32.mrb[15].mxu1 }
 0x43a   :  { %v760_v27 = vrot.slane %v752_v56, %v1927_v58  ;;  %v767_v31 = vrot.slane %v753_v57, %v1927_v58 }
 0x43c   :  { %v768_v34 = vcombine.low %v760_v27, %v767_v31 }
 0x43e   :  { %v770_v37 = vadd.f32 %v768_v34, %v664_v28 }
 0x440   :  { %v1426_v39 = vmul.f32 -1.442695, %v770_v37  ;;  %v778_v41 = vrot.slane %v770_v37, 2  ;;  %v789_v42 = vrot.slane %v770_v37, 6  ;;  %v786_v61 = vrot.slane %v770_v37, 4 }
 0x442   :  { %1560 = vpow2.f32 %v1426_v39  ;;  %v1427_v38 = vmul.f32 -1.442695, %v778_v41  ;;  %v1428_v43 = vmul.f32 -1.442695, %v789_v42 }
 0x444   :  { %1562 = vpow2.f32 %v1427_v38 }
 0x445   :  { %1564 = vpow2.f32 %v1428_v43 }
 0x44c   :  { %v1561_v44 = vpop.eup %1560 }
 0x44d   :  { %v774_v45 = vadd.f32 1.0, %v1561_v44 }
 0x44e   :  { %v1563_v46 = vpop.eup %1562 }
 0x44f   :  { %1566 = vrcp.f32 %v774_v45  ;;  %v783_v48 = vadd.f32 1.0, %v1563_v46  ;;  %v1565_v49 = vpop.eup %1564 }
 0x450   :  { %1568 = vtanh.f32 %v786_v61  ;;  %v794_v52 = vadd.f32 1.0, %v1565_v49 }
 0x451   :  { %1570 = vrcp.f32 %v783_v48 }
 0x452   :  { %1572 = vrcp.f32 %v794_v52  ;;  %v2147_v52 = vld [vmem:[%s2334_s2 + $0x2c] ss:$16 sps:$4 sm:$0xff]  }
 0x459   :  { %v1567_v50 = vpop.eup %1566 }
 0x45a   :  { %v1569_v51 = vpop.eup %1568 }
 0x45b   :  { %v1571_v40 = vpop.eup %1570  ;;  %v798_v55 = vmul.f32 %v1569_v51, %v1567_v50  ;;  %v2129_v50 = vld [vmem:[%s2334_s2] ss:$16 sps:$4 sm:$0xff]   ;;  %v2135_v51 = vld [vmem:[%s2334_s2 + $0x8] ss:$16 sps:$4 sm:$0xff]  }
 0x45c   :  { %v797_v53 = vmul.f32 %v1571_v40, %v2027_v47  ;;  %v1573_v57 = vpop.eup %1572  ;;  %v2141_v40 = vld [vmem:[%s2334_s2 + $0x24] ss:$16 sps:$4 sm:$0xff]  }
 0x45e   :  { %v2076_v56 = vadd.f32 %v798_v55, %v797_v53  ;;  %v2155_v53 = vld [vmem:[%s2334_s2 + $0x20] ss:$16 sps:$4 sm:$0xff]   ;;  %v2161_v55 = vld [vmem:[%s2334_s2 + $0x28] ss:$16 sps:$4 sm:$0xff]  }
 0x460   :  { %1574 = vtanh.f32 %v2076_v56 }
 0x46a   :  { %v1575_v59 = vpop.eup %1574 }
 0x46b   :  { %v801_v60 = vmul.f32 %v1575_v59, %v1573_v57  ;;  %v2173_v57 = vld [vmem:[%s2334_s2 + $0x4c] ss:$16 sps:$4 sm:$0xff]   ;;  %v2179_v59 = vld [vmem:[%s2334_s2 + $0x40] ss:$16 sps:$4 sm:$0xff]  }
 0x46d   :  { %1429 = vst [vmem:[%s2337_s3 + $0x6] sm:$0x3] %v801_v60  ;;  %v807_v62 = vpack.c.bf16 %v801_v60, %v801_v60  ;;  %v2185_v60 = vld [vmem:[%s2334_s2 + $0x48] ss:$16 sps:$4 sm:$0xff]  }
 0x46f   :  { %841 = vmatmul.mubr.bf16.vlgmr.msra.gmra.mrb[16].mxu0 %v807_v62  ;;  %882 = vmatmul.mubr.bf16.vlgmr.msra.gmra.mrb[16].mxu1 %v807_v62  ;;  %v2191_v62 = vld [vmem:[%s2334_s2 + $0x64] ss:$16 sps:$4 sm:$0xff]  }
 0x470   :  { %951 = vmatpush1.bf16.msra.mxu0 %v1710_v3  ;;  %992 = vmatpush1.bf16.msra.mxu1 %v1715_v4 }
 0x471   :  { %952 = vmatprep.subr.bf16.mxu0 %v1721_v5  ;;  %993 = vmatprep.subr.bf16.mxu1 %v1728_v6 }
 0x472   :  { %982 = vmatprep.mubr.bf16.mxu0 %v1672_v1  ;;  %1023 = vmatprep.mubr.bf16.mxu1 %v1672_v1 }
 0x474   :  { %953 = vmatpush1.bf16.msra.mxu0 %v1733_v7  ;;  %994 = vmatpush1.bf16.msra.mxu1 %v1739_v8 }
 0x475   :  { %954 = vmatprep.subr.bf16.mxu0 %v1745_v9  ;;  %995 = vmatprep.subr.bf16.mxu1 %v1750_v10 }
 0x478   :  { %955 = vmatpush1.bf16.msra.mxu0 %v1755_v11  ;;  %996 = vmatpush1.bf16.msra.mxu1 %v1760_v12 }
 0x479   :  { %956 = vmatprep.subr.bf16.mxu0 %v1767_v13  ;;  %997 = vmatprep.subr.bf16.mxu1 %v1774_v14  ;;  %v806_v14 = vunpack.c.h.bf16 %v2070_v54 }
 0x47c   :  { %957 = vmatpush1.bf16.msra.mxu0 %v1779_v15  ;;  %998 = vmatpush1.bf16.msra.mxu1 %v1786_v16 }
 0x47d   :  { %958 = vmatprep.subr.bf16.mxu0 %v1791_v17  ;;  %999 = vmatprep.subr.bf16.mxu1 %v1798_v18 }
 0x480   :  { %959 = vmatpush1.bf16.msra.mxu0 %v1803_v19  ;;  %1000 = vmatpush1.bf16.msra.mxu1 %v1808_v20 }
 0x481   :  { %960 = vmatprep.subr.bf16.mxu0 %v1815_v21  ;;  %1001 = vmatprep.subr.bf16.mxu1 %v1822_v22 }
 0x484   :  { %961 = vmatpush1.bf16.msra.mxu0 %v1829_v23  ;;  %1002 = vmatpush1.bf16.msra.mxu1 %v1834_v24 }
 0x485   :  { %962 = vmatprep.subr.bf16.mxu0 %v1841_v25  ;;  %1003 = vmatprep.subr.bf16.mxu1 %v1846_v26 }
 0x488   :  { %963 = vmatpush1.bf16.msra.mxu0 %v1856_v29  ;;  %1004 = vmatpush1.bf16.msra.mxu1 %v1861_v30 }
 0x489   :  { %964 = vmatprep.subr.bf16.mxu0 %v1868_v32  ;;  %1005 = vmatprep.subr.bf16.mxu1 %v1873_v33 }
 0x48c   :  { %965 = vmatpush1.bf16.msra.mxu0 %v1880_v35  ;;  %1006 = vmatpush1.bf16.msra.mxu1 %v1885_v36 }
 0x48d   :  { %1092 = vmatprep.subr.bf16.mxu0 %v1697_v0  ;;  %1133 = vmatprep.subr.bf16.mxu1 %v1704_v2 }
 0x542   :  { %v842_v3 = vpop.f32.mrb[16].mxu0  ;;  %v883_v4 = vpop.f32.mrb[16].mxu1 }
 0x543   :  { %v844_v5 = vpop.f32.mrb[17].mxu0  ;;  %v885_v6 = vpop.f32.mrb[17].mxu1 }
 0x544   :  { %v894_v7 = vcombine.low %v842_v3, %v844_v5  ;;  %v895_v8 = vcombine.low %v883_v4, %v885_v6  ;;  %v846_v9 = vpop.f32.mrb[18].mxu0  ;;  %v887_v10 = vpop.f32.mrb[18].mxu1  ;;  %v2197_v3 = vld [vmem:[%s2334_s2 + $0x6c] ss:$16 sps:$4 sm:$0xff]   ;;  %v2203_v4 = vld [vmem:[%s2334_s2 + $0x60] ss:$16 sps:$4 sm:$0xff]  }
 0x545   :  { %v847_v11 = vpop.f32.mrb[19].mxu0  ;;  %v888_v12 = vpop.f32.mrb[19].mxu1  ;;  %v2209_v5 = vld [vmem:[%s2334_s2 + $0x68] ss:$16 sps:$4 sm:$0xff]   ;;  %v2215_v6 = vld [vmem:[%s2334_s2 + $0x84] ss:$16 sps:$4 sm:$0xff]  }
 0x546   :  { %v902_v13 = vrot.slane %v894_v7, %v1927_v58  ;;  %v909_v15 = vrot.slane %v895_v8, %v1927_v58  ;;  %v2221_v7 = vld [vmem:[%s2334_s2 + $0x8c] ss:$16 sps:$4 sm:$0xff]  }
 0x548   :  { %v910_v16 = vcombine.low %v902_v13, %v909_v15 }
 0x54a   :  { %v912_v0 = vadd.f32 %v910_v16, %v806_v14 }
 0x54c   :  { %v1431_v17 = vmul.f32 -1.442695, %v912_v0  ;;  %v920_v2 = vrot.slane %v912_v0, 2  ;;  %v931_v47 = vrot.slane %v912_v0, 6  ;;  %v928_v28 = vrot.slane %v912_v0, 4 }
 0x54e   :  { %1576 = vpow2.f32 %v1431_v17  ;;  %v1432_v18 = vmul.f32 -1.442695, %v920_v2  ;;  %v1433_v63 = vmul.f32 -1.442695, %v931_v47 }
 0x550   :  { %1578 = vpow2.f32 %v1432_v18 }
 0x551   :  { %1580 = vpow2.f32 %v1433_v63 }
 0x558   :  { %v1577_v27 = vpop.eup %1576 }
 0x559   :  { %v916_v31 = vadd.f32 1.0, %v1577_v27 }
 0x55a   :  { %v1579_v34 = vpop.eup %1578 }
 0x55b   :  { %1582 = vrcp.f32 %v916_v31  ;;  %v925_v37 = vadd.f32 1.0, %v1579_v34  ;;  %v1581_v54 = vpop.eup %1580 }
 0x55c   :  { %1584 = vtanh.f32 %v928_v28  ;;  %v936_v42 = vadd.f32 1.0, %v1581_v54 }
 0x55d   :  { %1586 = vrcp.f32 %v925_v37 }
 0x55e   :  { %1588 = vrcp.f32 %v936_v42 }
 0x565   :  { %v1583_v39 = vpop.eup %1582 }
 0x566   :  { %v1585_v41 = vpop.eup %1584 }
 0x567   :  { %v1587_v38 = vpop.eup %1586  ;;  %v940_v44 = vmul.f32 %v1585_v41, %v1583_v39 }
 0x568   :  { %v939_v43 = vmul.f32 %v1587_v38, %v2076_v56  ;;  %v1589_v45 = vpop.eup %1588  ;;  %v2167_v56 = vld [vmem:[%s2334_s2 + $0x44] ss:$16 sps:$4 sm:$0xff]  }
 0x56a   :  { %v2120_v61 = vadd.f32 %v940_v44, %v939_v43  ;;  %v1659_v44 = vld [vmem:[%s2334_s2 + $0x88] ss:$16 sps:$4 sm:$0xff]  }
 0x56c   :  { %1590 = vtanh.f32 %v2120_v61 }
 0x576   :  { %v1591_v46 = vpop.eup %1590 }
 0x577   :  { %v943_v48 = vmul.f32 %v1591_v46, %v1589_v45  ;;  %v1661_v45 = vld [vmem:[%s2334_s2 + $0xac] ss:$16 sps:$4 sm:$0xff]   ;;  %v1662_v46 = vld [vmem:[%s2334_s2 + $0xa0] ss:$16 sps:$4 sm:$0xff]  }
 0x579   :  { %1434 = vst [vmem:[%s2337_s3 + $0x8] sm:$0x3] %v943_v48  ;;  %v949_v49 = vpack.c.bf16 %v943_v48, %v943_v48  ;;  %v1663_v48 = vld [vmem:[%s2334_s2 + $0xa8] ss:$16 sps:$4 sm:$0xff]  }
 0x57b   :  { %983 = vmatmul.mubr.bf16.vlgmr.msra.gmra.mrb[20].mxu0 %v949_v49  ;;  %1024 = vmatmul.mubr.bf16.vlgmr.msra.gmra.mrb[20].mxu1 %v949_v49  ;;  %v1664_v49 = vld [vmem:[%s2334_s2 + $0xc4] ss:$16 sps:$4 sm:$0xff]  }
 0x57c   :  { %1093 = vmatpush1.bf16.msra.mxu0 %v2129_v50  ;;  %1134 = vmatpush1.bf16.msra.mxu1 %v2135_v51 }
 0x57d   :  { %1094 = vmatprep.subr.bf16.mxu0 %v2141_v40  ;;  %1135 = vmatprep.subr.bf16.mxu1 %v2147_v52 }
 0x57e   :  { %1124 = vmatprep.mubr.bf16.mxu0 %v1672_v1  ;;  %1165 = vmatprep.mubr.bf16.mxu1 %v1672_v1 }
 0x580   :  { %1095 = vmatpush1.bf16.msra.mxu0 %v2155_v53  ;;  %1136 = vmatpush1.bf16.msra.mxu1 %v2161_v55 }
 0x581   :  { %1096 = vmatprep.subr.bf16.mxu0 %v2167_v56  ;;  %1137 = vmatprep.subr.bf16.mxu1 %v2173_v57 }
 0x584   :  { %1097 = vmatpush1.bf16.msra.mxu0 %v2179_v59  ;;  %1138 = vmatpush1.bf16.msra.mxu1 %v2185_v60 }
 0x585   :  { %1098 = vmatprep.subr.bf16.mxu0 %v2191_v62  ;;  %1139 = vmatprep.subr.bf16.mxu1 %v2197_v3 }
 0x588   :  { %1099 = vmatpush1.bf16.msra.mxu0 %v2203_v4  ;;  %1140 = vmatpush1.bf16.msra.mxu1 %v2209_v5 }
 0x589   :  { %1100 = vmatprep.subr.bf16.mxu0 %v2215_v6  ;;  %1141 = vmatprep.subr.bf16.mxu1 %v2221_v7 }
 0x58c   :  { %1101 = vmatpush1.bf16.msra.mxu0 %v1803_v19  ;;  %1142 = vmatpush1.bf16.msra.mxu1 %v1808_v20  ;;  %v1656_v19 = vld [vmem:[%s2334_s2 + $0x4] ss:$16 sps:$4 sm:$0xff]   ;;  %v1657_v20 = vld [vmem:[%s2334_s2 + $0xc] ss:$16 sps:$4 sm:$0xff]  }
 0x58d   :  { %1102 = vmatprep.subr.bf16.mxu0 %v1815_v21  ;;  %1143 = vmatprep.subr.bf16.mxu1 %v1822_v22 }
 0x590   :  { %1103 = vmatpush1.bf16.msra.mxu0 %v1829_v23  ;;  %1144 = vmatpush1.bf16.msra.mxu1 %v1834_v24  ;;  %v2247_v24 = vld [vmem:[%s2336_s1 + $0x14] sm:$0xff]  }
 0x591   :  { %1104 = vmatprep.subr.bf16.mxu0 %v1841_v25  ;;  %1145 = vmatprep.subr.bf16.mxu1 %v1846_v26  ;;  %v948_v8 = vunpack.c.l.bf16 %v2247_v24 }
 0x594   :  { %1105 = vmatpush1.bf16.msra.mxu0 %v1856_v29  ;;  %1146 = vmatpush1.bf16.msra.mxu1 %v1861_v30 }
 0x595   :  { %1106 = vmatprep.subr.bf16.mxu0 %v1868_v32  ;;  %1147 = vmatprep.subr.bf16.mxu1 %v1873_v33 }
 0x598   :  { %1107 = vmatpush1.bf16.msra.mxu0 %v1880_v35  ;;  %1148 = vmatpush1.bf16.msra.mxu1 %v1885_v36 }
 0x599   :  { %1234 = vmatprep.subr.bf16.mxu0 %v1656_v19  ;;  %1275 = vmatprep.subr.bf16.mxu1 %v1657_v20 }
 0x64e   :  { %v984_v21 = vpop.f32.mrb[20].mxu0  ;;  %v1025_v22 = vpop.f32.mrb[20].mxu1 }
 0x64f   :  { %v986_v23 = vpop.f32.mrb[21].mxu0  ;;  %v1027_v25 = vpop.f32.mrb[21].mxu1 }
 0x650   :  { %v1036_v26 = vcombine.low %v984_v21, %v986_v23  ;;  %v1037_v29 = vcombine.low %v1025_v22, %v1027_v25  ;;  %v988_v30 = vpop.f32.mrb[22].mxu0  ;;  %v1029_v32 = vpop.f32.mrb[22].mxu1  ;;  %v1090_v21 = vunpack.c.h.bf16 %v2247_v24 }
 0x651   :  { %v989_v33 = vpop.f32.mrb[23].mxu0  ;;  %v1030_v35 = vpop.f32.mrb[23].mxu1 }
 0x652   :  { %v1044_v36 = vrot.slane %v1036_v26, %v1927_v58  ;;  %v1051_v9 = vrot.slane %v1037_v29, %v1927_v58 }
 0x654   :  { %v1052_v10 = vcombine.low %v1044_v36, %v1051_v9 }
 0x656   :  { %v1054_v11 = vadd.f32 %v1052_v10, %v948_v8 }
 0x658   :  { %v1436_v12 = vmul.f32 -1.442695, %v1054_v11  ;;  %v1062_v13 = vrot.slane %v1054_v11, 2  ;;  %v1073_v15 = vrot.slane %v1054_v11, 6  ;;  %v1070_v17 = vrot.slane %v1054_v11, 4 }
 0x65a   :  { %1592 = vpow2.f32 %v1436_v12  ;;  %v1437_v14 = vmul.f32 -1.442695, %v1062_v13  ;;  %v1438_v16 = vmul.f32 -1.442695, %v1073_v15 }
 0x65c   :  { %1594 = vpow2.f32 %v1437_v14 }
 0x65d   :  { %1596 = vpow2.f32 %v1438_v16 }
 0x664   :  { %v1593_v0 = vpop.eup %1592 }
 0x665   :  { %v1058_v2 = vadd.f32 1.0, %v1593_v0 }
 0x666   :  { %v1595_v18 = vpop.eup %1594 }
 0x667   :  { %1598 = vrcp.f32 %v1058_v2  ;;  %v1067_v47 = vadd.f32 1.0, %v1595_v18  ;;  %v1597_v63 = vpop.eup %1596 }
 0x668   :  { %1600 = vtanh.f32 %v1070_v17  ;;  %v1078_v34 = vadd.f32 1.0, %v1597_v63 }
 0x669   :  { %1602 = vrcp.f32 %v1067_v47 }
 0x66a   :  { %1604 = vrcp.f32 %v1078_v34 }
 0x671   :  { %v1599_v27 = vpop.eup %1598 }
 0x672   :  { %v1601_v28 = vpop.eup %1600 }
 0x673   :  { %v1603_v31 = vpop.eup %1602  ;;  %v1082_v54 = vmul.f32 %v1601_v28, %v1599_v27 }
 0x674   :  { %v1081_v37 = vmul.f32 %v1603_v31, %v2120_v61  ;;  %v1605_v41 = vpop.eup %1604  ;;  %v1660_v61 = vld [vmem:[%s2334_s2 + $0xa4] ss:$16 sps:$4 sm:$0xff]   ;;  %v1445_v31 = vld [vmem:[%s2336_s1 + $0x1c] sm:$0xf] }
 0x676   :  { %v2253_v39 = vadd.f32 %v1082_v54, %v1081_v37 }
 0x678   :  { %1606 = vtanh.f32 %v2253_v39 }
 0x682   :  { %v1607_v38 = vpop.eup %1606 }
 0x683   :  { %v1085_v42 = vmul.f32 %v1607_v38, %v1605_v41 }
 0x685   :  { %1439 = vst [vmem:[%s2337_s3 + $0xa] sm:$0x3] %v1085_v42  ;;  %v1091_v43 = vpack.c.bf16 %v1085_v42, %v1085_v42 }
 0x687   :  { %1125 = vmatmul.mubr.bf16.vlgmr.msra.gmra.mrb[24].mxu0 %v1091_v43  ;;  %1166 = vmatmul.mubr.bf16.vlgmr.msra.gmra.mrb[24].mxu1 %v1091_v43 }
 0x688   :  { %1235 = vmatpush1.bf16.msra.mxu0 %v2129_v50  ;;  %1276 = vmatpush1.bf16.msra.mxu1 %v2135_v51  ;;  %v1665_v50 = vld [vmem:[%s2334_s2 + $0xcc] ss:$16 sps:$4 sm:$0xff]   ;;  %v1666_v51 = vld [vmem:[%s2334_s2 + $0xc0] ss:$16 sps:$4 sm:$0xff]  }
 0x689   :  { %1236 = vmatprep.subr.bf16.mxu0 %v2141_v40  ;;  %1277 = vmatprep.subr.bf16.mxu1 %v2147_v52  ;;  %v1667_v40 = vld [vmem:[%s2334_s2 + $0xc8] ss:$16 sps:$4 sm:$0xff]   ;;  %v1668_v52 = vld [vmem:[%s2334_s2 + $0xe4] ss:$16 sps:$4 sm:$0xff]  }
 0x68a   :  { %1266 = vmatprep.mubr.bf16.mxu0 %v1672_v1  ;;  %1307 = vmatprep.mubr.bf16.mxu1 %v1672_v1  ;;  %v1658_v1 = vld [vmem:[%s2334_s2 + $0x80] ss:$16 sps:$4 sm:$0xff]  }
 0x68c   :  { %1237 = vmatpush1.bf16.msra.mxu0 %v2155_v53  ;;  %1278 = vmatpush1.bf16.msra.mxu1 %v2161_v55  ;;  %v1669_v53 = vld [vmem:[%s2334_s2 + $0xec] ss:$16 sps:$4 sm:$0xff]   ;;  %v1670_v55 = vld [vmem:[%s2334_s2 + $0xe0] ss:$16 sps:$4 sm:$0xff]  }
 0x68d   :  { %1238 = vmatprep.subr.bf16.mxu0 %v2167_v56  ;;  %1279 = vmatprep.subr.bf16.mxu1 %v2173_v57  ;;  %v1671_v56 = vld [vmem:[%s2334_s2 + $0xe8] ss:$16 sps:$4 sm:$0xff]  }
 0x690   :  { %1239 = vmatpush1.bf16.msra.mxu0 %v2179_v59  ;;  %1280 = vmatpush1.bf16.msra.mxu1 %v2185_v60 }
 0x691   :  { %1240 = vmatprep.subr.bf16.mxu0 %v2191_v62  ;;  %1281 = vmatprep.subr.bf16.mxu1 %v2197_v3 }
 0x694   :  { %1241 = vmatpush1.bf16.msra.mxu0 %v2203_v4  ;;  %1282 = vmatpush1.bf16.msra.mxu1 %v2209_v5 }
 0x695   :  { %1242 = vmatprep.subr.bf16.mxu0 %v2215_v6  ;;  %1283 = vmatprep.subr.bf16.mxu1 %v2221_v7 }
 0x698   :  { %1243 = vmatpush1.bf16.msra.mxu0 %v1658_v1  ;;  %1284 = vmatpush1.bf16.msra.mxu1 %v1659_v44  ;;  %v1232_v1 = vunpack.c.l.bf16 %v1445_v31 }
 0x699   :  { %1244 = vmatprep.subr.bf16.mxu0 %v1660_v61  ;;  %1285 = vmatprep.subr.bf16.mxu1 %v1661_v45 }
 0x69c   :  { %1245 = vmatpush1.bf16.msra.mxu0 %v1662_v46  ;;  %1286 = vmatpush1.bf16.msra.mxu1 %v1663_v48 }
 0x69d   :  { %1246 = vmatprep.subr.bf16.mxu0 %v1664_v49  ;;  %1287 = vmatprep.subr.bf16.mxu1 %v1665_v50 }
 0x6a0   :  { %1247 = vmatpush1.bf16.msra.mxu0 %v1666_v51  ;;  %1288 = vmatpush1.bf16.msra.mxu1 %v1667_v40 }
 0x6a1   :  { %1248 = vmatprep.subr.bf16.mxu0 %v1668_v52  ;;  %1289 = vmatprep.subr.bf16.mxu1 %v1669_v53 }
 0x6a4   :  { %1249 = vmatpush1.bf16.msra.mxu0 %v1670_v55  ;;  %1290 = vmatpush1.bf16.msra.mxu1 %v1671_v56 }
 0x75a   :  { %v1126_v57 = vpop.f32.mrb[24].mxu0  ;;  %v1167_v59 = vpop.f32.mrb[24].mxu1 }
 0x75b   :  { %v1128_v60 = vpop.f32.mrb[25].mxu0  ;;  %v1169_v62 = vpop.f32.mrb[25].mxu1 }
 0x75c   :  { %v1178_v3 = vcombine.low %v1126_v57, %v1128_v60  ;;  %v1179_v4 = vcombine.low %v1167_v59, %v1169_v62  ;;  %v1130_v5 = vpop.f32.mrb[26].mxu0  ;;  %v1171_v6 = vpop.f32.mrb[26].mxu1 }
 0x75d   :  { %v1131_v7 = vpop.f32.mrb[27].mxu0  ;;  %v1172_v19 = vpop.f32.mrb[27].mxu1 }
 0x75e   :  { %v1186_v20 = vrot.slane %v1178_v3, %v1927_v58  ;;  %v1193_v22 = vrot.slane %v1179_v4, %v1927_v58 }
 0x760   :  { %v1194_v23 = vcombine.low %v1186_v20, %v1193_v22 }
 0x762   :  { %v1196_v25 = vadd.f32 %v1194_v23, %v1090_v21 }
 0x764   :  { %v1441_v26 = vmul.f32 -1.442695, %v1196_v25  ;;  %v1204_v29 = vrot.slane %v1196_v25, 2  ;;  %v1215_v32 = vrot.slane %v1196_v25, 6  ;;  %v1212_v36 = vrot.slane %v1196_v25, 4 }
 0x766   :  { %1608 = vpow2.f32 %v1441_v26  ;;  %v1442_v30 = vmul.f32 -1.442695, %v1204_v29  ;;  %v1443_v33 = vmul.f32 -1.442695, %v1215_v32 }
 0x768   :  { %1610 = vpow2.f32 %v1442_v30 }
 0x769   :  { %1612 = vpow2.f32 %v1443_v33 }
 0x770   :  { %v1609_v35 = vpop.eup %1608 }
 0x771   :  { %v1200_v8 = vadd.f32 1.0, %v1609_v35 }
 0x772   :  { %v1611_v9 = vpop.eup %1610 }
 0x773   :  { %1614 = vrcp.f32 %v1200_v8  ;;  %v1209_v10 = vadd.f32 1.0, %v1611_v9  ;;  %v1613_v24 = vpop.eup %1612 }
 0x774   :  { %1616 = vtanh.f32 %v1212_v36  ;;  %v1220_v14 = vadd.f32 1.0, %v1613_v24 }
 0x775   :  { %1618 = vrcp.f32 %v1209_v10 }
 0x776   :  { %1620 = vrcp.f32 %v1220_v14 }
 0x77d   :  { %v1615_v11 = vpop.eup %1614 }
 0x77e   :  { %v1617_v12 = vpop.eup %1616 }
 0x77f   :  { %v1619_v13 = vpop.eup %1618  ;;  %v1224_v16 = vmul.f32 %v1617_v12, %v1615_v11 }
 0x780   :  { %v1223_v15 = vmul.f32 %v1619_v13, %v2253_v39  ;;  %v1621_v17 = vpop.eup %1620 }
 0x782   :  { %v1225_v0 = vadd.f32 %v1224_v16, %v1223_v15 }
 0x784   :  { %1622 = vtanh.f32 %v1225_v0 }
 0x78e   :  { %v1623_v2 = vpop.eup %1622 }
 0x78f   :  { %v1227_v18 = vmul.f32 %v1623_v2, %v1621_v17 }
 0x791   :  { %1444 = vst [vmem:[%s2337_s3 + $0xc] sm:$0x3] %v1227_v18  ;;  %v1233_v47 = vpack.c.bf16 %v1227_v18, %v1227_v18 }
 0x793   :  { %1267 = vmatmul.mubr.bf16.vlgmr.msra.gmra.mrb[28].mxu0 %v1233_v47  ;;  %1308 = vmatmul.mubr.bf16.vlgmr.msra.gmra.mrb[28].mxu1 %v1233_v47 }
 0x866   :  { %v1268_v63 = vpop.f32.mrb[28].mxu0  ;;  %v1309_v27 = vpop.f32.mrb[28].mxu1 }
 0x867   :  { %v1270_v28 = vpop.f32.mrb[29].mxu0  ;;  %v1311_v34 = vpop.f32.mrb[29].mxu1 }
 0x868   :  { %v1320_v37 = vcombine.low %v1268_v63, %v1270_v28  ;;  %v1321_v54 = vcombine.low %v1309_v27, %v1311_v34  ;;  %v1272_v39 = vpop.f32.mrb[30].mxu0  ;;  %v1313_v41 = vpop.f32.mrb[30].mxu1 }
 0x869   :  { %v1273_v38 = vpop.f32.mrb[31].mxu0  ;;  %v1314_v42 = vpop.f32.mrb[31].mxu1 }
 0x86a   :  { %v1328_v43 = vrot.slane %v1320_v37, %v1927_v58  ;;  %v1335_v44 = vrot.slane %v1321_v54, %v1927_v58 }
 0x86c   :  { %v1336_v61 = vcombine.low %v1328_v43, %v1335_v44 }
 0x86e   :  { %v1338_v45 = vadd.f32 %v1336_v61, %v1232_v1 }
 0x870   :  { %v1446_v46 = vmul.f32 -1.442695, %v1338_v45  ;;  %v1346_v48 = vrot.slane %v1338_v45, 2  ;;  %v1357_v50 = vrot.slane %v1338_v45, 6  ;;  %v1354_v52 = vrot.slane %v1338_v45, 4 }
 0x872   :  { %1624 = vpow2.f32 %v1446_v46  ;;  %v1447_v49 = vmul.f32 -1.442695, %v1346_v48  ;;  %v1448_v51 = vmul.f32 -1.442695, %v1357_v50 }
 0x874   :  { %1626 = vpow2.f32 %v1447_v49 }
 0x875   :  { %1628 = vpow2.f32 %v1448_v51 }
 0x87c   :  { %v1625_v40 = vpop.eup %1624 }
 0x87d   :  { %v1342_v53 = vadd.f32 1.0, %v1625_v40 }
 0x87e   :  { %v1627_v55 = vpop.eup %1626 }
 0x87f   :  { %1630 = vrcp.f32 %v1342_v53  ;;  %v1351_v56 = vadd.f32 1.0, %v1627_v55  ;;  %v1629_v57 = vpop.eup %1628 }
 0x880   :  { %1632 = vtanh.f32 %v1354_v52  ;;  %v1362_v62 = vadd.f32 1.0, %v1629_v57 }
 0x881   :  { %1634 = vrcp.f32 %v1351_v56 }
 0x882   :  { %1636 = vrcp.f32 %v1362_v62 }
 0x889   :  { %v1631_v58 = vpop.eup %1630 }
 0x88a   :  { %v1633_v59 = vpop.eup %1632 }
 0x88b   :  { %v1635_v60 = vpop.eup %1634  ;;  %v1366_v4 = vmul.f32 %v1633_v59, %v1631_v58 }
 0x88c   :  { %v1365_v3 = vmul.f32 %v1635_v60, %v1225_v0  ;;  %v1637_v6 = vpop.eup %1636 }
 0x88e   :  { %v1367_v5 = vadd.f32 %v1366_v4, %v1365_v3 }
 0x890   :  { %1638 = vtanh.f32 %v1367_v5  ;;  %1373 = vst [vmem:[#allocation3] sm:$0x3] %v1367_v5 }
 0x89a   :  { %v1639_v7 = vpop.eup %1638 }
 0x89b   :  { %v1369_v19 = vmul.f32 %v1639_v7, %v1637_v6 }
 0x89d   :  { %1449 = vst [vmem:[%s2337_s3 + $0xe] sm:$0x3] %v1369_v19  ;;  %1372 = vst [vmem:[#allocation2] sm:$0x3] %v1369_v19 }

</bundles_post_ra>
